<compile_context>
chip_gen: v6e
topology: v6e:2x2x1
jax: 0.10.0
libtpu: 0.0.40
codegen_flags: <defaults>
</compile_context>

<pallas_src>
import jax
import jax.numpy as jnp
from jax.experimental import pallas as pl
from jax.experimental.pallas import tpu as pltpu


def _round_up(v, m):
    return (v + m - 1) // m * m


def _pad_cast(arr, target_shape, dtype):
    """Cast + zero-pad to target_shape; skips the copy entirely when already aligned."""
    arr = jnp.asarray(arr)
    if arr.dtype != dtype:
        arr = arr.astype(dtype)
    if tuple(arr.shape) != tuple(target_shape):
        pads = [(0, t - s) for s, t in zip(arr.shape, target_shape)]
        arr = jnp.pad(arr, pads)
    return arr


def _graph_encoder_kernel(x_ref, adj_ref, w1_ref, w2_ref, b1_ref, b2_ref, o_ref):
    """Processes G graphs per grid step.

    x_ref  : (G, N, F_in)    matmul dtype (bf16 by default)
    adj_ref: (G, N, N)       matmul dtype
    w1_ref : (F_in, F_hid)   matmul dtype   -- constant index_map (resident in VMEM)
    w2_ref : (F_hid, F_out)  matmul dtype   -- constant index_map
    b1_ref : (1, F_hid) f32, b2_ref: (1, F_out) f32 -- constant index_map
    o_ref  : (G, N, F_out)   out dtype
    """
    x = x_ref[...]
    adj = adj_ref[...]
    mm_dtype = x.dtype
    g, n, f_in = x.shape

    # ---- Layer 1: h = relu(adj @ (x @ W1) + b1) ----
    # Feature transform of all G graphs fused into one big 2D MXU matmul (M = G*N rows),
    # f32 accumulation; per-graph aggregation is a batched matmul; epilogue in f32 (VPU).
    s1 = jnp.dot(x.reshape(g * n, f_in), w1_ref[...],
                 preferred_element_type=jnp.float32)
    s1 = s1.reshape(g, n, -1).astype(mm_dtype)
    h = jnp.einsum("gij,gjf->gif", adj, s1, preferred_element_type=jnp.float32)
    h = jnp.maximum(h + b1_ref[...], 0.0)

    # ---- Layer 2: out = adj @ (h @ W2) + b2 ----
    s2 = jnp.dot(h.astype(mm_dtype).reshape(g * n, -1), w2_ref[...],
                 preferred_element_type=jnp.float32)
    s2 = s2.reshape(g, n, -1).astype(mm_dtype)
    out = jnp.einsum("gij,gjf->gif", adj, s2, preferred_element_type=jnp.float32)
    out = out + b2_ref[...]

    o_ref[...] = out.astype(o_ref.dtype)


def _pick_graphs_per_step(B, n_pad, f_in_pad, f_hid_pad, f_out_pad,
                          mm_bytes, out_bytes, budget=20 * 2**20):
    """Enough graphs per step for >=256 MXU rows, capped by batch and a VMEM budget."""
    g = min(B, max(1, -(-256 // n_pad)), 64)

    def step_bytes(gg):
        stream = gg * n_pad * (f_in_pad * mm_bytes + n_pad * mm_bytes
                               + f_out_pad * out_bytes)
        temps = gg * n_pad * (f_hid_pad + f_out_pad) * 4      # f32 intermediates
        return 2 * stream + temps                              # double-buffered streams

    while g > 1 and step_bytes(g) > budget:
        g = (g + 1) // 2
    return g


def _vmem_estimate(g, n_pad, f_in_pad, f_hid_pad, f_out_pad, mm_bytes, out_bytes):
    stream = g * n_pad * (f_in_pad * mm_bytes + n_pad * mm_bytes + f_out_pad * out_bytes)
    consts = (f_in_pad * f_hid_pad + f_hid_pad * f_out_pad) * mm_bytes \
             + (f_hid_pad + f_out_pad) * 4
    temps = g * n_pad * (f_hid_pad + f_out_pad) * 4
    return 2 * stream + 2 * consts + temps


def graph_encoder(x, adj, w1, b1, w2, b2, *, matmul_dtype=jnp.bfloat16,
                  out_dtype=jnp.float32, graphs_per_step=None):
    """GraphEncoder forward: gc2(relu(gc1(x, adj)), adj).

    Accepts a single graph (x: [N, F_in], adj: [N, N]) or a batch
    (x: [B, N, F_in], adj: [B, N, N]). Returns [..., N, out_features] in `out_dtype`.
    """
    single = x.ndim == 2
    if single:
        x = x[None]
        adj = adj[None]

    B, N, F_in = x.shape
    F_hid = w1.shape[1]
    F_out = w2.shape[1]
    assert adj.shape == (B, N, N)
    assert w1.shape == (F_in, F_hid)
    assert w2.shape == (F_hid, F_out)
    assert jnp.size(b1) == F_hid and jnp.size(b2) == F_out

    mm_bytes = jnp.dtype(matmul_dtype).itemsize
    out_bytes = jnp.dtype(out_dtype).itemsize

    # Per-layer padded dims: node dim sublane-aligned, feature dims lane-dense (128).
    n_pad = _round_up(max(N, 8), 8)
    f_in_pad = _round_up(max(F_in, 128), 128)
    f_hid_pad = _round_up(max(F_hid, 128), 128)
    f_out_pad = _round_up(max(F_out, 128), 128)

    g = graphs_per_step or _pick_graphs_per_step(
        B, n_pad, f_in_pad, f_hid_pad, f_out_pad, mm_bytes, out_bytes)
    g = max(1, min(g, B))
    b_pad = _round_up(B, g)

    # Zero padding is an exact no-op through the GCN math; padded rows/graphs are sliced
    # off at the end. _pad_cast skips the copy when an operand is already aligned.
    xp = _pad_cast(x, (b_pad, n_pad, f_in_pad), matmul_dtype)
    adjp = _pad_cast(adj, (b_pad, n_pad, n_pad), matmul_dtype)
    w1p = _pad_cast(w1, (f_in_pad, f_hid_pad), matmul_dtype)
    w2p = _pad_cast(w2, (f_hid_pad, f_out_pad), matmul_dtype)
    b1p = _pad_cast(jnp.reshape(b1, (1, F_hid)), (1, f_hid_pad), jnp.float32)
    b2p = _pad_cast(jnp.reshape(b2, (1, F_out)), (1, f_out_pad), jnp.float32)

    est = _vmem_estimate(g, n_pad, f_in_pad, f_hid_pad, f_out_pad, mm_bytes, out_bytes)
    vmem_limit = int(min(est * 1.5, 64 * 2**20)) if est > 12 * 2**20 else None

    def run(single_buffer_consts):
        def const_spec(shape):
            kwargs = {}
            if single_buffer_consts:
                # Constant-index blocks don't need double buffering.
                kwargs["pipeline_mode"] = pl.Buffered(1)
            return pl.BlockSpec(shape, lambda i: (0,) * len(shape), **kwargs)

        in_specs = [
            pl.BlockSpec((g, n_pad, f_in_pad), lambda i: (i, 0, 0)),   # x    (G graphs)
            pl.BlockSpec((g, n_pad, n_pad), lambda i: (i, 0, 0)),      # adj  (G graphs)
            const_spec((f_in_pad, f_hid_pad)),                         # W1 (once)
            const_spec((f_hid_pad, f_out_pad)),                        # W2 (once)
            const_spec((1, f_hid_pad)),                                # b1 (once)
            const_spec((1, f_out_pad)),                                # b2 (once)
        ]
        out_specs = pl.BlockSpec((g, n_pad, f_out_pad), lambda i: (i, 0, 0))

        fn = pl.pallas_call(
            _graph_encoder_kernel,
            out_shape=jax.ShapeDtypeStruct((b_pad, n_pad, f_out_pad), out_dtype),
            grid_spec=pltpu.PrefetchScalarGridSpec(
                num_scalar_prefetch=0,
                grid=(b_pad // g,),
                in_specs=in_specs,
                out_specs=out_specs,
            ),
            compiler_params=pltpu.CompilerParams(
                dimension_semantics=("parallel",),
                vmem_limit_bytes=vmem_limit,
            ),
        )
        return fn(xp, adjp, w1p, w2p, b1p, b2p)

    try:
        out = run(single_buffer_consts=True)
    except Exception:
        # pl.Buffered(1) not supported by this jax/Mosaic version: default pipelining.
        out = run(single_buffer_consts=False)

    out = out[:B, :N, :F_out]
    return out[0] if single else out


def _reference(x, adj, w1, b1, w2, b2, *, matmul_dtype=jnp.float32):
    """Pure-JAX reference. With matmul_dtype=bf16 it mirrors the kernel's precision."""
    def mm(a, b):
        return jnp.matmul(a.astype(matmul_dtype), b.astype(matmul_dtype),
                          preferred_element_type=jnp.float32)
    b1 = jnp.reshape(b1, (1, -1))
    b2 = jnp.reshape(b2, (1, -1))
    h = jnp.maximum(mm(adj, mm(x, w1)) + b1, 0.0)
    return mm(adj, mm(h, w2)) + b2


def _make_graphs(key, B, N, in_f):
    k_x, k_adj = jax.random.split(key)
    x = jax.random.normal(k_x, (B, N, in_f), dtype=jnp.float32)
    a = (jax.random.uniform(k_adj, (B, N, N)) > 0.5).astype(jnp.float32)
    a = jnp.maximum(a, jnp.swapaxes(a, -1, -2)) + jnp.eye(N, dtype=jnp.float32)
    d_inv_sqrt = 1.0 / jnp.sqrt(jnp.sum(a, axis=-1))
    adj = a * d_inv_sqrt[..., :, None] * d_inv_sqrt[..., None, :]
    return x, adj


def _make_params(key, in_f, hid_f, out_f):
    k_w1, k_b1, k_w2, k_b2 = jax.random.split(key, 4)
    s1 = 1.0 / jnp.sqrt(jnp.float32(hid_f))
    s2 = 1.0 / jnp.sqrt(jnp.float32(out_f))
    w1 = jax.random.uniform(k_w1, (in_f, hid_f), minval=-s1, maxval=s1, dtype=jnp.float32)
    b1 = jax.random.uniform(k_b1, (1, hid_f), minval=-s1, maxval=s1, dtype=jnp.float32)
    w2 = jax.random.uniform(k_w2, (hid_f, out_f), minval=-s2, maxval=s2, dtype=jnp.float32)
    b2 = jax.random.uniform(k_b2, (1, out_f), minval=-s2, maxval=s2, dtype=jnp.float32)
    return w1, b1, w2, b2


if __name__ == "__main__":
    key = jax.random.PRNGKey(0)
    k_g, k_p = jax.random.split(key)

    # ---- Test 1: module defaults (in_features = out_features = 17), batched graphs ----
    B, N, IN_F, OUT_F = 64, 8, 17, 17
    x, adj = _make_graphs(k_g, B, N, IN_F)
    w1, b1, w2, b2 = _make_params(k_p, IN_F, OUT_F, OUT_F)

    out = graph_encoder(x, adj, w1, b1, w2, b2)
    out = jax.block_until_ready(out)
    assert out.shape == (B, N, OUT_F)

    ref_bf16 = _reference(x, adj, w1, b1, w2, b2, matmul_dtype=jnp.bfloat16)
    assert jnp.allclose(out, ref_bf16, atol=2e-4, rtol=2e-4)
    ref_f32 = _reference(x, adj, w1, b1, w2, b2, matmul_dtype=jnp.float32)
    assert jnp.allclose(out, ref_f32, atol=5e-2, rtol=5e-2)

    # Single-graph path (matches the original module's forward signature).
    out1 = graph_encoder(x[0], adj[0], w1, b1, w2, b2)
    out1 = jax.block_until_ready(out1)
    assert out1.shape == (N, OUT_F)
    assert jnp.allclose(out1, out[0], atol=1e-4, rtol=1e-4)

    # ---- Test 2: hidden != out_features, odd N and B (exercises per-layer padding) ----
    B2, N2, IN2, HID2, OUT2 = 5, 5, 17, 33, 9
    key2 = jax.random.PRNGKey(1)
    k_g2, k_p2 = jax.random.split(key2)
    x2, adj2 = _make_graphs(k_g2, B2, N2, IN2)
    w1b, b1b, w2b, b2b = _make_params(k_p2, IN2, HID2, OUT2)

    out2 = graph_encoder(x2, adj2, w1b, b1b, w2b, b2b)
    out2 = jax.block_until_ready(out2)
    assert out2.shape == (B2, N2, OUT2)
    ref2_bf16 = _reference(x2, adj2, w1b, b1b, w2b, b2b, matmul_dtype=jnp.bfloat16)
    assert jnp.allclose(out2, ref2_bf16, atol=2e-4, rtol=2e-4)
    ref2_f32 = _reference(x2, adj2, w1b, b1b, w2b, b2b, matmul_dtype=jnp.float32)
    assert jnp.allclose(out2, ref2_f32, atol=5e-2, rtol=5e-2)

    print("KERNEL_OK")
</pallas_src>

<mosaic_0001>
module attributes {stable_mosaic.version = 11 : i64} {
  func.func @_graph_encoder_kernel(%arg0: i32, %arg1: memref<32x8x128xbf16, #tpu.memory_space<vmem>>, %arg2: memref<32x8x8xbf16, #tpu.memory_space<vmem>>, %arg3: memref<128x128xbf16, #tpu.memory_space<vmem>>, %arg4: memref<128x128xbf16, #tpu.memory_space<vmem>>, %arg5: memref<1x128xf32, #tpu.memory_space<vmem>>, %arg6: memref<1x128xf32, #tpu.memory_space<vmem>>, %arg7: memref<32x8x128xf32, #tpu.memory_space<vmem>>) attributes {dimension_semantics = [#tpu.dimension_semantics<parallel>], iteration_bounds = array<i64: 2>, scalar_prefetch = 0 : i64, scratch_operands = 0 : i64, tpu.core_type = #tpu.core_type<tc>, window_params = [{transform_indices = @transform_0, window_bounds = array<i64: 32, 8, 128>}, {transform_indices = @transform_1, window_bounds = array<i64: 32, 8, 8>}, {pipeline_mode = #tpu.pipeline_mode<synchronous>, transform_indices = @transform_2, window_bounds = array<i64: 128, 128>}, {pipeline_mode = #tpu.pipeline_mode<synchronous>, transform_indices = @transform_3, window_bounds = array<i64: 128, 128>}, {pipeline_mode = #tpu.pipeline_mode<synchronous>, transform_indices = @transform_4, window_bounds = array<i64: 1, 128>}, {pipeline_mode = #tpu.pipeline_mode<synchronous>, transform_indices = @transform_5, window_bounds = array<i64: 1, 128>}, {transform_indices = @transform_6, window_bounds = array<i64: 32, 8, 128>}]} {
    %c0 = arith.constant 0 : index
    %c0_0 = arith.constant 0 : index
    %c0_1 = arith.constant 0 : index
    %0 = vector.load %arg1[%c0, %c0_0, %c0_1] : memref<32x8x128xbf16, #tpu.memory_space<vmem>>, vector<32x8x128xbf16>
    %c0_2 = arith.constant 0 : index
    %c0_3 = arith.constant 0 : index
    %c0_4 = arith.constant 0 : index
    %1 = vector.load %arg2[%c0_2, %c0_3, %c0_4] : memref<32x8x8xbf16, #tpu.memory_space<vmem>>, vector<32x8x8xbf16>
    %2 = vector.shape_cast %0 : vector<32x8x128xbf16> to vector<256x128xbf16>
    %c0_5 = arith.constant 0 : index
    %c0_6 = arith.constant 0 : index
    %3 = vector.load %arg3[%c0_5, %c0_6] : memref<128x128xbf16, #tpu.memory_space<vmem>>, vector<128x128xbf16>
    %cst = arith.constant dense<0.000000e+00> : vector<256x128xf32>
    %4 = tpu.matmul %2, %3, %cst {dimension_numbers = #tpu.dot_dimension_numbers<[1], [0], [0], [1], [0, 0, 1, 1], [], []>} : vector<256x128xbf16>, vector<128x128xbf16>, vector<256x128xf32> -> vector<256x128xf32>
    %5 = vector.shape_cast %4 : vector<256x128xf32> to vector<32x8x128xf32>
    %6 = arith.truncf %5 : vector<32x8x128xf32> to vector<32x8x128xbf16>
    "tpu.trace_start"() <{level = 10 : i32, message = "gij,gjf->gif"}> : () -> ()
    %cst_7 = arith.constant dense<0.000000e+00> : vector<32x8x128xf32>
    %7 = tpu.matmul %1, %6, %cst_7 {dimension_numbers = #tpu.dot_dimension_numbers<[2], [1], [1], [2], [0, 0, 0, 1, 1, 2], [0], [0]>} : vector<32x8x8xbf16>, vector<32x8x128xbf16>, vector<32x8x128xf32> -> vector<32x8x128xf32>
    "tpu.trace_stop"() : () -> ()
    %c0_8 = arith.constant 0 : index
    %c0_9 = arith.constant 0 : index
    %8 = vector.load %arg5[%c0_8, %c0_9] : memref<1x128xf32, #tpu.memory_space<vmem>>, vector<1x128xf32>
    %9 = vector.shape_cast %8 : vector<1x128xf32> to vector<1x1x128xf32>
    %10 = vector.broadcast %9 : vector<1x1x128xf32> to vector<32x8x128xf32>
    %11 = arith.addf %7, %10 : vector<32x8x128xf32>
    %cst_10 = arith.constant 0.000000e+00 : f32
    %12 = vector.broadcast %cst_10 : f32 to vector<32x8x128xf32>
    %13 = arith.maximumf %11, %12 : vector<32x8x128xf32>
    %14 = arith.truncf %13 : vector<32x8x128xf32> to vector<32x8x128xbf16>
    %15 = vector.shape_cast %14 : vector<32x8x128xbf16> to vector<256x128xbf16>
    %c0_11 = arith.constant 0 : index
    %c0_12 = arith.constant 0 : index
    %16 = vector.load %arg4[%c0_11, %c0_12] : memref<128x128xbf16, #tpu.memory_space<vmem>>, vector<128x128xbf16>
    %cst_13 = arith.constant dense<0.000000e+00> : vector<256x128xf32>
    %17 = tpu.matmul %15, %16, %cst_13 {dimension_numbers = #tpu.dot_dimension_numbers<[1], [0], [0], [1], [0, 0, 1, 1], [], []>} : vector<256x128xbf16>, vector<128x128xbf16>, vector<256x128xf32> -> vector<256x128xf32>
    %18 = vector.shape_cast %17 : vector<256x128xf32> to vector<32x8x128xf32>
    %19 = arith.truncf %18 : vector<32x8x128xf32> to vector<32x8x128xbf16>
    "tpu.trace_start"() <{level = 10 : i32, message = "gij,gjf->gif"}> : () -> ()
    %cst_14 = arith.constant dense<0.000000e+00> : vector<32x8x128xf32>
    %20 = tpu.matmul %1, %19, %cst_14 {dimension_numbers = #tpu.dot_dimension_numbers<[2], [1], [1], [2], [0, 0, 0, 1, 1, 2], [0], [0]>} : vector<32x8x8xbf16>, vector<32x8x128xbf16>, vector<32x8x128xf32> -> vector<32x8x128xf32>
    "tpu.trace_stop"() : () -> ()
    %c0_15 = arith.constant 0 : index
    %c0_16 = arith.constant 0 : index
    %21 = vector.load %arg6[%c0_15, %c0_16] : memref<1x128xf32, #tpu.memory_space<vmem>>, vector<1x128xf32>
    %22 = vector.shape_cast %21 : vector<1x128xf32> to vector<1x1x128xf32>
    %23 = vector.broadcast %22 : vector<1x1x128xf32> to vector<32x8x128xf32>
    %24 = arith.addf %20, %23 : vector<32x8x128xf32>
    %c0_17 = arith.constant 0 : index
    %c0_18 = arith.constant 0 : index
    %c0_19 = arith.constant 0 : index
    %25 = vector.load %arg7[%c0_17, %c0_18, %c0_19] : memref<32x8x128xf32, #tpu.memory_space<vmem>>, vector<32x8x128xf32>
    tpu.vector_store %arg7[%c0_17, %c0_18, %c0_19], %24 {strides = array<i32>} : memref<32x8x128xf32, #tpu.memory_space<vmem>>, vector<32x8x128xf32>,
    return
  }
  func.func @transform_0(%arg0: i32) -> (i32, i32, i32) {
    %c0_i32 = arith.constant 0 : i32
    %c0_i32_0 = arith.constant 0 : i32
    %c0_i32_1 = arith.constant 0 : i32
    return %arg0, %c0_i32, %c0_i32_0 : i32, i32, i32
  }
  func.func @transform_1(%arg0: i32) -> (i32, i32, i32) {
    %c0_i32 = arith.constant 0 : i32
    %c0_i32_0 = arith.constant 0 : i32
    %c0_i32_1 = arith.constant 0 : i32
    return %arg0, %c0_i32, %c0_i32_0 : i32, i32, i32
  }
  func.func @transform_2(%arg0: i32) -> (i32, i32) {
    %c0_i32 = arith.constant 0 : i32
    %c0_i32_0 = arith.constant 0 : i32
    %c0_i32_1 = arith.constant 0 : i32
    return %c0_i32, %c0_i32_0 : i32, i32
  }
  func.func @transform_3(%arg0: i32) -> (i32, i32) {
    %c0_i32 = arith.constant 0 : i32
    %c0_i32_0 = arith.constant 0 : i32
    %c0_i32_1 = arith.constant 0 : i32
    return %c0_i32, %c0_i32_0 : i32, i32
  }
  func.func @transform_4(%arg0: i32) -> (i32, i32) {
    %c0_i32 = arith.constant 0 : i32
    %c0_i32_0 = arith.constant 0 : i32
    %c0_i32_1 = arith.constant 0 : i32
    return %c0_i32, %c0_i32_0 : i32, i32
  }
  func.func @transform_5(%arg0: i32) -> (i32, i32) {
    %c0_i32 = arith.constant 0 : i32
    %c0_i32_0 = arith.constant 0 : i32
    %c0_i32_1 = arith.constant 0 : i32
    return %c0_i32, %c0_i32_0 : i32, i32
  }
  func.func @transform_6(%arg0: i32) -> (i32, i32, i32) {
    %c0_i32 = arith.constant 0 : i32
    %c0_i32_0 = arith.constant 0 : i32
    %c0_i32_1 = arith.constant 0 : i32
    return %arg0, %c0_i32, %c0_i32_0 : i32, i32, i32
  }
}

module attributes {stable_mosaic.version = 11 : i64} {
  func.func @_graph_encoder_kernel(%arg0: i32, %arg1: memref<32x8x128xbf16, #tpu.memory_space<vmem>>, %arg2: memref<32x8x8xbf16, #tpu.memory_space<vmem>>, %arg3: memref<128x128xbf16, #tpu.memory_space<vmem>>, %arg4: memref<128x128xbf16, #tpu.memory_space<vmem>>, %arg5: memref<1x128xf32, #tpu.memory_space<vmem>>, %arg6: memref<1x128xf32, #tpu.memory_space<vmem>>, %arg7: memref<32x8x128xf32, #tpu.memory_space<vmem>>) attributes {dimension_semantics = [#tpu.dimension_semantics<parallel>], iteration_bounds = array<i64: 2>, scalar_prefetch = 0 : i64, scratch_operands = 0 : i64, tpu.core_type = #tpu.core_type<tc>, window_params = [{transform_indices = @transform_0, window_bounds = array<i64: 32, 8, 128>}, {transform_indices = @transform_1, window_bounds = array<i64: 32, 8, 8>}, {pipeline_mode = #tpu.pipeline_mode<synchronous>, transform_indices = @transform_2, window_bounds = array<i64: 128, 128>}, {pipeline_mode = #tpu.pipeline_mode<synchronous>, transform_indices = @transform_3, window_bounds = array<i64: 128, 128>}, {pipeline_mode = #tpu.pipeline_mode<synchronous>, transform_indices = @transform_4, window_bounds = array<i64: 1, 128>}, {pipeline_mode = #tpu.pipeline_mode<synchronous>, transform_indices = @transform_5, window_bounds = array<i64: 1, 128>}, {transform_indices = @transform_6, window_bounds = array<i64: 32, 8, 128>}]} {
    %c0 = arith.constant 0 : index
    %c0_0 = arith.constant 0 : index
    %c0_1 = arith.constant 0 : index
    %0 = vector.load %arg1[%c0, %c0_0, %c0_1] : memref<32x8x128xbf16, #tpu.memory_space<vmem>>, vector<32x8x128xbf16>
    %c0_2 = arith.constant 0 : index
    %c0_3 = arith.constant 0 : index
    %c0_4 = arith.constant 0 : index
    %1 = vector.load %arg2[%c0_2, %c0_3, %c0_4] : memref<32x8x8xbf16, #tpu.memory_space<vmem>>, vector<32x8x8xbf16>
    %2 = vector.shape_cast %0 : vector<32x8x128xbf16> to vector<256x128xbf16>
    %c0_5 = arith.constant 0 : index
    %c0_6 = arith.constant 0 : index
    %3 = vector.load %arg3[%c0_5, %c0_6] : memref<128x128xbf16, #tpu.memory_space<vmem>>, vector<128x128xbf16>
    %cst = arith.constant dense<0.000000e+00> : vector<256x128xf32>
    %4 = tpu.matmul %2, %3, %cst {dimension_numbers = #tpu.dot_dimension_numbers<[1], [0], [0], [1], [0, 0, 1, 1], [], []>} : vector<256x128xbf16>, vector<128x128xbf16>, vector<256x128xf32> -> vector<256x128xf32>
    %5 = vector.shape_cast %4 : vector<256x128xf32> to vector<32x8x128xf32>
    %6 = arith.truncf %5 : vector<32x8x128xf32> to vector<32x8x128xbf16>
    "tpu.trace_start"() <{level = 10 : i32, message = "gij,gjf->gif"}> : () -> ()
    %cst_7 = arith.constant dense<0.000000e+00> : vector<32x8x128xf32>
    %7 = tpu.matmul %1, %6, %cst_7 {dimension_numbers = #tpu.dot_dimension_numbers<[2], [1], [1], [2], [0, 0, 0, 1, 1, 2], [0], [0]>} : vector<32x8x8xbf16>, vector<32x8x128xbf16>, vector<32x8x128xf32> -> vector<32x8x128xf32>
    "tpu.trace_stop"() : () -> ()
    %c0_8 = arith.constant 0 : index
    %c0_9 = arith.constant 0 : index
    %8 = vector.load %arg5[%c0_8, %c0_9] : memref<1x128xf32, #tpu.memory_space<vmem>>, vector<1x128xf32>
    %9 = vector.shape_cast %8 : vector<1x128xf32> to vector<1x1x128xf32>
    %10 = vector.broadcast %9 : vector<1x1x128xf32> to vector<32x8x128xf32>
    %11 = arith.addf %7, %10 : vector<32x8x128xf32>
    %cst_10 = arith.constant 0.000000e+00 : f32
    %12 = vector.broadcast %cst_10 : f32 to vector<32x8x128xf32>
    %13 = arith.maximumf %11, %12 : vector<32x8x128xf32>
    %14 = arith.truncf %13 : vector<32x8x128xf32> to vector<32x8x128xbf16>
    %15 = vector.shape_cast %14 : vector<32x8x128xbf16> to vector<256x128xbf16>
    %c0_11 = arith.constant 0 : index
    %c0_12 = arith.constant 0 : index
    %16 = vector.load %arg4[%c0_11, %c0_12] : memref<128x128xbf16, #tpu.memory_space<vmem>>, vector<128x128xbf16>
    %cst_13 = arith.constant dense<0.000000e+00> : vector<256x128xf32>
    %17 = tpu.matmul %15, %16, %cst_13 {dimension_numbers = #tpu.dot_dimension_numbers<[1], [0], [0], [1], [0, 0, 1, 1], [], []>} : vector<256x128xbf16>, vector<128x128xbf16>, vector<256x128xf32> -> vector<256x128xf32>
    %18 = vector.shape_cast %17 : vector<256x128xf32> to vector<32x8x128xf32>
    %19 = arith.truncf %18 : vector<32x8x128xf32> to vector<32x8x128xbf16>
    "tpu.trace_start"() <{level = 10 : i32, message = "gij,gjf->gif"}> : () -> ()
    %cst_14 = arith.constant dense<0.000000e+00> : vector<32x8x128xf32>
    %20 = tpu.matmul %1, %19, %cst_14 {dimension_numbers = #tpu.dot_dimension_numbers<[2], [1], [1], [2], [0, 0, 0, 1, 1, 2], [0], [0]>} : vector<32x8x8xbf16>, vector<32x8x128xbf16>, vector<32x8x128xf32> -> vector<32x8x128xf32>
    "tpu.trace_stop"() : () -> ()
    %c0_15 = arith.constant 0 : index
    %c0_16 = arith.constant 0 : index
    %21 = vector.load %arg6[%c0_15, %c0_16] : memref<1x128xf32, #tpu.memory_space<vmem>>, vector<1x128xf32>
    %22 = vector.shape_cast %21 : vector<1x128xf32> to vector<1x1x128xf32>
    %23 = vector.broadcast %22 : vector<1x1x128xf32> to vector<32x8x128xf32>
    %24 = arith.addf %20, %23 : vector<32x8x128xf32>
    %c0_17 = arith.constant 0 : index
    %c0_18 = arith.constant 0 : index
    %c0_19 = arith.constant 0 : index
    %25 = vector.load %arg7[%c0_17, %c0_18, %c0_19] : memref<32x8x128xf32, #tpu.memory_space<vmem>>, vector<32x8x128xf32>
    tpu.vector_store %arg7[%c0_17, %c0_18, %c0_19], %24 {strides = array<i32>} : memref<32x8x128xf32, #tpu.memory_space<vmem>>, vector<32x8x128xf32>,
    return
  }
  func.func @transform_0(%arg0: i32) -> (i32, i32, i32) {
    %c0_i32 = arith.constant 0 : i32
    %c0_i32_0 = arith.constant 0 : i32
    %c0_i32_1 = arith.constant 0 : i32
    return %arg0, %c0_i32, %c0_i32_0 : i32, i32, i32
  }
  func.func @transform_1(%arg0: i32) -> (i32, i32, i32) {
    %c0_i32 = arith.constant 0 : i32
    %c0_i32_0 = arith.constant 0 : i32
    %c0_i32_1 = arith.constant 0 : i32
    return %arg0, %c0_i32, %c0_i32_0 : i32, i32, i32
  }
  func.func @transform_2(%arg0: i32) -> (i32, i32) {
    %c0_i32 = arith.constant 0 : i32
    %c0_i32_0 = arith.constant 0 : i32
    %c0_i32_1 = arith.constant 0 : i32
    return %c0_i32, %c0_i32_0 : i32, i32
  }
  func.func @transform_3(%arg0: i32) -> (i32, i32) {
    %c0_i32 = arith.constant 0 : i32
    %c0_i32_0 = arith.constant 0 : i32
    %c0_i32_1 = arith.constant 0 : i32
    return %c0_i32, %c0_i32_0 : i32, i32
  }
  func.func @transform_4(%arg0: i32) -> (i32, i32) {
    %c0_i32 = arith.constant 0 : i32
    %c0_i32_0 = arith.constant 0 : i32
    %c0_i32_1 = arith.constant 0 : i32
    return %c0_i32, %c0_i32_0 : i32, i32
  }
  func.func @transform_5(%arg0: i32) -> (i32, i32) {
    %c0_i32 = arith.constant 0 : i32
    %c0_i32_0 = arith.constant 0 : i32
    %c0_i32_1 = arith.constant 0 : i32
    return %c0_i32, %c0_i32_0 : i32, i32
  }
  func.func @transform_6(%arg0: i32) -> (i32, i32, i32) {
    %c0_i32 = arith.constant 0 : i32
    %c0_i32_0 = arith.constant 0 : i32
    %c0_i32_1 = arith.constant 0 : i32
    return %arg0, %c0_i32, %c0_i32_0 : i32, i32, i32
  }
}

</mosaic_0001>

<bundles_post_ra>
// kernel: tpu_custom_call.1
= control target key start
LH: loop header
LB: loop body
LE: loop exit
PB: predicated region body
PF: predicated region fallthrough
CT: control target
= control target key end

     0   :  { %11 = vsyncpa [#allocation3], 0  ;;  %s6046_s0 = inlined_call_operand.vmem [shape: bf16[64,8,128], index: 0, kind: input, shape index: {}]   ;;  %s6047_s1 = inlined_call_operand.vmem [shape: bf16[64,8,8], index: 1, kind: input, shape index: {}]   ;;  %s6048_s2 = inlined_call_operand.hbm [shape: bf16[128,128], index: 2, kind: input, shape index: {}]   ;;  %s6049_s3 = inlined_call_operand.hbm [shape: bf16[128,128], index: 3, kind: input, shape index: {}]   ;;  %s6050_s4 = inlined_call_operand.vmem [shape: f32[1,128], index: 4, kind: input, shape index: {}]   ;;  %s6051_s5 = inlined_call_operand.vmem [shape: f32[1,128], index: 5, kind: input, shape index: {}]   ;;  %s6052_s6 = inlined_call_operand.hbm [shape: f32[64,8,128], index: 6, kind: output, shape index: {}]  }
   0x1   :  { %12 = vsyncpa [#allocation6], 0 }
   0x2   :  { %13 = vsyncpa [#allocation4], 0 }
   0x3   :  { %15 = vsyncpa [#allocation4 + $0x1], 0  ;;  %s5225_s21 = smov 0   ;;  %s5227_s22 = smov 0  }
   0x4   :  { %s5229_s23 = smov 0   ;;  %s5231_s24 = smov 0  }
   0x5 LB: > { %s5246_s25 = sadd.s32 4294967295, %s5179_s24   ;;  %s4146_s26 = sadd.s32 4294967294, %s5179_s24   ;;  %s5179_s24 = sphi %s5231_s24, %s6066_s24   ;;  %s5175_s23 = sphi %s5229_s23, %s6065_s23   ;;  %s5171_s22 = sphi %s5227_s22, %s6064_s22   ;;  %s5167_s21 = sphi %s5225_s21, %s6063_s21  }
   0x6   : > { %s5250_s27 = sadd.s32 1, %s5179_s24   ;;  %s164_s28 = sadd.s32 1, %s5175_s23 }
   0x7   : > { %s161_s29 = ssub.s32 %s5179_s24, %s5250_s27  ;;  %p174_p0 = scmp.ne.s32.totalorder %s5175_s23, %s5171_s22 }
   0x8   : > { %p162_p1 = scmp.eq.s32.totalorder %s161_s29, 0  ;;  %p175_p2 = scmp.eq.s32.totalorder %s5246_s25, 1 }
   0x9   : > { %p180_p3 = scmp.ne.s32.totalorder %s5171_s22, %s5167_s21  ;;  %p181_p4 = scmp.eq.s32.totalorder %s4146_s26, 1 }
   0xa   : > { %s5261_s30 = scalar_select %p162_p1, %s5175_s23, %s164_s28  }
   0xb   : > { %p5263_p5 = por %p175_p2, %p174_p0  ;;  %p5267_p6 = por %p181_p4, %p180_p3 }
   0xc   : > { %p4147_p7 = scmp.ge.s32.totalorder %s5179_s24, 1  ;;  %p188_p8 = scmp.lt.s32.totalorder %s5179_s24, 3 }
   0xd   : > { %s6055_s8 = scalar_select %p5267_p6, 1, 0 }
   0xe   : > { %p6053_p9 = scmp.eq.s32.totalorder %s5246_s25, 0  ;;  %p5274_p10 = pnand %p4147_p7, %p188_p8 }
   0xf   : > { %s5181_s10 = smov [#allocation2]   ;;  %s5182_s13 = smov [#allocation5]  }
  0x10   : > { %s200_s11 = sshll.u32 %s5181_s10, 4  ;;  %p4961_p11 = pneg %p5274_p10  ;;  %s201_s11 = int_to_ptr.vmem [resolvable:$true] %s200_s11 }
  0x11   : > { %s213_s14 = sshll.u32 %s5182_s13, 4  ;;  %s5070_s15 = scalar_lea.vmem %s201_s11, 1024  ;;  %s214_s14 = int_to_ptr.vmem [resolvable:$true] %s213_s14 }
  0x12   : > { %p5282_p12 = pnand %p6053_p9, %p4961_p11  ;;  %p5071_p0 = scmp.ne.s32.totalorder %s201_s11, %s5070_s15 }
  0x13   : > { %p5078_p3 = scmp.lt.s32.totalorder %s201_s11, %s201_s11  ;;  %p5079_p4 = scmp.lt.s32.totalorder %s5070_s15, %s5070_s15 }
  0x14   : > { %p5061_p13 = pneg %p5282_p12 }
  0x15   : > { %p5080_p7 = por %p5079_p4, %p5078_p3 }
  0x16   : > { %p5073_p1 = pnand %p5071_p0, %p5061_p13 }
  0x18   : > { %p5074_p2 = pneg %p5073_p1 }
  0x1a   : > { %p5081_p8 = pnand %p5080_p7, %p5074_p2 }
  0x1c   : > { %5084 = shalt.err (!%p5081_p8)
}
  0x1d   : > { %s5183_s16 = smov 64   ;;  %s5184_s17 = smov 4  }
  0x1e   : > { %4964 = dma.hbm_to_vmem [thread:$0]  (!%p5282_p12), %s6048_s2, 1024, %s201_s11, [#allocation3], %s5183_s16, %s5183_s16, %s5184_s17  }
  0x1f   : > { %s5096_s20 = scalar_lea.vmem %s214_s14, 1024  ;;  %p5104_p9 = scmp.lt.s32.totalorder %s214_s14, %s214_s14 }
  0x20   : > { %p5097_p11 = scmp.ne.s32.totalorder %s214_s14, %s5096_s20  ;;  %p5105_p6 = scmp.lt.s32.totalorder %s5096_s20, %s5096_s20 }
  0x22   : > { %p5099_p0 = pnand %p5097_p11, %p5061_p13  ;;  %p5106_p3 = por %p5105_p6, %p5104_p9 }
  0x24   : > { %p5100_p1 = pneg %p5099_p0 }
  0x26   : > { %p5107_p2 = pnand %p5106_p3, %p5100_p1 }
  0x28   : > { %5110 = shalt.err (!%p5107_p2)
}
  0x29   : > { %4967 = dma.hbm_to_vmem [thread:$0]  (!%p5282_p12), %s6049_s3, 1024, %s214_s14, [#allocation6], %s5183_s16, %s5183_s16, %s5184_s17  }
  0x2a   : > { %253 = sbr.rel (%p5274_p10) target bundleno = 1079 (0x437), region = 44  ;;  %p6058_p4 = scmp.eq.s32.totalorder (!%p5274_p10), %s5246_s25, 0 }
  0x2f   : > { %5154 = dma.done.wait (%p6058_p4), [#allocation3], 1024   ;;  %p6059_p13 = pmov %p6058_p4 }
  0x30   : > { %p6060_p7 = pmov %p6058_p4 }
  0x31   : > { %5156 = vsyncadd (%p6059_p13), [#allocation3], 4294966272 }
  0x32   : > { %5158 = dma.done.wait (%p6060_p7), [#allocation6], 1024   ;;  %p6061_p6 = pmov %p6058_p4 }
  0x33   : > { %s4155_s29 = sshll.u32 %s5246_s25, 5  ;;  %v5017_v0 = vld [vmem:[#allocation2 + $0x38] sm:$0xff]   ;;  %v5018_v1 = vld [vmem:[#allocation2 + $0x30] sm:$0xff]   ;;  %v5019_v2 = vld [vmem:[#allocation2 + $0x28] sm:$0xff]   ;;  %v5185_v24 = vmov 0.0   ;;  %vm5186_vm0 = vmmov 0  }
  0x34   : > { %5160 = vsyncadd (%p6061_p6), [#allocation6], 4294966272  ;;  %p293_p9 = scmp.lt.s32.totalorder %s4155_s29, 63  ;;  %4471 = vmatprep.subr.bf16.mxu0 %v5017_v0  ;;  %v5020_v3 = vld [vmem:[#allocation2 + $0x20] sm:$0xff]   ;;  %v5021_v5 = vld [vmem:[#allocation2 + $0x18] sm:$0xff]   ;;  %4519 = vmatprep.subr.bf16.mxu1 %v5185_v24  ;;  %vm734_vm1 = vcmask 1043456  }
  0x35   : > { %4472 = vmatpush3.bf16.msra.mxu0 %v5017_v0  ;;  %v5022_v6 = vld [vmem:[#allocation2 + $0x10] sm:$0xff]   ;;  %v5023_v7 = vld [vmem:[#allocation2 + $0x8] sm:$0xff]   ;;  %v5024_v8 = vld [vmem:[#allocation2] sm:$0xff]   ;;  %4521 = vmatprep.mubr.msk.bf16.mxu1 %vm5186_vm0, %v5185_v24  ;;  %vm730_vm2 = vcmask 64512   ;;  %s289_s18 = sand.u32 1, %s5171_s22   ;;  %s5187_s14 = smov [#allocation7]  }
  0x36   : > { %s6068_s29 = smov (!%p293_p9, %s4155_s29), 63  ;;  %4473 = vmatprep.subr.bf16.mxu0 %v5018_v1  ;;  %s4154_s19 = sshll.u32 %s289_s18, 8 }
  0x37   : > { %s4156_s9 = sshll.u32 %s6068_s29, 2  ;;  %s5930_s28 = scalar_lea.vmem [#allocation7], %s4154_s19 }
  0x38   : > { %s5323_s12 = scalar_lea.vmem %s6046_s0, %s4156_s9  ;;  %s5352_s15 = scalar_lea.vmem %s6047_s1, %s4156_s9 }
  0x39   : > { %4474 = vmatpush3.bf16.msra.mxu0 %v5018_v1  ;;  %v5025_v4 = vld [vmem:[%s5323_s12] sm:$0xff]   ;;  %v5026_v9 = vld [vmem:[%s5323_s12 + $0x8] sm:$0xff]   ;;  %v5027_v10 = vld [vmem:[%s5323_s12 + $0x10] sm:$0xff]   ;;  %s4294_s29 = sshll.u32 %s5246_s25, 12  ;;  %s4050_s9 = sshll.u32 %s5930_s28, 4  ;;  %s6000_s9 = int_to_ptr.vmem [resolvable:$true] %s4050_s9 }
  0x3a   : > { %4475 = vmatprep.subr.bf16.mxu0 %v5019_v2  ;;  %4487 = vmatprep.mubr.bf16.mxu0 %v5025_v4  ;;  %v5028_v11 = vld [vmem:[%s5323_s12 + $0x18] sm:$0xff]   ;;  %v5029_v12 = vld [vmem:[%s5323_s12 + $0x20] sm:$0xff]   ;;  %v5030_v13 = vld [vmem:[%s5323_s12 + $0x28] sm:$0xff]   ;;  %s6006_s25 = scalar_lea.sflag [#allocation4], %s289_s18  ;;  %s5111_s13 = scalar_lea.vmem %s6000_s9, 4096 }
  0x3b   : > { %v5031_v14 = vld [vmem:[%s5323_s12 + $0x30] sm:$0xff]   ;;  %v5032_v15 = vld [vmem:[%s5323_s12 + $0x38] sm:$0xff]   ;;  %v5033_v16 = vld [vmem:[%s5323_s12 + $0x40] sm:$0xff]   ;;  %p5112_p10 = scmp.ne.s32.totalorder %s6000_s9, %s5111_s13 }
  0x3c   : > { %v5034_v17 = vld [vmem:[%s5323_s12 + $0x48] sm:$0xff]   ;;  %v5035_v18 = vld [vmem:[%s5323_s12 + $0x50] sm:$0xff]   ;;  %v5036_v19 = vld [vmem:[%s5323_s12 + $0x58] sm:$0xff]  }
  0x3d   : > { %4476 = vmatpush3.bf16.msra.mxu0 %v5019_v2  ;;  %v5037_v20 = vld [vmem:[%s5323_s12 + $0x60] sm:$0xff]   ;;  %v5038_v21 = vld [vmem:[%s5323_s12 + $0x68] sm:$0xff]   ;;  %v5039_v22 = vld [vmem:[%s5323_s12 + $0x70] sm:$0xff]   ;;  %p5113_p12 = pnand %p5112_p10, %p5263_p5 }
  0x3e   : > { %4477 = vmatprep.subr.bf16.mxu0 %v5020_v3  ;;  %v5040_v23 = vld [vmem:[%s5323_s12 + $0x78] sm:$0xff]   ;;  %v5356_v31 = vld [vmem:[%s5352_s15] sm:$0xf]  ;;  %v5370_v38 = vld [vmem:[%s5352_s15 + $0x4] sm:$0xf]  ;;  %s5998_s12 = scalar_lea.hbm %s6052_s6, %s4294_s29 }
  0x3f   : > { %v5385_v45 = vld [vmem:[%s5352_s15 + $0x8] sm:$0xf]  ;;  %v5399_v55 = vld [vmem:[%s5352_s15 + $0xc] sm:$0xf]  ;;  %v350_v57 = vld [vmem:[%s5352_s15 + $0x30] sm:$0xf]  ;;  %p5114_p8 = pneg %p5113_p12 }
  0x40   : > { %v5417_v0 = vld [vmem:[%s5352_s15 + $0x10] sm:$0xf]  ;;  %v352_v1 = vld [vmem:[%s5352_s15 + $0x38] sm:$0xf] }
  0x41   : > { %4478 = vmatpush3.bf16.msra.mxu0 %v5020_v3 }
  0x42   : > { %4479 = vmatprep.subr.bf16.mxu0 %v5021_v5 }
  0x45   : > { %4480 = vmatpush3.bf16.msra.mxu0 %v5021_v5 }
  0x46   : > { %4481 = vmatprep.subr.bf16.mxu0 %v5022_v6 }
  0x49   : > { %4482 = vmatpush3.bf16.msra.mxu0 %v5022_v6 }
  0x4a   : > { %4483 = vmatprep.subr.bf16.mxu0 %v5023_v7 }
  0x4d   : > { %4484 = vmatpush3.bf16.msra.mxu0 %v5023_v7 }
  0x4e   : > { %4485 = vmatprep.subr.bf16.mxu0 %v5024_v8 }
  0x51   : > { %4486 = vmatpush3.bf16.msra.mxu0 %v5024_v8 }
  0x52   : > { %4591 = vmatprep.subr.bf16.mxu0 %v5185_v24 }
  0x54   : > { %4488 = vmatmul.mubr.bf16.vlgmr.msra.gmra.mxu0 %v5026_v9  ;;  %v5438_v9 = vld [vmem:[%s5352_s15 + $0x14] sm:$0xf] }
  0x55   : > { %4491 = vmatprep.mubr.bf16.mxu0 %v5027_v10  ;;  %v354_v10 = vld [vmem:[%s5352_s15 + $0x40] sm:$0xf] }
  0x5c   : > { %4492 = vmatmul.mubr.bf16.gmra.mxu0 %v5028_v11 }
  0x5d   : > { %4495 = vmatprep.mubr.bf16.mxu0 %v5029_v12 }
  0x64   : > { %4496 = vmatmul.mubr.bf16.gmra.mxu0 %v5030_v13 }
  0x65   : > { %4499 = vmatprep.mubr.bf16.mxu0 %v5031_v14 }
  0x6c   : > { %4500 = vmatmul.mubr.bf16.gmra.mxu0 %v5032_v15 }
  0x6d   : > { %4503 = vmatprep.mubr.bf16.mxu0 %v5033_v16  ;;  %v5455_v16 = vld [vmem:[%s5352_s15 + $0x18] sm:$0xf] }
  0x74   : > { %4504 = vmatmul.mubr.bf16.gmra.mxu0 %v5034_v17  ;;  %v356_v17 = vld [vmem:[%s5352_s15 + $0x48] sm:$0xf] }
  0x75   : > { %4507 = vmatprep.mubr.bf16.mxu0 %v5035_v18 }
  0x7c   : > { %4508 = vmatmul.mubr.bf16.gmra.mxu0 %v5036_v19 }
  0x7d   : > { %4511 = vmatprep.mubr.bf16.mxu0 %v5037_v20 }
  0x84   : > { %4512 = vmatmul.mubr.bf16.gmra.mxu0 %v5038_v21 }
  0x85   : > { %4515 = vmatprep.mubr.bf16.mxu0 %v5039_v22 }
  0x8c   : > { %4516 = vmatmul.mubr.bf16.gmra.mxu0 %v5040_v23 }
  0x8d   : > { %4593 = vmatprep.mubr.msk.bf16.mxu0 %vm5186_vm0, %v5185_v24 }
 0x114   : > { %v4489_v25 = vpop.f32.mrf.mxu0 }
 0x115   : > { %v693_v37 = vpack.c.bf16 %v4489_v25, %v4489_v25 }
 0x116   : > { %v564_v26 = vpop.f32.mrf.mxu0 }
 0x117   : > { %v691_v27 = vpack.c.bf16 %v564_v26, %v564_v26  ;;  %v828_v41 = vsel %vm734_vm1, %v693_v37, 0  ;;  %v5476_v26 = vld [vmem:[%s5352_s15 + $0x1c] sm:$0xf] }
 0x118   : > { %v4490_v28 = vpop.f32.mrf.mxu0 }
 0x119   : > { %v736_v29 = vsel %vm734_vm1, %v691_v27, 0  ;;  %v694_v44 = vpack.c.bf16 %v4490_v28, %v4490_v28  ;;  %v358_v27 = vld [vmem:[%s5352_s15 + $0x50] sm:$0xf] }
 0x11a   : > { %v567_v30 = vpop.f32.mrf.mxu0  ;;  %4520 = vmatpush3.bf16.msra.mxu1 %v736_v29 }
 0x11b   : > { %v692_v32 = vpack.c.bf16 %v567_v30, %v567_v30  ;;  %4525 = vmatprep.subr.bf16.mxu1 %v5185_v24  ;;  %v874_v48 = vsel %vm734_vm1, %v694_v44, 0 }
 0x11c   : > { %v5359_v33 = vpop.f32.mrf.mxu0 }
 0x11d   : > { %4522 = vmatmul.mubr.msk.bf16.vlgmr.msra.gmra.mxu1 %vm730_vm2, %v5356_v31  ;;  %v782_v34 = vsel %vm734_vm1, %v692_v32, 0  ;;  %v697_v7 = vpack.c.bf16 %v5359_v33, %v5359_v33 }
 0x11e   : > { %4526 = vmatpush3.bf16.msra.mxu1 %v782_v34  ;;  %4527 = vmatprep.mubr.msk.bf16.mxu1 %vm5186_vm0, %v5185_v24  ;;  %v580_v35 = vpop.f32.mrf.mxu0  ;;  %v5493_v34 = vld [vmem:[%s5352_s15 + $0x20] sm:$0xf] }
 0x11f   : > { %4531 = vmatprep.subr.bf16.mxu1 %v5185_v24  ;;  %v695_v50 = vpack.c.bf16 %v580_v35, %v580_v35  ;;  %v1012_v12 = vsel %vm734_vm1, %v697_v7, 0  ;;  %v360_v35 = vld [vmem:[%s5352_s15 + $0x58] sm:$0xf]  ;;  %v5042_v7 = vld [vmem:[#allocation5 + $0x30] sm:$0xff]  }
 0x120   : > { %v5367_v36 = vpop.f32.mrf.mxu0 }
 0x121   : > { %v920_v58 = vsel %vm734_vm1, %v695_v50, 0  ;;  %v698_v15 = vpack.c.bf16 %v5367_v36, %v5367_v36 }
 0x122   : > { %v583_v39 = vpop.f32.mrf.mxu0 }
 0x123   : > { %v696_v63 = vpack.c.bf16 %v583_v39, %v583_v39  ;;  %v1058_v20 = vsel %vm734_vm1, %v698_v15, 0  ;;  %v5588_v15 = vld [vmem:[%s5352_s15 + $0x44] sm:$0xf] }
 0x124   : > { %v5372_v40 = vpop.f32.mrf.mxu0 }
 0x125   : > { %4528 = vmatmul.mubr.msk.bf16.vlgmr.msra.gmra.mxu1 %vm730_vm2, %v5370_v38  ;;  %v966_v4 = vsel %vm734_vm1, %v696_v63, 0  ;;  %v701_v44 = vpack.c.bf16 %v5372_v40, %v5372_v40 }
 0x126   : > { %4532 = vmatpush3.bf16.msra.mxu1 %v828_v41  ;;  %4533 = vmatprep.mubr.msk.bf16.mxu1 %vm5186_vm0, %v5185_v24  ;;  %v5379_v42 = vpop.f32.mrf.mxu0 }
 0x127   : > { %4537 = vmatprep.subr.bf16.mxu1 %v5185_v24  ;;  %v699_v21 = vpack.c.bf16 %v5379_v42, %v5379_v42  ;;  %v1196_v50 = vsel %vm734_vm1, %v701_v44, 0 }
 0x128   : > { %v5382_v43 = vpop.f32.mrf.mxu0 }
 0x129   : > { %v1104_v28 = vsel %vm734_vm1, %v699_v21, 0  ;;  %v5599_v21 = vld [vmem:[%s5352_s15 + $0x4c] sm:$0xf] }
 0x12a   : > { %v5387_v46 = vpop.f32.mrf.mxu0 }
 0x12b   : > { %v700_v33 = vpack.c.bf16 %v5387_v46, %v5387_v46 }
 0x12c   : > { %v4501_v47 = vpop.f32.mrf.mxu0 }
 0x12d   : > { %4534 = vmatmul.mubr.msk.bf16.vlgmr.msra.gmra.mxu1 %vm730_vm2, %v5385_v45  ;;  %v705_v52 = vpack.c.bf16 %v4501_v47, %v4501_v47  ;;  %v1150_v39 = vsel %vm734_vm1, %v700_v33, 0  ;;  %v5514_v47 = vld [vmem:[%s5352_s15 + $0x24] sm:$0xf] }
 0x12e   : > { %4538 = vmatpush3.bf16.msra.mxu1 %v874_v48  ;;  %4539 = vmatprep.mubr.msk.bf16.mxu1 %vm5186_vm0, %v5185_v24  ;;  %v612_v49 = vpop.f32.mrf.mxu0  ;;  %v362_v48 = vld [vmem:[%s5352_s15 + $0x60] sm:$0xf] }
 0x12f   : > { %4543 = vmatprep.subr.bf16.mxu1 %v5185_v24  ;;  %v703_v51 = vpack.c.bf16 %v612_v49, %v612_v49  ;;  %v1380_v59 = vsel %vm734_vm1, %v705_v52, 0  ;;  %v702_v52 = vpack.c.bf16 %v5382_v43, %v5382_v43 }
 0x130   : > { %v5395_v53 = vpop.f32.mrf.mxu0 }
 0x131   : > { %v1288_v54 = vsel %vm734_vm1, %v703_v51, 0 }
 0x132   : > { %v5401_v56 = vpop.f32.mrf.mxu0  ;;  %4592 = vmatpush3.bf16.msra.mxu0 %v1288_v54  ;;  %v5531_v54 = vld [vmem:[%s5352_s15 + $0x28] sm:$0xf] }
 0x133   : > { %4603 = vmatprep.subr.bf16.mxu0 %v5185_v24  ;;  %v704_v43 = vpack.c.bf16 %v5401_v56, %v5401_v56  ;;  %v706_v56 = vpack.c.bf16 %v5395_v53, %v5395_v53  ;;  %v5043_v53 = vld [vmem:[#allocation5 + $0x28] sm:$0xff]  }
 0x134   : > { %v4505_v60 = vpop.f32.mrf.mxu0 }
 0x135   : > { %4540 = vmatmul.mubr.msk.bf16.vlgmr.msra.gmra.mxu1 %vm730_vm2, %v5399_v55  ;;  %4594 = vmatmul.mubr.msk.bf16.vlgmr.msra.gmra.mxu0 %vm730_vm2, %v350_v57  ;;  %v709_v6 = vpack.c.bf16 %v4505_v60, %v4505_v60  ;;  %v364_v57 = vld [vmem:[%s5352_s15 + $0x68] sm:$0xf]  ;;  %v1334_v63 = vsel %vm734_vm1, %v704_v43, 0 }
 0x136   : > { %4544 = vmatpush3.bf16.msra.mxu1 %v920_v58  ;;  %4545 = vmatprep.mubr.msk.bf16.mxu1 %vm5186_vm0, %v5185_v24  ;;  %v628_v61 = vpop.f32.mrf.mxu0 }
 0x137   : > { %4549 = vmatprep.subr.bf16.mxu1 %v5185_v24  ;;  %4604 = vmatpush3.bf16.msra.mxu0 %v1380_v59  ;;  %v707_v62 = vpack.c.bf16 %v628_v61, %v628_v61  ;;  %v1564_v11 = vsel %vm734_vm1, %v709_v6, 0  ;;  %v1242_v59 = vsel %vm734_vm1, %v702_v52, 0  ;;  %v5548_v61 = vld [vmem:[%s5352_s15 + $0x2c] sm:$0xf]  ;;  %v368_v6 = vld [vmem:[%s5352_s15 + $0x78] sm:$0xf] }
 0x138   : > { %4605 = vmatprep.mubr.msk.bf16.mxu0 %vm5186_vm0, %v5185_v24  ;;  %4615 = vmatprep.subr.bf16.mxu0 %v5185_v24  ;;  %v5420_v2 = vpop.f32.mrf.mxu0 }
 0x139   : > { %v1472_v3 = vsel %vm734_vm1, %v707_v62, 0  ;;  %v366_v62 = vld [vmem:[%s5352_s15 + $0x70] sm:$0xf] }
 0x13a   : > { %v5430_v5 = vpop.f32.mrf.mxu0 }
 0x13c   : > { %v4509_v8 = vpop.f32.mrf.mxu0 }
 0x13d   : > { %4546 = vmatmul.mubr.msk.bf16.vlgmr.msra.gmra.mxu1 %vm730_vm2, %v5417_v0  ;;  %4606 = vmatmul.mubr.msk.bf16.vlgmr.msra.gmra.mxu0 %vm730_vm2, %v352_v1  ;;  %v713_v23 = vpack.c.bf16 %v4509_v8, %v4509_v8  ;;  %v1426_v8 = vsel %vm734_vm1, %v706_v56, 0 }
 0x13e   : > { %4550 = vmatpush3.bf16.msra.mxu1 %v966_v4  ;;  %4551 = vmatprep.mubr.msk.bf16.mxu1 %vm5186_vm0, %v5185_v24  ;;  %v644_v13 = vpop.f32.mrf.mxu0  ;;  %v5564_v4 = vld [vmem:[%s5352_s15 + $0x34] sm:$0xf] }
 0x13f   : > { %4555 = vmatprep.subr.bf16.mxu1 %v5185_v24  ;;  %4616 = vmatpush3.bf16.msra.mxu0 %v1472_v3  ;;  %v711_v14 = vpack.c.bf16 %v644_v13, %v644_v13  ;;  %v1748_v29 = vsel %vm734_vm1, %v713_v23, 0  ;;  %v5041_v3 = vld [vmem:[#allocation5 + $0x38] sm:$0xff]   ;;  %v5044_v13 = vld [vmem:[#allocation5 + $0x20] sm:$0xff]  }
 0x140   : > { %4617 = vmatprep.mubr.msk.bf16.mxu0 %vm5186_vm0, %v5185_v24  ;;  %4627 = vmatprep.subr.bf16.mxu0 %v5185_v24  ;;  %v5458_v18 = vpop.f32.mrf.mxu0 }
 0x141   : > { %v1656_v19 = vsel %vm734_vm1, %v711_v14, 0  ;;  %v710_v14 = vpack.c.bf16 %v5420_v2, %v5420_v2  ;;  %v5047_v2 = vld [vmem:[#allocation5 + $0x8] sm:$0xff]  }
 0x142   : > { %v5470_v22 = vpop.f32.mrf.mxu0 }
 0x144   : > { %v4513_v25 = vpop.f32.mrf.mxu0 }
 0x145   : > { %4552 = vmatmul.mubr.msk.bf16.vlgmr.msra.gmra.mxu1 %vm730_vm2, %v5438_v9  ;;  %4618 = vmatmul.mubr.msk.bf16.vlgmr.msra.gmra.mxu0 %vm730_vm2, %v354_v10  ;;  %v717_v42 = vpack.c.bf16 %v4513_v25, %v4513_v25  ;;  %v708_v10 = vpack.c.bf16 %v5430_v5, %v5430_v5  ;;  %v5045_v5 = vld [vmem:[#allocation5 + $0x18] sm:$0xff]   ;;  %v5048_v25 = vld [vmem:[#allocation5] sm:$0xff]  }
 0x146   : > { %4556 = vmatpush3.bf16.msra.mxu1 %v1012_v12  ;;  %4557 = vmatprep.mubr.msk.bf16.mxu1 %vm5186_vm0, %v5185_v24  ;;  %v660_v30 = vpop.f32.mrf.mxu0 }
 0x147   : > { %4561 = vmatprep.subr.bf16.mxu1 %v5185_v24  ;;  %4628 = vmatpush3.bf16.msra.mxu0 %v1564_v11  ;;  %v715_v32 = vpack.c.bf16 %v660_v30, %v660_v30  ;;  %v1932_v49 = vsel %vm734_vm1, %v717_v42, 0  ;;  %v5577_v11 = vld [vmem:[%s5352_s15 + $0x3c] sm:$0xf]  ;;  %v1518_v12 = vsel %vm734_vm1, %v708_v10, 0  ;;  %v5642_v42 = vld [vmem:[%s5352_s15 + $0x6c] sm:$0xf] }
 0x148   : > { %4629 = vmatprep.mubr.msk.bf16.mxu0 %vm5186_vm0, %v5185_v24  ;;  %4639 = vmatprep.subr.bf16.mxu0 %v5185_v24  ;;  %v5496_v36 = vpop.f32.mrf.mxu0 }
 0x149   : > { %v1840_v37 = vsel %vm734_vm1, %v715_v32, 0  ;;  %v718_v33 = vpack.c.bf16 %v5496_v36, %v5496_v36 }
 0x14a   : > { %v5506_v41 = vpop.f32.mrf.mxu0 }
 0x14c   : > { %v4517_v46 = vpop.f32.mrf.mxu0 }
 0x14d   : > { %4558 = vmatmul.mubr.msk.bf16.vlgmr.msra.gmra.mxu1 %vm730_vm2, %v5455_v16  ;;  %4630 = vmatmul.mubr.msk.bf16.vlgmr.msra.gmra.mxu0 %vm730_vm2, %v356_v17  ;;  %v721_v60 = vpack.c.bf16 %v4517_v46, %v4517_v46  ;;  %v5046_v17 = vld [vmem:[#allocation5 + $0x10] sm:$0xff]  }
 0x14e   : > { %4562 = vmatpush3.bf16.msra.mxu1 %v1058_v20  ;;  %4563 = vmatprep.mubr.msk.bf16.mxu1 %vm5186_vm0, %v5185_v24  ;;  %v676_v51 = vpop.f32.mrf.mxu0  ;;  %v712_v20 = vpack.c.bf16 %v5470_v22, %v5470_v22  ;;  %v714_v22 = vpack.c.bf16 %v5458_v18, %v5458_v18  ;;  %v5622_v18 = vld [vmem:[%s5352_s15 + $0x5c] sm:$0xf]  ;;  %v5651_v46 = vld [vmem:[%s5352_s15 + $0x74] sm:$0xf] }
 0x14f   : > { %4567 = vmatprep.subr.bf16.mxu1 %v5185_v24  ;;  %4640 = vmatpush3.bf16.msra.mxu0 %v1656_v19  ;;  %v719_v40 = vpack.c.bf16 %v676_v51, %v676_v51  ;;  %v2116_v1 = vsel %vm734_vm1, %v721_v60, 0  ;;  %v1610_v19 = vsel %vm734_vm1, %v710_v14, 0 }
 0x150   : > { %4641 = vmatprep.mubr.msk.bf16.mxu0 %vm5186_vm0, %v5185_v24  ;;  %4651 = vmatprep.subr.bf16.mxu0 %v5185_v24  ;;  %v1702_v23 = vsel %vm734_vm1, %v712_v20, 0  ;;  %v4518_v32 = vpop.f32.mrf.mxu0 }
 0x151   : > { %v2024_v58 = vsel %vm734_vm1, %v719_v40, 0  ;;  %v722_v44 = vpack.c.bf16 %v4518_v32, %v4518_v32  ;;  %v5669_v40 = vld [vmem:[%s6050_s4] ss:$0 sm:$0xff] }
 0x155   : > { %4564 = vmatmul.mubr.msk.bf16.vlgmr.msra.gmra.mxu1 %vm730_vm2, %v5476_v26  ;;  %4642 = vmatmul.mubr.msk.bf16.vlgmr.msra.gmra.mxu0 %vm730_vm2, %v358_v27  ;;  %v5610_v27 = vld [vmem:[%s5352_s15 + $0x54] sm:$0xf] }
 0x156   : > { %4568 = vmatpush3.bf16.msra.mxu1 %v1104_v28  ;;  %4569 = vmatprep.mubr.msk.bf16.mxu1 %vm5186_vm0, %v5185_v24  ;;  %v1794_v28 = vsel %vm734_vm1, %v714_v22, 0 }
 0x157   : > { %4573 = vmatprep.subr.bf16.mxu1 %v5185_v24  ;;  %4652 = vmatpush3.bf16.msra.mxu0 %v1748_v29  ;;  %v716_v29 = vpack.c.bf16 %v5506_v41, %v5506_v41 }
 0x158   : > { %4653 = vmatprep.mubr.msk.bf16.mxu0 %vm5186_vm0, %v5185_v24  ;;  %4663 = vmatprep.subr.bf16.mxu0 %v5185_v24 }
 0x159   : > { %v1886_v30 = vsel %vm734_vm1, %v716_v29, 0 }
 0x15d   : > { %4570 = vmatmul.mubr.msk.bf16.vlgmr.msra.gmra.mxu1 %vm730_vm2, %v5493_v34  ;;  %4654 = vmatmul.mubr.msk.bf16.vlgmr.msra.gmra.mxu0 %vm730_vm2, %v360_v35  ;;  %v5633_v35 = vld [vmem:[%s5352_s15 + $0x64] sm:$0xf] }
 0x15e   : > { %4574 = vmatpush3.bf16.msra.mxu1 %v1150_v39  ;;  %4575 = vmatprep.mubr.msk.bf16.mxu1 %vm5186_vm0, %v5185_v24  ;;  %v1978_v39 = vsel %vm734_vm1, %v718_v33, 0 }
 0x15f   : > { %4579 = vmatprep.subr.bf16.mxu1 %v5185_v24  ;;  %4664 = vmatpush3.bf16.msra.mxu0 %v1840_v37  ;;  %v679_v37 = vpop.f32.mrf.mxu0 }
 0x160   : > { %4665 = vmatprep.mubr.msk.bf16.mxu0 %vm5186_vm0, %v5185_v24  ;;  %4675 = vmatprep.subr.bf16.mxu0 %v5185_v24  ;;  %v720_v41 = vpack.c.bf16 %v679_v37, %v679_v37 }
 0x162   : > { %v2070_v36 = vsel %vm734_vm1, %v720_v41, 0 }
 0x165   : > { %4576 = vmatmul.mubr.msk.bf16.vlgmr.msra.gmra.mxu1 %vm730_vm2, %v5514_v47  ;;  %4666 = vmatmul.mubr.msk.bf16.vlgmr.msra.gmra.mxu0 %vm730_vm2, %v362_v48  ;;  %v2162_v48 = vsel %vm734_vm1, %v722_v44, 0 }
 0x166   : > { %4580 = vmatpush3.bf16.msra.mxu1 %v1196_v50  ;;  %4581 = vmatprep.mubr.msk.bf16.mxu1 %vm5186_vm0, %v5185_v24 }
 0x167   : > { %4585 = vmatprep.subr.bf16.mxu1 %v5185_v24  ;;  %4676 = vmatpush3.bf16.msra.mxu0 %v1932_v49  ;;  %v5660_v49 = vld [vmem:[%s5352_s15 + $0x7c] sm:$0xf] }
 0x168   : > { %4677 = vmatprep.mubr.msk.bf16.mxu0 %vm5186_vm0, %v5185_v24  ;;  %4687 = vmatprep.subr.bf16.mxu0 %v5185_v24 }
 0x16d   : > { %4582 = vmatmul.mubr.msk.bf16.vlgmr.msra.gmra.mxu1 %vm730_vm2, %v5531_v54  ;;  %4678 = vmatmul.mubr.msk.bf16.vlgmr.msra.gmra.mxu0 %vm730_vm2, %v364_v57 }
 0x16e   : > { %4586 = vmatpush3.bf16.msra.mxu1 %v1242_v59  ;;  %4587 = vmatprep.mubr.msk.bf16.mxu1 %vm5186_vm0, %v5185_v24 }
 0x16f   : > { %4597 = vmatprep.subr.bf16.mxu1 %v5185_v24  ;;  %4688 = vmatpush3.bf16.msra.mxu0 %v2024_v58 }
 0x170   : > { %4689 = vmatprep.mubr.msk.bf16.mxu0 %vm5186_vm0, %v5185_v24  ;;  %4699 = vmatprep.subr.bf16.mxu0 %v5185_v24 }
 0x175   : > { %4588 = vmatmul.mubr.msk.bf16.vlgmr.msra.gmra.mxu1 %vm730_vm2, %v5548_v61  ;;  %4690 = vmatmul.mubr.msk.bf16.vlgmr.msra.gmra.mxu0 %vm730_vm2, %v366_v62 }
 0x176   : > { %4598 = vmatpush3.bf16.msra.mxu1 %v1334_v63  ;;  %4599 = vmatprep.mubr.msk.bf16.mxu1 %vm5186_vm0, %v5185_v24 }
 0x177   : > { %4609 = vmatprep.subr.bf16.mxu1 %v5185_v24  ;;  %4700 = vmatpush3.bf16.msra.mxu0 %v2116_v1 }
 0x178   : > { %4701 = vmatprep.mubr.msk.bf16.mxu0 %vm5186_vm0, %v5185_v24  ;;  %4711 = vmatprep.subr.bf16.mxu0 %v5041_v3 }
 0x17d   : > { %4600 = vmatmul.mubr.msk.bf16.vlgmr.msra.gmra.mxu1 %vm730_vm2, %v5564_v4  ;;  %4702 = vmatmul.mubr.msk.bf16.vlgmr.msra.gmra.mxu0 %vm730_vm2, %v368_v6 }
 0x17e   : > { %4610 = vmatpush3.bf16.msra.mxu1 %v1426_v8  ;;  %4611 = vmatprep.mubr.msk.bf16.mxu1 %vm5186_vm0, %v5185_v24 }
 0x17f   : > { %4621 = vmatprep.subr.bf16.mxu1 %v5185_v24  ;;  %4712 = vmatpush3.bf16.msra.mxu0 %v5041_v3 }
 0x180   : > { %4713 = vmatprep.subr.bf16.mxu0 %v5042_v7 }
 0x183   : > { %4714 = vmatpush3.bf16.msra.mxu0 %v5042_v7 }
 0x184   : > { %4715 = vmatprep.subr.bf16.mxu0 %v5043_v53 }
 0x185   : > { %4612 = vmatmul.mubr.msk.bf16.vlgmr.msra.gmra.mxu1 %vm730_vm2, %v5577_v11 }
 0x186   : > { %4622 = vmatpush3.bf16.msra.mxu1 %v1518_v12  ;;  %4623 = vmatprep.mubr.msk.bf16.mxu1 %vm5186_vm0, %v5185_v24 }
 0x187   : > { %4633 = vmatprep.subr.bf16.mxu1 %v5185_v24  ;;  %4716 = vmatpush3.bf16.msra.mxu0 %v5043_v53 }
 0x188   : > { %4717 = vmatprep.subr.bf16.mxu0 %v5044_v13 }
 0x18b   : > { %4718 = vmatpush3.bf16.msra.mxu0 %v5044_v13 }
 0x18c   : > { %4719 = vmatprep.subr.bf16.mxu0 %v5045_v5 }
 0x18d   : > { %4624 = vmatmul.mubr.msk.bf16.vlgmr.msra.gmra.mxu1 %vm730_vm2, %v5588_v15 }
 0x18e   : > { %4634 = vmatpush3.bf16.msra.mxu1 %v1610_v19  ;;  %4635 = vmatprep.mubr.msk.bf16.mxu1 %vm5186_vm0, %v5185_v24 }
 0x18f   : > { %4645 = vmatprep.subr.bf16.mxu1 %v5185_v24  ;;  %4720 = vmatpush3.bf16.msra.mxu0 %v5045_v5 }
 0x190   : > { %4721 = vmatprep.subr.bf16.mxu0 %v5046_v17 }
 0x193   : > { %4722 = vmatpush3.bf16.msra.mxu0 %v5046_v17 }
 0x194   : > { %4723 = vmatprep.subr.bf16.mxu0 %v5047_v2 }
 0x195   : > { %4636 = vmatmul.mubr.msk.bf16.vlgmr.msra.gmra.mxu1 %vm730_vm2, %v5599_v21 }
 0x196   : > { %4646 = vmatpush3.bf16.msra.mxu1 %v1702_v23  ;;  %4647 = vmatprep.mubr.msk.bf16.mxu1 %vm5186_vm0, %v5185_v24 }
 0x197   : > { %4657 = vmatprep.subr.bf16.mxu1 %v5185_v24  ;;  %4724 = vmatpush3.bf16.msra.mxu0 %v5047_v2 }
 0x198   : > { %4725 = vmatprep.subr.bf16.mxu0 %v5048_v25 }
 0x19b   : > { %4726 = vmatpush3.bf16.msra.mxu0 %v5048_v25 }
 0x19c   : > { %4825 = vmatprep.subr.bf16.mxu0 %v5185_v24 }
 0x19d   : > { %4648 = vmatmul.mubr.msk.bf16.vlgmr.msra.gmra.mxu1 %vm730_vm2, %v5610_v27 }
 0x19e   : > { %4658 = vmatpush3.bf16.msra.mxu1 %v1794_v28  ;;  %4659 = vmatprep.mubr.msk.bf16.mxu1 %vm5186_vm0, %v5185_v24 }
 0x19f   : > { %4669 = vmatprep.subr.bf16.mxu1 %v5185_v24 }
 0x1a5   : > { %4660 = vmatmul.mubr.msk.bf16.vlgmr.msra.gmra.mxu1 %vm730_vm2, %v5622_v18 }
 0x1a6   : > { %4670 = vmatpush3.bf16.msra.mxu1 %v1886_v30  ;;  %4671 = vmatprep.mubr.msk.bf16.mxu1 %vm5186_vm0, %v5185_v24 }
 0x1a7   : > { %4681 = vmatprep.subr.bf16.mxu1 %v5185_v24 }
 0x1ad   : > { %4672 = vmatmul.mubr.msk.bf16.vlgmr.msra.gmra.mxu1 %vm730_vm2, %v5633_v35 }
 0x1ae   : > { %4682 = vmatpush3.bf16.msra.mxu1 %v1978_v39  ;;  %4683 = vmatprep.mubr.msk.bf16.mxu1 %vm5186_vm0, %v5185_v24 }
 0x1af   : > { %4693 = vmatprep.subr.bf16.mxu1 %v5185_v24 }
 0x1b5   : > { %4684 = vmatmul.mubr.msk.bf16.vlgmr.msra.gmra.mxu1 %vm730_vm2, %v5642_v42 }
 0x1b6   : > { %4694 = vmatpush3.bf16.msra.mxu1 %v2070_v36  ;;  %4695 = vmatprep.mubr.msk.bf16.mxu1 %vm5186_vm0, %v5185_v24 }
 0x1b7   : > { %4705 = vmatprep.subr.bf16.mxu1 %v5185_v24 }
 0x1bd   : > { %4696 = vmatmul.mubr.msk.bf16.vlgmr.msra.gmra.mxu1 %vm730_vm2, %v5651_v46 }
 0x1be   : > { %4706 = vmatpush3.bf16.msra.mxu1 %v2162_v48  ;;  %4707 = vmatprep.mubr.msk.bf16.mxu1 %vm5186_vm0, %v5185_v24 }
 0x1bf   : > { %4759 = vmatprep.subr.bf16.mxu1 %v5185_v24 }
 0x1c5   : > { %4708 = vmatmul.mubr.msk.bf16.vlgmr.msra.gmra.mxu1 %vm730_vm2, %v5660_v49 }
 0x1c6   : > { %4761 = vmatprep.mubr.msk.bf16.mxu1 %vm5186_vm0, %v5185_v24 }
 0x1dd   : > { %v772_v50 = vpop.f32.mrf.mxu1 }
 0x1de   : > { %v773_v58 = vadd.f32 %v5669_v40, %v772_v50 }
 0x1df   : > { %v4523_v51 = vpop.f32.mrf.mxu1 }
 0x1e0   : > { %v2204_v62 = vmax.f32 %v773_v58, 0.0 }
 0x1e1   : > { %v775_v52 = vpop.f32.mrf.mxu1 }
 0x1e3   : > { %v4524_v57 = vpop.f32.mrf.mxu1 }
 0x1e5   : > { %v818_v59 = vpop.f32.mrf.mxu1 }
 0x1e6   : > { %v819_v43 = vadd.f32 %v5669_v40, %v818_v59 }
 0x1e7   : > { %v4529_v60 = vpop.f32.mrf.mxu1 }
 0x1e8   : > { %v2205_v63 = vmax.f32 %v819_v43, 0.0 }
 0x1e9   : > { %v821_v1 = vpop.f32.mrf.mxu1 }
 0x1ea   : > { %v4278_v3 = vpack.c.bf16 %v2205_v63, %v2204_v62 }
 0x1eb   : > { %v4530_v56 = vpop.f32.mrf.mxu1 }
 0x1ec   : > { %4727 = vmatprep.mubr.bf16.mxu0 %v4278_v3 }
 0x1ed   : > { %v864_v6 = vpop.f32.mrf.mxu1 }
 0x1ee   : > { %v865_v53 = vadd.f32 %v5669_v40, %v864_v6 }
 0x1ef   : > { %v4535_v7 = vpop.f32.mrf.mxu1 }
 0x1f0   : > { %v2206_v19 = vmax.f32 %v865_v53, 0.0 }
 0x1f1   : > { %v867_v8 = vpop.f32.mrf.mxu1 }
 0x1f3   : > { %v4536_v10 = vpop.f32.mrf.mxu1 }
 0x1f5   : > { %v910_v12 = vpop.f32.mrf.mxu1  ;;  %v5674_v13 = vpop.f32.mrf.mxu0 }
 0x1f6   : > { %v911_v5 = vadd.f32 %v5669_v40, %v910_v12 }
 0x1f7   : > { %v4541_v14 = vpop.f32.mrf.mxu1  ;;  %v4595_v17 = vpop.f32.mrf.mxu0 }
 0x1f8   : > { %v2207_v20 = vmax.f32 %v911_v5, 0.0 }
 0x1f9   : > { %v913_v2 = vpop.f32.mrf.mxu1  ;;  %v1327_v23 = vpop.f32.mrf.mxu0 }
 0x1fa   : > { %v4279_v25 = vpack.c.bf16 %v2207_v20, %v2206_v19 }
 0x1fb   : > { %v4542_v22 = vpop.f32.mrf.mxu1  ;;  %v4596_v28 = vpop.f32.mrf.mxu0 }
 0x1fc   : > { %4728 = vmatmul.mubr.bf16.vlgmr.msra.gmra.mxu0 %v4279_v25 }
 0x1fd   : > { %v956_v29 = vpop.f32.mrf.mxu1  ;;  %v5677_v30 = vpop.f32.mrf.mxu0 }
 0x1fe   : > { %v957_v44 = vadd.f32 %v5669_v40, %v956_v29 }
 0x1ff   : > { %v4547_v32 = vpop.f32.mrf.mxu1  ;;  %v4607_v33 = vpop.f32.mrf.mxu0 }
 0x200   : > { %v2208_v58 = vmax.f32 %v957_v44, 0.0 }
 0x201   : > { %v959_v37 = vpop.f32.mrf.mxu1  ;;  %v1419_v39 = vpop.f32.mrf.mxu0 }
 0x203   : > { %v4548_v41 = vpop.f32.mrf.mxu1  ;;  %v4608_v36 = vpop.f32.mrf.mxu0 }
 0x205   : > { %v1002_v48 = vpop.f32.mrf.mxu1  ;;  %v5680_v50 = vpop.f32.mrf.mxu0 }
 0x206   : > { %v1003_v51 = vadd.f32 %v5669_v40, %v1002_v48 }
 0x207   : > { %v4553_v52 = vpop.f32.mrf.mxu1  ;;  %v4619_v57 = vpop.f32.mrf.mxu0 }
 0x208   : > { %v2209_v59 = vmax.f32 %v1003_v51, 0.0 }
 0x209   : > { %v1005_v43 = vpop.f32.mrf.mxu1  ;;  %v1511_v60 = vpop.f32.mrf.mxu0 }
 0x20a   : > { %v4280_v62 = vpack.c.bf16 %v2209_v59, %v2208_v58 }
 0x20b   : > { %v4554_v63 = vpop.f32.mrf.mxu1  ;;  %v4620_v1 = vpop.f32.mrf.mxu0 }
 0x20c   : > { %4731 = vmatprep.mubr.bf16.mxu0 %v4280_v62 }
 0x20d   : > { %v1048_v3 = vpop.f32.mrf.mxu1  ;;  %v5683_v56 = vpop.f32.mrf.mxu0 }
 0x20e   : > { %v1049_v5 = vadd.f32 %v5669_v40, %v1048_v3 }
 0x20f   : > { %v4559_v6 = vpop.f32.mrf.mxu1  ;;  %v4631_v7 = vpop.f32.mrf.mxu0 }
 0x210   : > { %v2210_v23 = vmax.f32 %v1049_v5, 0.0 }
 0x211   : > { %v1051_v8 = vpop.f32.mrf.mxu1  ;;  %v1603_v10 = vpop.f32.mrf.mxu0 }
 0x213   : > { %v4560_v53 = vpop.f32.mrf.mxu1  ;;  %v4632_v12 = vpop.f32.mrf.mxu0 }
 0x215   : > { %v1094_v14 = vpop.f32.mrf.mxu1  ;;  %v5686_v17 = vpop.f32.mrf.mxu0 }
 0x216   : > { %v1095_v19 = vadd.f32 %v5669_v40, %v1094_v14 }
 0x217   : > { %v4565_v20 = vpop.f32.mrf.mxu1  ;;  %v4643_v2 = vpop.f32.mrf.mxu0 }
 0x218   : > { %v2211_v25 = vmax.f32 %v1095_v19, 0.0 }
 0x219   : > { %v1097_v22 = vpop.f32.mrf.mxu1  ;;  %v1695_v28 = vpop.f32.mrf.mxu0 }
 0x21a   : > { %v4281_v29 = vpack.c.bf16 %v2211_v25, %v2210_v23 }
 0x21b   : > { %v4566_v32 = vpop.f32.mrf.mxu1  ;;  %v4644_v33 = vpop.f32.mrf.mxu0 }
 0x21c   : > { %4732 = vmatmul.mubr.bf16.gmra.mxu0 %v4281_v29 }
 0x21d   : > { %v1140_v37 = vpop.f32.mrf.mxu1  ;;  %v5689_v39 = vpop.f32.mrf.mxu0 }
 0x21e   : > { %v1141_v57 = vadd.f32 %v5669_v40, %v1140_v37 }
 0x21f   : > { %v4571_v41 = vpop.f32.mrf.mxu1  ;;  %v4655_v36 = vpop.f32.mrf.mxu0 }
 0x220   : > { %v2212_v63 = vmax.f32 %v1141_v57, 0.0 }
 0x221   : > { %v1143_v44 = vpop.f32.mrf.mxu1  ;;  %v1787_v48 = vpop.f32.mrf.mxu0 }
 0x223   : > { %v4572_v51 = vpop.f32.mrf.mxu1  ;;  %v4656_v52 = vpop.f32.mrf.mxu0 }
 0x224   : > { %v1325_v51 = vadd.f32 %v5669_v40, %v5674_v13 }
 0x225   : > { %v1186_v58 = vpop.f32.mrf.mxu1  ;;  %v5692_v59 = vpop.f32.mrf.mxu0 }
 0x226   : > { %v1187_v43 = vadd.f32 %v5669_v40, %v1186_v58 }
 0x227   : > { %v4577_v60 = vpop.f32.mrf.mxu1  ;;  %v4667_v62 = vpop.f32.mrf.mxu0 }
 0x228   : > { %v2213_v1 = vmax.f32 %v1187_v43, 0.0  ;;  %v2216_v60 = vmax.f32 %v1325_v51, 0.0 }
 0x229   : > { %v1189_v3 = vpop.f32.mrf.mxu1  ;;  %v1879_v6 = vpop.f32.mrf.mxu0 }
 0x22a   : > { %v4282_v7 = vpack.c.bf16 %v2213_v1, %v2212_v63 }
 0x22b   : > { %v4578_v8 = vpop.f32.mrf.mxu1  ;;  %v4668_v10 = vpop.f32.mrf.mxu0 }
 0x22c   : > { %4735 = vmatprep.mubr.bf16.mxu0 %v4282_v7  ;;  %v1417_v10 = vadd.f32 %v5669_v40, %v5677_v30 }
 0x22d   : > { %v1232_v53 = vpop.f32.mrf.mxu1  ;;  %v5695_v12 = vpop.f32.mrf.mxu0 }
 0x22e   : > { %v1233_v25 = vadd.f32 %v5669_v40, %v1232_v53 }
 0x22f   : > { %v4583_v5 = vpop.f32.mrf.mxu1  ;;  %v4679_v14 = vpop.f32.mrf.mxu0 }
 0x230   : > { %v2214_v37 = vmax.f32 %v1233_v25, 0.0  ;;  %v2218_v14 = vmax.f32 %v1417_v10, 0.0 }
 0x231   : > { %v1235_v19 = vpop.f32.mrf.mxu1  ;;  %v1971_v20 = vpop.f32.mrf.mxu0 }
 0x233   : > { %v4584_v2 = vpop.f32.mrf.mxu1  ;;  %v4680_v23 = vpop.f32.mrf.mxu0 }
 0x235   : > { %v1278_v22 = vpop.f32.mrf.mxu1  ;;  %v5698_v28 = vpop.f32.mrf.mxu0 }
 0x236   : > { %v1279_v29 = vadd.f32 %v5669_v40, %v1278_v22  ;;  %v1509_v22 = vadd.f32 %v5669_v40, %v5680_v50 }
 0x237   : > { %v4589_v32 = vpop.f32.mrf.mxu1  ;;  %v4691_v33 = vpop.f32.mrf.mxu0 }
 0x238   : > { %v2215_v41 = vmax.f32 %v1279_v29, 0.0  ;;  %v2220_v33 = vmax.f32 %v1509_v22, 0.0 }
 0x239   : > { %v1281_v36 = vpop.f32.mrf.mxu1  ;;  %v2063_v44 = vpop.f32.mrf.mxu0 }
 0x23a   : > { %v4283_v48 = vpack.c.bf16 %v2215_v41, %v2214_v37 }
 0x23b   : > { %v4590_v52 = vpop.f32.mrf.mxu1  ;;  %v4692_v57 = vpop.f32.mrf.mxu0 }
 0x23c   : > { %4736 = vmatmul.mubr.bf16.gmra.mxu0 %v4283_v48  ;;  %v1601_v48 = vadd.f32 %v5669_v40, %v5683_v56 }
 0x23d   : > { %v1370_v58 = vpop.f32.mrf.mxu1  ;;  %v5703_v43 = vpop.f32.mrf.mxu0 }
 0x23e   : > { %v1371_v62 = vadd.f32 %v5669_v40, %v1370_v58  ;;  %v2222_v57 = vmax.f32 %v1601_v48, 0.0  ;;  %v1969_v48 = vadd.f32 %v5669_v40, %v5695_v12 }
 0x23f   : > { %v4601_v63 = vpop.f32.mrf.mxu1  ;;  %v4703_v1 = vpop.f32.mrf.mxu0 }
 0x240   : > { %v2217_v3 = vmax.f32 %v1371_v62, 0.0  ;;  %v1693_v1 = vadd.f32 %v5669_v40, %v5686_v17 }
 0x241   : > { %v1373_v6 = vpop.f32.mrf.mxu1  ;;  %v2155_v7 = vpop.f32.mrf.mxu0 }
 0x242   : > { %v4284_v8 = vpack.c.bf16 %v2217_v3, %v2216_v60  ;;  %v2224_v7 = vmax.f32 %v1693_v1, 0.0 }
 0x243   : > { %v4602_v53 = vpop.f32.mrf.mxu1  ;;  %v4704_v13 = vpop.f32.mrf.mxu0 }
 0x244   : > { %4739 = vmatprep.mubr.bf16.mxu0 %v4284_v8 }
 0x245   : > { %v1462_v5 = vpop.f32.mrf.mxu1 }
 0x246   : > { %v1463_v19 = vadd.f32 %v5669_v40, %v1462_v5  ;;  %v1785_v5 = vadd.f32 %v5669_v40, %v5689_v39 }
 0x247   : > { %v4613_v20 = vpop.f32.mrf.mxu1 }
 0x248   : > { %v2219_v2 = vmax.f32 %v1463_v19, 0.0  ;;  %v2226_v20 = vmax.f32 %v1785_v5, 0.0 }
 0x249   : > { %v1465_v23 = vpop.f32.mrf.mxu1 }
 0x24a   : > { %v4285_v25 = vpack.c.bf16 %v2219_v2, %v2218_v14 }
 0x24b   : > { %v4614_v29 = vpop.f32.mrf.mxu1 }
 0x24c   : > { %4740 = vmatmul.mubr.bf16.gmra.mxu0 %v4285_v25  ;;  %v1877_v29 = vadd.f32 %v5669_v40, %v5692_v59 }
 0x24d   : > { %v1554_v32 = vpop.f32.mrf.mxu1 }
 0x24e   : > { %v1555_v30 = vadd.f32 %v5669_v40, %v1554_v32 }
 0x24f   : > { %v4625_v37 = vpop.f32.mrf.mxu1 }
 0x250   : > { %v2221_v41 = vmax.f32 %v1555_v30, 0.0  ;;  %v2228_v30 = vmax.f32 %v1877_v29, 0.0 }
 0x251   : > { %v1557_v36 = vpop.f32.mrf.mxu1 }
 0x252   : > { %v4286_v44 = vpack.c.bf16 %v2221_v41, %v2220_v33 }
 0x253   : > { %v4626_v51 = vpop.f32.mrf.mxu1 }
 0x254   : > { %4743 = vmatprep.mubr.bf16.mxu0 %v4286_v44 }
 0x255   : > { %v1646_v52 = vpop.f32.mrf.mxu1 }
 0x256   : > { %v1647_v58 = vadd.f32 %v5669_v40, %v1646_v52 }
 0x257   : > { %v4637_v50 = vpop.f32.mrf.mxu1 }
 0x258   : > { %v2223_v60 = vmax.f32 %v1647_v58, 0.0 }
 0x259   : > { %v1649_v62 = vpop.f32.mrf.mxu1 }
 0x25a   : > { %v4287_v63 = vpack.c.bf16 %v2223_v60, %v2222_v57  ;;  %v2230_v57 = vmax.f32 %v1969_v48, 0.0 }
 0x25b   : > { %v4638_v3 = vpop.f32.mrf.mxu1 }
 0x25c   : > { %4744 = vmatmul.mubr.bf16.gmra.mxu0 %v4287_v63  ;;  %v2061_v63 = vadd.f32 %v5669_v40, %v5698_v28 }
 0x25d   : > { %v1738_v6 = vpop.f32.mrf.mxu1 }
 0x25e   : > { %v1739_v8 = vadd.f32 %v5669_v40, %v1738_v6  ;;  %v2232_v6 = vmax.f32 %v2061_v63, 0.0 }
 0x25f   : > { %v4649_v56 = vpop.f32.mrf.mxu1 }
 0x260   : > { %v2225_v10 = vmax.f32 %v1739_v8, 0.0 }
 0x261   : > { %v1741_v53 = vpop.f32.mrf.mxu1 }
 0x262   : > { %v4288_v13 = vpack.c.bf16 %v2225_v10, %v2224_v7  ;;  %v2153_v53 = vadd.f32 %v5669_v40, %v5703_v43 }
 0x263   : > { %v4650_v14 = vpop.f32.mrf.mxu1 }
 0x264   : > { %4747 = vmatprep.mubr.bf16.mxu0 %v4288_v13  ;;  %v2234_v14 = vmax.f32 %v2153_v53, 0.0 }
 0x265   : > { %v1830_v19 = vpop.f32.mrf.mxu1 }
 0x266   : > { %v1831_v2 = vadd.f32 %v5669_v40, %v1830_v19 }
 0x267   : > { %v4661_v17 = vpop.f32.mrf.mxu1 }
 0x268   : > { %v2227_v23 = vmax.f32 %v1831_v2, 0.0 }
 0x269   : > { %v1833_v25 = vpop.f32.mrf.mxu1 }
 0x26a   : > { %v4289_v22 = vpack.c.bf16 %v2227_v23, %v2226_v20 }
 0x26b   : > { %v4662_v32 = vpop.f32.mrf.mxu1 }
 0x26c   : > { %4748 = vmatmul.mubr.bf16.gmra.mxu0 %v4289_v22 }
 0x26d   : > { %v1922_v33 = vpop.f32.mrf.mxu1 }
 0x26e   : > { %v1923_v37 = vadd.f32 %v5669_v40, %v1922_v33 }
 0x26f   : > { %v4673_v39 = vpop.f32.mrf.mxu1 }
 0x270   : > { %v2229_v41 = vmax.f32 %v1923_v37, 0.0 }
 0x271   : > { %v1925_v36 = vpop.f32.mrf.mxu1 }
 0x272   : > { %v4290_v44 = vpack.c.bf16 %v2229_v41, %v2228_v30 }
 0x273   : > { %v4674_v51 = vpop.f32.mrf.mxu1 }
 0x274   : > { %4751 = vmatprep.mubr.bf16.mxu0 %v4290_v44 }
 0x275   : > { %v2014_v52 = vpop.f32.mrf.mxu1 }
 0x276   : > { %v2015_v58 = vadd.f32 %v5669_v40, %v2014_v52 }
 0x277   : > { %v4685_v59 = vpop.f32.mrf.mxu1 }
 0x278   : > { %v2231_v50 = vmax.f32 %v2015_v58, 0.0 }
 0x279   : > { %v2017_v60 = vpop.f32.mrf.mxu1 }
 0x27a   : > { %v4291_v62 = vpack.c.bf16 %v2231_v50, %v2230_v57 }
 0x27b   : > { %v4686_v1 = vpop.f32.mrf.mxu1 }
 0x27c   : > { %4752 = vmatmul.mubr.bf16.gmra.mxu0 %v4291_v62 }
 0x27d   : > { %v2106_v3 = vpop.f32.mrf.mxu1 }
 0x27e   : > { %v2107_v7 = vadd.f32 %v5669_v40, %v2106_v3 }
 0x27f   : > { %v4697_v12 = vpop.f32.mrf.mxu1 }
 0x280   : > { %v2233_v8 = vmax.f32 %v2107_v7, 0.0 }
 0x281   : > { %v2109_v56 = vpop.f32.mrf.mxu1 }
 0x282   : > { %v4292_v10 = vpack.c.bf16 %v2233_v8, %v2232_v6 }
 0x283   : > { %v4698_v13 = vpop.f32.mrf.mxu1 }
 0x284   : > { %4755 = vmatprep.mubr.bf16.mxu0 %v4292_v10 }
 0x285   : > { %v2198_v5 = vpop.f32.mrf.mxu1 }
 0x286   : > { %v2199_v19 = vadd.f32 %v5669_v40, %v2198_v5 }
 0x287   : > { %v4709_v28 = vpop.f32.mrf.mxu1 }
 0x288   : > { %v2235_v20 = vmax.f32 %v2199_v19, 0.0 }
 0x289   : > { %v2201_v2 = vpop.f32.mrf.mxu1 }
 0x28a   : > { %v4293_v17 = vpack.c.bf16 %v2235_v20, %v2234_v14  ;;  %v5049_v20 = vld [vmem:[%s5352_s15 + $0x30] sm:$0xf] }
 0x28b   : > { %v4710_v23 = vpop.f32.mrf.mxu1 }
 0x28c   : > { %4756 = vmatmul.mubr.bf16.gmra.mxu0 %v4293_v17 }
 0x28d   : > { %4827 = vmatprep.mubr.msk.bf16.mxu0 %vm5186_vm0, %v5185_v24 }
 0x2bc   : > { %v4729_v25 = vpop.f32.mrf.mxu0 }
 0x2bd   : > { %v2591_v37 = vpack.c.bf16 %v4729_v25, %v4729_v25 }
 0x2be   : > { %v2462_v22 = vpop.f32.mrf.mxu0 }
 0x2bf   : > { %v2589_v29 = vpack.c.bf16 %v2462_v22, %v2462_v22  ;;  %v2715_v39 = vsel %vm734_vm1, %v2591_v37, 0  ;;  %v5051_v37 = vld [vmem:[%s5352_s15 + $0x40] sm:$0xf] }
 0x2c0   : > { %v4730_v32 = vpop.f32.mrf.mxu0 }
 0x2c1   : > { %v2629_v43 = vsel %vm734_vm1, %v2589_v29, 0  ;;  %v2592_v41 = vpack.c.bf16 %v4730_v32, %v4730_v32 }
 0x2c2   : > { %v2465_v33 = vpop.f32.mrf.mxu0  ;;  %4760 = vmatpush3.bf16.msra.mxu1 %v2629_v43  ;;  %v5050_v43 = vld [vmem:[%s5352_s15 + $0x38] sm:$0xf] }
 0x2c3   : > { %v2590_v30 = vpack.c.bf16 %v2465_v33, %v2465_v33  ;;  %4765 = vmatprep.subr.bf16.mxu1 %v5185_v24 }
 0x2c5   : > { %v2672_v40 = vsel %vm734_vm1, %v2590_v30, 0  ;;  %4762 = vmatmul.mubr.msk.bf16.vlgmr.msra.gmra.mxu1 %vm730_vm2, %v5356_v31  ;;  %v2758_v31 = vsel %vm734_vm1, %v2592_v41, 0 }
 0x2c6   : > { %4766 = vmatpush3.bf16.msra.mxu1 %v2672_v40  ;;  %4767 = vmatprep.mubr.msk.bf16.mxu1 %vm5186_vm0, %v5185_v24 }
 0x2c7   : > { %4771 = vmatprep.subr.bf16.mxu1 %v5185_v24 }
 0x2cd   : > { %4768 = vmatmul.mubr.msk.bf16.vlgmr.msra.gmra.mxu1 %vm730_vm2, %v5370_v38 }
 0x2ce   : > { %4772 = vmatpush3.bf16.msra.mxu1 %v2715_v39  ;;  %4773 = vmatprep.mubr.msk.bf16.mxu1 %vm5186_vm0, %v5185_v24 }
 0x2cf   : > { %4777 = vmatprep.subr.bf16.mxu1 %v5185_v24 }
 0x2d5   : > { %4774 = vmatmul.mubr.msk.bf16.vlgmr.msra.gmra.mxu1 %vm730_vm2, %v5385_v45 }
 0x2d6   : > { %4778 = vmatpush3.bf16.msra.mxu1 %v2758_v31  ;;  %4779 = vmatprep.mubr.msk.bf16.mxu1 %vm5186_vm0, %v5185_v24 }
 0x2d7   : > { %4783 = vmatprep.subr.bf16.mxu1 %v5185_v24 }
 0x2dc   : > { %v4733_v36 = vpop.f32.mrf.mxu0 }
 0x2dd   : > { %4780 = vmatmul.mubr.msk.bf16.vlgmr.msra.gmra.mxu1 %vm730_vm2, %v5399_v55  ;;  %v2595_v55 = vpack.c.bf16 %v4733_v36, %v4733_v36 }
 0x2de   : > { %v2478_v38 = vpop.f32.mrf.mxu0  ;;  %4785 = vmatprep.mubr.msk.bf16.mxu1 %vm5186_vm0, %v5185_v24 }
 0x2df   : > { %v2593_v44 = vpack.c.bf16 %v2478_v38, %v2478_v38  ;;  %v2887_v58 = vsel %vm734_vm1, %v2595_v55, 0  ;;  %v5053_v55 = vld [vmem:[%s5352_s15 + $0x50] sm:$0xf] }
 0x2e0   : > { %v4734_v48 = vpop.f32.mrf.mxu0 }
 0x2e1   : > { %v2801_v51 = vsel %vm734_vm1, %v2593_v44, 0  ;;  %v2596_v59 = vpack.c.bf16 %v4734_v48, %v4734_v48 }
 0x2e2   : > { %v2481_v52 = vpop.f32.mrf.mxu0  ;;  %4784 = vmatpush3.bf16.msra.mxu1 %v2801_v51  ;;  %v5052_v51 = vld [vmem:[%s5352_s15 + $0x48] sm:$0xf] }
 0x2e3   : > { %v2594_v45 = vpack.c.bf16 %v2481_v52, %v2481_v52  ;;  %4789 = vmatprep.subr.bf16.mxu1 %v5185_v24 }
 0x2e5   : > { %v2844_v57 = vsel %vm734_vm1, %v2594_v45, 0  ;;  %4786 = vmatmul.mubr.msk.bf16.vlgmr.msra.gmra.mxu1 %vm730_vm2, %v5417_v0  ;;  %v2930_v0 = vsel %vm734_vm1, %v2596_v59, 0 }
 0x2e6   : > { %4790 = vmatpush3.bf16.msra.mxu1 %v2844_v57  ;;  %4791 = vmatprep.mubr.msk.bf16.mxu1 %vm5186_vm0, %v5185_v24 }
 0x2e7   : > { %4795 = vmatprep.subr.bf16.mxu1 %v5185_v24 }
 0x2ed   : > { %4792 = vmatmul.mubr.msk.bf16.vlgmr.msra.gmra.mxu1 %vm730_vm2, %v5438_v9 }
 0x2ee   : > { %4796 = vmatpush3.bf16.msra.mxu1 %v2887_v58  ;;  %4797 = vmatprep.mubr.msk.bf16.mxu1 %vm5186_vm0, %v5185_v24 }
 0x2ef   : > { %4801 = vmatprep.subr.bf16.mxu1 %v5185_v24 }
 0x2f5   : > { %4798 = vmatmul.mubr.msk.bf16.vlgmr.msra.gmra.mxu1 %vm730_vm2, %v5455_v16 }
 0x2f6   : > { %4802 = vmatpush3.bf16.msra.mxu1 %v2930_v0  ;;  %4803 = vmatprep.mubr.msk.bf16.mxu1 %vm5186_vm0, %v5185_v24 }
 0x2f7   : > { %4807 = vmatprep.subr.bf16.mxu1 %v5185_v24 }
 0x2fc   : > { %v4737_v50 = vpop.f32.mrf.mxu0 }
 0x2fd   : > { %4804 = vmatmul.mubr.msk.bf16.vlgmr.msra.gmra.mxu1 %vm730_vm2, %v5476_v26  ;;  %v2599_v26 = vpack.c.bf16 %v4737_v50, %v4737_v50 }
 0x2fe   : > { %v2494_v9 = vpop.f32.mrf.mxu0  ;;  %4809 = vmatprep.mubr.msk.bf16.mxu1 %vm5186_vm0, %v5185_v24 }
 0x2ff   : > { %v2597_v60 = vpack.c.bf16 %v2494_v9, %v2494_v9  ;;  %v3059_v8 = vsel %vm734_vm1, %v2599_v26, 0 }
 0x300   : > { %v4738_v62 = vpop.f32.mrf.mxu0 }
 0x301   : > { %v2973_v63 = vsel %vm734_vm1, %v2597_v60, 0  ;;  %v2600_v1 = vpack.c.bf16 %v4738_v62, %v4738_v62 }
 0x302   : > { %v2497_v16 = vpop.f32.mrf.mxu0  ;;  %4808 = vmatpush3.bf16.msra.mxu1 %v2973_v63  ;;  %v5054_v63 = vld [vmem:[%s5352_s15 + $0x58] sm:$0xf] }
 0x303   : > { %v3102_v3 = vsel %vm734_vm1, %v2600_v1, 0  ;;  %v2598_v6 = vpack.c.bf16 %v2497_v16, %v2497_v16  ;;  %4813 = vmatprep.subr.bf16.mxu1 %v5185_v24 }
 0x304   : > { %4826 = vmatpush3.bf16.msra.mxu0 %v3102_v3 }
 0x305   : > { %v3016_v7 = vsel %vm734_vm1, %v2598_v6, 0  ;;  %4810 = vmatmul.mubr.msk.bf16.vlgmr.msra.gmra.mxu1 %vm730_vm2, %v5493_v34  ;;  %4837 = vmatprep.subr.bf16.mxu0 %v5185_v24  ;;  %v5055_v6 = vld [vmem:[%s5352_s15 + $0x60] sm:$0xf] }
 0x306   : > { %4814 = vmatpush3.bf16.msra.mxu1 %v3016_v7  ;;  %4815 = vmatprep.mubr.msk.bf16.mxu1 %vm5186_vm0, %v5185_v24 }
 0x307   : > { %4819 = vmatprep.subr.bf16.mxu1 %v5185_v24  ;;  %4828 = vmatmul.mubr.msk.bf16.vlgmr.msra.gmra.mxu0 %vm730_vm2, %v5548_v61 }
 0x308   : > { %4839 = vmatprep.mubr.msk.bf16.mxu0 %vm5186_vm0, %v5185_v24 }
 0x30c   : > { %v4741_v12 = vpop.f32.mrf.mxu0 }
 0x30d   : > { %4816 = vmatmul.mubr.msk.bf16.vlgmr.msra.gmra.mxu1 %vm730_vm2, %v5514_v47  ;;  %v2603_v47 = vpack.c.bf16 %v4741_v12, %v4741_v12 }
 0x30e   : > { %4820 = vmatpush3.bf16.msra.mxu1 %v3059_v8  ;;  %v2510_v34 = vpop.f32.mrf.mxu0  ;;  %4821 = vmatprep.mubr.msk.bf16.mxu1 %vm5186_vm0, %v5185_v24 }
 0x30f   : > { %v2601_v56 = vpack.c.bf16 %v2510_v34, %v2510_v34  ;;  %4831 = vmatprep.subr.bf16.mxu1 %v5185_v24  ;;  %v3231_v28 = vsel %vm734_vm1, %v2603_v47, 0 }
 0x310   : > { %v4742_v10 = vpop.f32.mrf.mxu0 }
 0x311   : > { %v3145_v53 = vsel %vm734_vm1, %v2601_v56, 0  ;;  %v2604_v5 = vpack.c.bf16 %v4742_v10, %v4742_v10 }
 0x312   : > { %v2513_v61 = vpop.f32.mrf.mxu0 }
 0x313   : > { %v2602_v13 = vpack.c.bf16 %v2513_v61, %v2513_v61  ;;  %v3274_v19 = vsel %vm734_vm1, %v2604_v5, 0  ;;  %v5056_v61 = vld [vmem:[%s5352_s15 + $0x68] sm:$0xf]  ;;  %v5057_v5 = vld [vmem:[%s5352_s15 + $0x70] sm:$0xf] }
 0x315   : > { %v3188_v14 = vsel %vm734_vm1, %v2602_v13, 0  ;;  %4822 = vmatmul.mubr.msk.bf16.vlgmr.msra.gmra.mxu1 %vm730_vm2, %v5531_v54 }
 0x316   : > { %4832 = vmatpush3.bf16.msra.mxu1 %v3145_v53  ;;  %4838 = vmatpush3.bf16.msra.mxu0 %v3188_v14  ;;  %v5058_v14 = vld [vmem:[%s5352_s15 + $0x78] sm:$0xf]  ;;  %s5115_s15 = sshll.u32 %s5187_s14, 4  ;;  %s5116_s15 = int_to_ptr.vmem [resolvable:$false] %s5115_s15 }
 0x317   : > { %4833 = vmatprep.mubr.msk.bf16.mxu1 %vm5186_vm0, %v5185_v24  ;;  %4843 = vmatprep.subr.bf16.mxu1 %v5185_v24  ;;  %s5117_s16 = scalar_lea.vmem %s5116_s15, 8192  ;;  %p5118_p11 = scmp.lt.s32.totalorder %s6000_s9, %s5116_s15 }
 0x318   : > { %4849 = vmatprep.subr.bf16.mxu0 %v5185_v24  ;;  %p5119_p0 = scmp.lt.s32.totalorder %s5117_s16, %s5111_s13 }
 0x319   : > { %4840 = vmatmul.mubr.msk.bf16.vlgmr.msra.gmra.mxu0 %vm730_vm2, %v5564_v4 }
 0x31a   : > { %4850 = vmatpush3.bf16.msra.mxu0 %v3274_v19  ;;  %4851 = vmatprep.mubr.msk.bf16.mxu0 %vm5186_vm0, %v5185_v24  ;;  %p5120_p1 = por %p5119_p0, %p5118_p11 }
 0x31b   : > { %4861 = vmatprep.subr.bf16.mxu0 %v5185_v24 }
 0x31c   : > { %v4745_v54 = vpop.f32.mrf.mxu0  ;;  %p5121_p3 = pnand %p5120_p1, %p5114_p8 }
 0x31d   : > { %4834 = vmatmul.mubr.msk.bf16.vlgmr.msra.gmra.mxu1 %vm730_vm2, %v5049_v20 }
 0x31e   : > { %4844 = vmatpush3.bf16.msra.mxu1 %v3231_v28  ;;  %v2526_v2 = vpop.f32.mrf.mxu0  ;;  %4845 = vmatprep.mubr.msk.bf16.mxu1 %vm5186_vm0, %v5185_v24 }
 0x31f   : > { %v2605_v17 = vpack.c.bf16 %v2526_v2, %v2526_v2  ;;  %4855 = vmatprep.subr.bf16.mxu1 %v5185_v24 }
 0x320   : > { %v4746_v4 = vpop.f32.mrf.mxu0 }
 0x321   : > { %4852 = vmatmul.mubr.msk.bf16.vlgmr.msra.gmra.mxu0 %vm730_vm2, %v5577_v11  ;;  %v3317_v25 = vsel %vm734_vm1, %v2605_v17, 0  ;;  %v2608_v29 = vpack.c.bf16 %v4746_v4, %v4746_v4  ;;  %v2607_v11 = vpack.c.bf16 %v4745_v54, %v4745_v54 }
 0x322   : > { %v2529_v23 = vpop.f32.mrf.mxu0  ;;  %4863 = vmatprep.mubr.msk.bf16.mxu0 %vm5186_vm0, %v5185_v24 }
 0x323   : > { %v2606_v22 = vpack.c.bf16 %v2529_v23, %v2529_v23  ;;  %v3446_v33 = vsel %vm734_vm1, %v2608_v29, 0  ;;  %v3403_v40 = vsel %vm734_vm1, %v2607_v11, 0 }
 0x325   : > { %v3360_v32 = vsel %vm734_vm1, %v2606_v22, 0  ;;  %4846 = vmatmul.mubr.msk.bf16.vlgmr.msra.gmra.mxu1 %vm730_vm2, %v5050_v43 }
 0x326   : > { %4856 = vmatpush3.bf16.msra.mxu1 %v3317_v25  ;;  %4862 = vmatpush3.bf16.msra.mxu0 %v3360_v32 }
 0x327   : > { %4857 = vmatprep.mubr.msk.bf16.mxu1 %vm5186_vm0, %v5185_v24  ;;  %4867 = vmatprep.subr.bf16.mxu1 %v5185_v24 }
 0x328   : > { %4873 = vmatprep.subr.bf16.mxu0 %v5185_v24 }
 0x329   : > { %4864 = vmatmul.mubr.msk.bf16.vlgmr.msra.gmra.mxu0 %vm730_vm2, %v5588_v15 }
 0x32a   : > { %4874 = vmatpush3.bf16.msra.mxu0 %v3446_v33  ;;  %4875 = vmatprep.mubr.msk.bf16.mxu0 %vm5186_vm0, %v5185_v24 }
 0x32b   : > { %4885 = vmatprep.subr.bf16.mxu0 %v5185_v24 }
 0x32c   : > { %v4749_v30 = vpop.f32.mrf.mxu0 }
 0x32d   : > { %4858 = vmatmul.mubr.msk.bf16.vlgmr.msra.gmra.mxu1 %vm730_vm2, %v5051_v37 }
 0x32e   : > { %4868 = vmatpush3.bf16.msra.mxu1 %v3403_v40  ;;  %v2542_v39 = vpop.f32.mrf.mxu0  ;;  %4869 = vmatprep.mubr.msk.bf16.mxu1 %vm5186_vm0, %v5185_v24 }
 0x32f   : > { %v2609_v41 = vpack.c.bf16 %v2542_v39, %v2542_v39  ;;  %4879 = vmatprep.subr.bf16.mxu1 %v5185_v24 }
 0x330   : > { %v4750_v15 = vpop.f32.mrf.mxu0 }
 0x331   : > { %4876 = vmatmul.mubr.msk.bf16.vlgmr.msra.gmra.mxu0 %vm730_vm2, %v5599_v21  ;;  %v3489_v36 = vsel %vm734_vm1, %v2609_v41, 0  ;;  %v2612_v44 = vpack.c.bf16 %v4750_v15, %v4750_v15  ;;  %v2611_v21 = vpack.c.bf16 %v4749_v30, %v4749_v30 }
 0x332   : > { %v2545_v31 = vpop.f32.mrf.mxu0  ;;  %4887 = vmatprep.mubr.msk.bf16.mxu0 %vm5186_vm0, %v5185_v24 }
 0x333   : > { %v2610_v38 = vpack.c.bf16 %v2545_v31, %v2545_v31  ;;  %v3618_v52 = vsel %vm734_vm1, %v2612_v44, 0  ;;  %v3575_v57 = vsel %vm734_vm1, %v2611_v21, 0 }
 0x335   : > { %v3532_v48 = vsel %vm734_vm1, %v2610_v38, 0  ;;  %4870 = vmatmul.mubr.msk.bf16.vlgmr.msra.gmra.mxu1 %vm730_vm2, %v5052_v51 }
 0x336   : > { %4880 = vmatpush3.bf16.msra.mxu1 %v3489_v36  ;;  %4886 = vmatpush3.bf16.msra.mxu0 %v3532_v48 }
 0x337   : > { %4881 = vmatprep.mubr.msk.bf16.mxu1 %vm5186_vm0, %v5185_v24  ;;  %4891 = vmatprep.subr.bf16.mxu1 %v5185_v24 }
 0x338   : > { %4897 = vmatprep.subr.bf16.mxu0 %v5185_v24 }
 0x339   : > { %4888 = vmatmul.mubr.msk.bf16.vlgmr.msra.gmra.mxu0 %vm730_vm2, %v5610_v27 }
 0x33a   : > { %4898 = vmatpush3.bf16.msra.mxu0 %v3618_v52  ;;  %4899 = vmatprep.mubr.msk.bf16.mxu0 %vm5186_vm0, %v5185_v24 }
 0x33b   : > { %4909 = vmatprep.subr.bf16.mxu0 %v5185_v24 }
 0x33c   : > { %v4753_v45 = vpop.f32.mrf.mxu0 }
 0x33d   : > { %4882 = vmatmul.mubr.msk.bf16.vlgmr.msra.gmra.mxu1 %vm730_vm2, %v5053_v55 }
 0x33e   : > { %4892 = vmatpush3.bf16.msra.mxu1 %v3575_v57  ;;  %v2558_v58 = vpop.f32.mrf.mxu0  ;;  %4893 = vmatprep.mubr.msk.bf16.mxu1 %vm5186_vm0, %v5185_v24 }
 0x33f   : > { %v2613_v59 = vpack.c.bf16 %v2558_v58, %v2558_v58  ;;  %4903 = vmatprep.subr.bf16.mxu1 %v5185_v24 }
 0x340   : > { %v4754_v27 = vpop.f32.mrf.mxu0 }
 0x341   : > { %4900 = vmatmul.mubr.msk.bf16.vlgmr.msra.gmra.mxu0 %vm730_vm2, %v5622_v18  ;;  %v3661_v50 = vsel %vm734_vm1, %v2613_v59, 0  ;;  %v2616_v60 = vpack.c.bf16 %v4754_v27, %v4754_v27  ;;  %v2615_v18 = vpack.c.bf16 %v4753_v45, %v4753_v45 }
 0x342   : > { %v2561_v0 = vpop.f32.mrf.mxu0  ;;  %4911 = vmatprep.mubr.msk.bf16.mxu0 %vm5186_vm0, %v5185_v24 }
 0x343   : > { %v2614_v9 = vpack.c.bf16 %v2561_v0, %v2561_v0  ;;  %v3790_v1 = vsel %vm734_vm1, %v2616_v60, 0  ;;  %v3747_v3 = vsel %vm734_vm1, %v2615_v18, 0 }
 0x345   : > { %v3704_v62 = vsel %vm734_vm1, %v2614_v9, 0  ;;  %4894 = vmatmul.mubr.msk.bf16.vlgmr.msra.gmra.mxu1 %vm730_vm2, %v5054_v63 }
 0x346   : > { %4904 = vmatpush3.bf16.msra.mxu1 %v3661_v50  ;;  %4910 = vmatpush3.bf16.msra.mxu0 %v3704_v62 }
 0x347   : > { %4905 = vmatprep.mubr.msk.bf16.mxu1 %vm5186_vm0, %v5185_v24  ;;  %4915 = vmatprep.subr.bf16.mxu1 %v5185_v24 }
 0x348   : > { %4921 = vmatprep.subr.bf16.mxu0 %v5185_v24 }
 0x349   : > { %4912 = vmatmul.mubr.msk.bf16.vlgmr.msra.gmra.mxu0 %vm730_vm2, %v5633_v35 }
 0x34a   : > { %4922 = vmatpush3.bf16.msra.mxu0 %v3790_v1  ;;  %4923 = vmatprep.mubr.msk.bf16.mxu0 %vm5186_vm0, %v5185_v24 }
 0x34b   : > { %4933 = vmatprep.subr.bf16.mxu0 %v5185_v24 }
 0x34c   : > { %v4757_v16 = vpop.f32.mrf.mxu0 }
 0x34d   : > { %4906 = vmatmul.mubr.msk.bf16.vlgmr.msra.gmra.mxu1 %vm730_vm2, %v5055_v6 }
 0x34e   : > { %4916 = vmatpush3.bf16.msra.mxu1 %v3747_v3  ;;  %v2574_v7 = vpop.f32.mrf.mxu0  ;;  %4917 = vmatprep.mubr.msk.bf16.mxu1 %vm5186_vm0, %v5185_v24 }
 0x34f   : > { %v2617_v26 = vpack.c.bf16 %v2574_v7, %v2574_v7  ;;  %4927 = vmatprep.subr.bf16.mxu1 %v5185_v24 }
 0x350   : > { %v4758_v35 = vpop.f32.mrf.mxu0 }
 0x351   : > { %4924 = vmatmul.mubr.msk.bf16.vlgmr.msra.gmra.mxu0 %vm730_vm2, %v5642_v42  ;;  %v3833_v8 = vsel %vm734_vm1, %v2617_v26, 0  ;;  %v2620_v56 = vpack.c.bf16 %v4758_v35, %v4758_v35  ;;  %v2619_v42 = vpack.c.bf16 %v4757_v16, %v4757_v16 }
 0x352   : > { %v2577_v12 = vpop.f32.mrf.mxu0  ;;  %4935 = vmatprep.mubr.msk.bf16.mxu0 %vm5186_vm0, %v5185_v24 }
 0x353   : > { %v2618_v34 = vpack.c.bf16 %v2577_v12, %v2577_v12  ;;  %v3962_v53 = vsel %vm734_vm1, %v2620_v56, 0  ;;  %v3919_v13 = vsel %vm734_vm1, %v2619_v42, 0 }
 0x355   : > { %v3876_v10 = vsel %vm734_vm1, %v2618_v34, 0  ;;  %4918 = vmatmul.mubr.msk.bf16.vlgmr.msra.gmra.mxu1 %vm730_vm2, %v5056_v61 }
 0x356   : > { %4928 = vmatpush3.bf16.msra.mxu1 %v3833_v8  ;;  %4934 = vmatpush3.bf16.msra.mxu0 %v3876_v10 }
 0x357   : > { %4929 = vmatprep.mubr.msk.bf16.mxu1 %vm5186_vm0, %v5185_v24  ;;  %4939 = vmatprep.subr.bf16.mxu1 %v5185_v24 }
 0x358   : > { %4945 = vmatprep.subr.bf16.mxu0 %v5185_v24 }
 0x359   : > { %4936 = vmatmul.mubr.msk.bf16.vlgmr.msra.gmra.mxu0 %vm730_vm2, %v5651_v46  ;;  %v5927_v46 = vld [vmem:[%s6051_s5] ss:$0 sm:$0xff] }
 0x35a   : > { %4946 = vmatpush3.bf16.msra.mxu0 %v3962_v53  ;;  %4947 = vmatprep.mubr.msk.bf16.mxu0 %vm5186_vm0, %v5185_v24 }
 0x35d   : > { %4930 = vmatmul.mubr.msk.bf16.vlgmr.msra.gmra.mxu1 %vm730_vm2, %v5057_v5 }
 0x35e   : > { %4940 = vmatpush3.bf16.msra.mxu1 %v3919_v13  ;;  %4941 = vmatprep.mubr.msk.bf16.mxu1 %vm5186_vm0, %v5185_v24 }
 0x361   : > { %4948 = vmatmul.mubr.msk.bf16.vlgmr.msra.gmra.mxu0 %vm730_vm2, %v5660_v49 }
 0x365   : > { %4942 = vmatmul.mubr.msk.bf16.vlgmr.msra.gmra.mxu1 %vm730_vm2, %v5058_v14 }
 0x385   : > { %v2665_v47 = vpop.f32.mrf.mxu1 }
 0x386   : > { %v2666_v19 = vadd.f32 %v5927_v46, %v2665_v47 }
 0x387   : > { %v4763_v54 = vpop.f32.mrf.mxu1 }
 0x388   : > { %4004 = vst [vmem:[%s5930_s28] sm:$0xff] %v2666_v19 }
 0x389   : > { %v2668_v24 = vpop.f32.mrf.mxu1 }
 0x38b   : > { %v4764_v49 = vpop.f32.mrf.mxu1 }
 0x38d   : > { %v2708_v28 = vpop.f32.mrf.mxu1 }
 0x38e   : > { %v2709_v20 = vadd.f32 %v5927_v46, %v2708_v28 }
 0x38f   : > { %v4769_v2 = vpop.f32.mrf.mxu1 }
 0x390   : > { %4005 = vst [vmem:[%s5930_s28 + $0x8] sm:$0xff] %v2709_v20 }
 0x391   : > { %v2711_v17 = vpop.f32.mrf.mxu1 }
 0x393   : > { %v4770_v4 = vpop.f32.mrf.mxu1 }
 0x395   : > { %v2751_v23 = vpop.f32.mrf.mxu1 }
 0x396   : > { %v2752_v25 = vadd.f32 %v5927_v46, %v2751_v23 }
 0x397   : > { %v4775_v22 = vpop.f32.mrf.mxu1 }
 0x398   : > { %4006 = vst [vmem:[%s5930_s28 + $0x10] sm:$0xff] %v2752_v25 }
 0x399   : > { %v2754_v29 = vpop.f32.mrf.mxu1 }
 0x39b   : > { %v4776_v32 = vpop.f32.mrf.mxu1 }
 0x39d   : > { %v2794_v43 = vpop.f32.mrf.mxu1 }
 0x39e   : > { %v2795_v11 = vadd.f32 %v5927_v46, %v2794_v43 }
 0x39f   : > { %v4781_v33 = vpop.f32.mrf.mxu1 }
 0x3a0   : > { %4007 = vst [vmem:[%s5930_s28 + $0x18] sm:$0xff] %v2795_v11 }
 0x3a1   : > { %v2797_v30 = vpop.f32.mrf.mxu1 }
 0x3a3   : > { %v4782_v40 = vpop.f32.mrf.mxu1 }
 0x3a5   : > { %v2837_v37 = vpop.f32.mrf.mxu1 }
 0x3a6   : > { %v2838_v39 = vadd.f32 %v5927_v46, %v2837_v37 }
 0x3a7   : > { %v4787_v41 = vpop.f32.mrf.mxu1 }
 0x3a8   : > { %4008 = vst [vmem:[%s5930_s28 + $0x20] sm:$0xff] %v2838_v39 }
 0x3a9   : > { %v2840_v15 = vpop.f32.mrf.mxu1 }
 0x3ab   : > { %v4788_v31 = vpop.f32.mrf.mxu1 }
 0x3ad   : > { %v2880_v36 = vpop.f32.mrf.mxu1 }
 0x3ae   : > { %v2881_v38 = vadd.f32 %v5927_v46, %v2880_v36 }
 0x3af   : > { %v4793_v44 = vpop.f32.mrf.mxu1 }
 0x3b0   : > { %4009 = vst [vmem:[%s5930_s28 + $0x28] sm:$0xff] %v2881_v38 }
 0x3b1   : > { %v2883_v48 = vpop.f32.mrf.mxu1 }
 0x3b3   : > { %v4794_v51 = vpop.f32.mrf.mxu1 }
 0x3b5   : > { %v2923_v21 = vpop.f32.mrf.mxu1 }
 0x3b6   : > { %v2924_v52 = vadd.f32 %v5927_v46, %v2923_v21 }
 0x3b7   : > { %v4799_v45 = vpop.f32.mrf.mxu1 }
 0x3b8   : > { %4010 = vst [vmem:[%s5930_s28 + $0x30] sm:$0xff] %v2924_v52 }
 0x3b9   : > { %v2926_v57 = vpop.f32.mrf.mxu1 }
 0x3bb   : > { %v4800_v55 = vpop.f32.mrf.mxu1 }
 0x3bd   : > { %v2966_v58 = vpop.f32.mrf.mxu1 }
 0x3be   : > { %v2967_v59 = vadd.f32 %v5927_v46, %v2966_v58 }
 0x3bf   : > { %v4805_v27 = vpop.f32.mrf.mxu1 }
 0x3c0   : > { %4011 = vst [vmem:[%s5930_s28 + $0x38] sm:$0xff] %v2967_v59 }
 0x3c1   : > { %v2969_v0 = vpop.f32.mrf.mxu1 }
 0x3c3   : > { %v4806_v50 = vpop.f32.mrf.mxu1 }
 0x3c5   : > { %v3009_v9 = vpop.f32.mrf.mxu1 }
 0x3c6   : > { %v3010_v60 = vadd.f32 %v5927_v46, %v3009_v9 }
 0x3c7   : > { %v4811_v62 = vpop.f32.mrf.mxu1  ;;  %v3138_v63 = vpop.f32.mrf.mxu0 }
 0x3c8   : > { %4012 = vst [vmem:[%s5930_s28 + $0x40] sm:$0xff] %v3010_v60  ;;  %v3139_v18 = vadd.f32 %v5927_v46, %v3138_v63 }
 0x3c9   : > { %v3012_v1 = vpop.f32.mrf.mxu1  ;;  %v4829_v16 = vpop.f32.mrf.mxu0 }
 0x3ca   : > { %4015 = vst [vmem:[%s5930_s28 + $0x58] sm:$0xff] %v3139_v18 }
 0x3cb   : > { %v4812_v3 = vpop.f32.mrf.mxu1  ;;  %v3141_v6 = vpop.f32.mrf.mxu0 }
 0x3cd   : > { %v3052_v7 = vpop.f32.mrf.mxu1  ;;  %v4830_v26 = vpop.f32.mrf.mxu0 }
 0x3ce   : > { %v3053_v35 = vadd.f32 %v5927_v46, %v3052_v7 }
 0x3cf   : > { %v4817_v12 = vpop.f32.mrf.mxu1 }
 0x3d0   : > { %4013 = vst [vmem:[%s5930_s28 + $0x48] sm:$0xff] %v3053_v35 }
 0x3d1   : > { %v3055_v8 = vpop.f32.mrf.mxu1 }
 0x3d3   : > { %v4818_v34 = vpop.f32.mrf.mxu1 }
 0x3d5   : > { %v3095_v56 = vpop.f32.mrf.mxu1 }
 0x3d6   : > { %v3096_v10 = vadd.f32 %v5927_v46, %v3095_v56 }
 0x3d7   : > { %v4823_v61 = vpop.f32.mrf.mxu1 }
 0x3d8   : > { %4014 = vst [vmem:[%s5930_s28 + $0x50] sm:$0xff] %v3096_v10 }
 0x3d9   : > { %v3098_v42 = vpop.f32.mrf.mxu1  ;;  %v3224_v53 = vpop.f32.mrf.mxu0 }
 0x3da   : > { %v3225_v13 = vadd.f32 %v5927_v46, %v3224_v53 }
 0x3db   : > { %v4824_v5 = vpop.f32.mrf.mxu1  ;;  %v4841_v14 = vpop.f32.mrf.mxu0 }
 0x3dc   : > { %4017 = vst [vmem:[%s5930_s28 + $0x68] sm:$0xff] %v3225_v13 }
 0x3dd   : > { %v3181_v47 = vpop.f32.mrf.mxu1  ;;  %v3227_v19 = vpop.f32.mrf.mxu0 }
 0x3de   : > { %v3182_v54 = vadd.f32 %v5927_v46, %v3181_v47 }
 0x3df   : > { %v4835_v24 = vpop.f32.mrf.mxu1  ;;  %v4842_v49 = vpop.f32.mrf.mxu0 }
 0x3e0   : > { %4016 = vst [vmem:[%s5930_s28 + $0x60] sm:$0xff] %v3182_v54 }
 0x3e1   : > { %v3184_v28 = vpop.f32.mrf.mxu1  ;;  %v3310_v20 = vpop.f32.mrf.mxu0 }
 0x3e2   : > { %v3311_v2 = vadd.f32 %v5927_v46, %v3310_v20 }
 0x3e3   : > { %v4836_v17 = vpop.f32.mrf.mxu1  ;;  %v4853_v4 = vpop.f32.mrf.mxu0 }
 0x3e4   : > { %4019 = vst [vmem:[%s5930_s28 + $0x78] sm:$0xff] %v3311_v2 }
 0x3e5   : > { %v3267_v23 = vpop.f32.mrf.mxu1  ;;  %v3313_v25 = vpop.f32.mrf.mxu0 }
 0x3e6   : > { %v3268_v22 = vadd.f32 %v5927_v46, %v3267_v23 }
 0x3e7   : > { %v4847_v29 = vpop.f32.mrf.mxu1  ;;  %v4854_v32 = vpop.f32.mrf.mxu0 }
 0x3e8   : > { %4018 = vst [vmem:[%s5930_s28 + $0x70] sm:$0xff] %v3268_v22 }
 0x3e9   : > { %v3270_v43 = vpop.f32.mrf.mxu1  ;;  %v3396_v11 = vpop.f32.mrf.mxu0 }
 0x3ea   : > { %v3397_v33 = vadd.f32 %v5927_v46, %v3396_v11 }
 0x3eb   : > { %v4848_v30 = vpop.f32.mrf.mxu1  ;;  %v4865_v40 = vpop.f32.mrf.mxu0 }
 0x3ec   : > { %4021 = vst [vmem:[%s5930_s28 + $0x88] sm:$0xff] %v3397_v33 }
 0x3ed   : > { %v3353_v37 = vpop.f32.mrf.mxu1  ;;  %v3399_v39 = vpop.f32.mrf.mxu0 }
 0x3ee   : > { %v3354_v41 = vadd.f32 %v5927_v46, %v3353_v37 }
 0x3ef   : > { %v4859_v15 = vpop.f32.mrf.mxu1  ;;  %v4866_v31 = vpop.f32.mrf.mxu0 }
 0x3f0   : > { %4020 = vst [vmem:[%s5930_s28 + $0x80] sm:$0xff] %v3354_v41 }
 0x3f1   : > { %v3356_v36 = vpop.f32.mrf.mxu1  ;;  %v3482_v38 = vpop.f32.mrf.mxu0 }
 0x3f2   : > { %v3483_v44 = vadd.f32 %v5927_v46, %v3482_v38 }
 0x3f3   : > { %v4860_v48 = vpop.f32.mrf.mxu1  ;;  %v4877_v51 = vpop.f32.mrf.mxu0 }
 0x3f4   : > { %4023 = vst [vmem:[%s5930_s28 + $0x98] sm:$0xff] %v3483_v44 }
 0x3f5   : > { %v3439_v21 = vpop.f32.mrf.mxu1  ;;  %v3485_v52 = vpop.f32.mrf.mxu0 }
 0x3f6   : > { %v3440_v45 = vadd.f32 %v5927_v46, %v3439_v21 }
 0x3f7   : > { %v4871_v57 = vpop.f32.mrf.mxu1  ;;  %v4878_v55 = vpop.f32.mrf.mxu0 }
 0x3f8   : > { %4022 = vst [vmem:[%s5930_s28 + $0x90] sm:$0xff] %v3440_v45 }
 0x3f9   : > { %v3442_v58 = vpop.f32.mrf.mxu1  ;;  %v3568_v59 = vpop.f32.mrf.mxu0 }
 0x3fa   : > { %v3569_v27 = vadd.f32 %v5927_v46, %v3568_v59 }
 0x3fb   : > { %v4872_v0 = vpop.f32.mrf.mxu1  ;;  %v4889_v50 = vpop.f32.mrf.mxu0 }
 0x3fc   : > { %4025 = vst [vmem:[%s5930_s28 + $0xa8] sm:$0xff] %v3569_v27 }
 0x3fd   : > { %v3525_v9 = vpop.f32.mrf.mxu1  ;;  %v3571_v60 = vpop.f32.mrf.mxu0 }
 0x3fe   : > { %v3526_v62 = vadd.f32 %v5927_v46, %v3525_v9 }
 0x3ff   : > { %v4883_v63 = vpop.f32.mrf.mxu1  ;;  %v4890_v18 = vpop.f32.mrf.mxu0 }
 0x400   : > { %4024 = vst [vmem:[%s5930_s28 + $0xa0] sm:$0xff] %v3526_v62 }
 0x401   : > { %v3528_v1 = vpop.f32.mrf.mxu1  ;;  %v3654_v16 = vpop.f32.mrf.mxu0 }
 0x402   : > { %v3655_v3 = vadd.f32 %v5927_v46, %v3654_v16 }
 0x403   : > { %v4884_v6 = vpop.f32.mrf.mxu1  ;;  %v4901_v7 = vpop.f32.mrf.mxu0 }
 0x404   : > { %4027 = vst [vmem:[%s5930_s28 + $0xb8] sm:$0xff] %v3655_v3 }
 0x405   : > { %v3611_v26 = vpop.f32.mrf.mxu1  ;;  %v3657_v35 = vpop.f32.mrf.mxu0 }
 0x406   : > { %v3612_v12 = vadd.f32 %v5927_v46, %v3611_v26 }
 0x407   : > { %v4895_v8 = vpop.f32.mrf.mxu1  ;;  %v4902_v34 = vpop.f32.mrf.mxu0 }
 0x408   : > { %4026 = vst [vmem:[%s5930_s28 + $0xb0] sm:$0xff] %v3612_v12 }
 0x409   : > { %v3614_v56 = vpop.f32.mrf.mxu1  ;;  %v3740_v10 = vpop.f32.mrf.mxu0 }
 0x40a   : > { %v3741_v61 = vadd.f32 %v5927_v46, %v3740_v10 }
 0x40b   : > { %v4896_v42 = vpop.f32.mrf.mxu1  ;;  %v4913_v53 = vpop.f32.mrf.mxu0 }
 0x40c   : > { %4029 = vst [vmem:[%s5930_s28 + $0xc8] sm:$0xff] %v3741_v61 }
 0x40d   : > { %v3697_v13 = vpop.f32.mrf.mxu1  ;;  %v3743_v5 = vpop.f32.mrf.mxu0 }
 0x40e   : > { %v3698_v14 = vadd.f32 %v5927_v46, %v3697_v13 }
 0x40f   : > { %v4907_v47 = vpop.f32.mrf.mxu1  ;;  %v4914_v19 = vpop.f32.mrf.mxu0 }
 0x410   : > { %4028 = vst [vmem:[%s5930_s28 + $0xc0] sm:$0xff] %v3698_v14 }
 0x411   : > { %v3700_v54 = vpop.f32.mrf.mxu1  ;;  %v3826_v24 = vpop.f32.mrf.mxu0 }
 0x412   : > { %v3827_v49 = vadd.f32 %v5927_v46, %v3826_v24 }
 0x413   : > { %v4908_v28 = vpop.f32.mrf.mxu1  ;;  %v4925_v20 = vpop.f32.mrf.mxu0 }
 0x414   : > { %4031 = vst [vmem:[%s5930_s28 + $0xd8] sm:$0xff] %v3827_v49 }
 0x415   : > { %v3783_v2 = vpop.f32.mrf.mxu1  ;;  %v3829_v17 = vpop.f32.mrf.mxu0 }
 0x416   : > { %v3784_v4 = vadd.f32 %v5927_v46, %v3783_v2 }
 0x417   : > { %v4919_v23 = vpop.f32.mrf.mxu1  ;;  %v4926_v25 = vpop.f32.mrf.mxu0 }
 0x418   : > { %4030 = vst [vmem:[%s5930_s28 + $0xd0] sm:$0xff] %v3784_v4 }
 0x419   : > { %v3786_v22 = vpop.f32.mrf.mxu1  ;;  %v3912_v29 = vpop.f32.mrf.mxu0 }
 0x41a   : > { %v3913_v32 = vadd.f32 %v5927_v46, %v3912_v29 }
 0x41b   : > { %v4920_v43 = vpop.f32.mrf.mxu1  ;;  %v4937_v11 = vpop.f32.mrf.mxu0 }
 0x41c   : > { %4033 = vst [vmem:[%s5930_s28 + $0xe8] sm:$0xff] %v3913_v32 }
 0x41d   : > { %v3869_v33 = vpop.f32.mrf.mxu1  ;;  %v3915_v30 = vpop.f32.mrf.mxu0 }
 0x41e   : > { %v3870_v40 = vadd.f32 %v5927_v46, %v3869_v33 }
 0x41f   : > { %v4931_v37 = vpop.f32.mrf.mxu1  ;;  %v4938_v39 = vpop.f32.mrf.mxu0 }
 0x420   : > { %4032 = vst [vmem:[%s5930_s28 + $0xe0] sm:$0xff] %v3870_v40 }
 0x421   : > { %v3872_v41 = vpop.f32.mrf.mxu1  ;;  %v3998_v15 = vpop.f32.mrf.mxu0 }
 0x422   : > { %v3999_v31 = vadd.f32 %v5927_v46, %v3998_v15 }
 0x423   : > { %v4932_v36 = vpop.f32.mrf.mxu1  ;;  %v4949_v38 = vpop.f32.mrf.mxu0 }
 0x424   : > { %4035 = vst [vmem:[%s5930_s28 + $0xf8] sm:$0xff] %v3999_v31 }
 0x425   : > { %v3955_v44 = vpop.f32.mrf.mxu1  ;;  %v4001_v48 = vpop.f32.mrf.mxu0 }
 0x426   : > { %v3956_v51 = vadd.f32 %v5927_v46, %v3955_v44 }
 0x427   : > { %v4943_v21 = vpop.f32.mrf.mxu1  ;;  %v4950_v52 = vpop.f32.mrf.mxu0 }
 0x428   : > { %4034 = vst [vmem:[%s5930_s28 + $0xf0] sm:$0xff] %v3956_v51 }
 0x429   : > { %v3958_v45 = vpop.f32.mrf.mxu1 }
 0x42a   : > { %5124 = shalt.err (!%p5121_p3)
}
 0x42b   : > { %s5125_s17 = scalar_lea.hbm %s5998_s12, 4096  ;;  %s5129_s20 = scalar_lea.hbm %s6052_s6, 8192 }
 0x42c   : > { %p5126_p2 = scmp.ne.s32.totalorder %s5998_s12, %s5125_s17  ;;  %p5130_p7 = scmp.lt.s32.totalorder %s5998_s12, %s6052_s6 }
 0x42d   : > { %p5131_p6 = scmp.lt.s32.totalorder %s5129_s20, %s5125_s17 }
 0x42e   : > { %p5127_p4 = pnand %p5126_p2, %p5263_p5 }
 0x42f   : > { %p5132_p9 = por %p5131_p6, %p5130_p7 }
 0x430   : > { %p5128_p13 = pneg %p5127_p4 }
 0x432   : > { %p5133_p10 = pnand %p5132_p9, %p5128_p13 }
 0x434   : > { %5136 = shalt.err (!%p5133_p10)
}
 0x435   : > { %s5188_s29 = smov 128   ;;  %s5189_s10 = smov 8   ;;  %v4944_v46 = vpop.f32.mrf.mxu1 }
 0x436   : > { %4959 = dma.vmem_to_hbm [thread:$0]  (%p5263_p5), %s6000_s9, 4096, %s5998_s12, %s6006_s25, %s5188_s29, %s5188_s29, %s5189_s10  }
 0x437 PF: > { %p4976_p12 = scmp.ge.s32.totalorder %s5179_s24, 2  ;;  %s4065_s11 = sand.u32 1, %s5167_s21  }
 0x438   : > { %p6062_p8 = scmp.ne.s32.totalorder %s6055_s8, 0  ;;  %s4066_s13 = scalar_lea.sflag [#allocation4], %s4065_s11 }
 0x43a   : > { %p4969_p11 = pnand %p4976_p12, %p6062_p8 }
 0x43c   : > { %p4970_p0 = pneg %p4969_p11 }
 0x43e   : > { %5162 = dma.done.wait (%p4970_p0), %s4066_s13, 4096  }
 0x43f   : > { %5164 = vsyncadd (%p4970_p0), %s4066_s13, 4294963200  ;;  %p18_p1 = scmp.ge.s32.totalorder %s5250_s27, 4   ;;  %s6063_s21 = smov %s5171_s22 }
 0x440   : > { %s6064_s22 = smov %s5175_s23  ;;  %s6065_s23 = smov %s5261_s30 }
 0x441   : > { %s6066_s24 = smov %s5250_s27  ;;  %20 = sbr.rel (!%p18_p1) target bundleno = 5 (0x5), region = 91 }
 0x446   :  { %4071 = vsyncpa [#allocation3], 1 }
 0x447   :  { %4073 = vsyncpa [#allocation3 + $0x1], 1 }
 0x448   :  { %4074 = vsyncpa [#allocation6], 1 }
 0x449   :  { %4075 = vsyncpa [#allocation4], 1 }
 0x44a   :  { %4077 = vsyncpa [#allocation4 + $0x1], 1 }

// kernel: tpu_custom_call.1
= control target key start
LH: loop header
LB: loop body
LE: loop exit
PB: predicated region body
PF: predicated region fallthrough
CT: control target
= control target key end

     0   :  { %11 = vsyncpa [#allocation3], 0  ;;  %s6046_s0 = inlined_call_operand.vmem [shape: bf16[64,8,128], index: 0, kind: input, shape index: {}]   ;;  %s6047_s1 = inlined_call_operand.vmem [shape: bf16[64,8,8], index: 1, kind: input, shape index: {}]   ;;  %s6048_s2 = inlined_call_operand.hbm [shape: bf16[128,128], index: 2, kind: input, shape index: {}]   ;;  %s6049_s3 = inlined_call_operand.hbm [shape: bf16[128,128], index: 3, kind: input, shape index: {}]   ;;  %s6050_s4 = inlined_call_operand.vmem [shape: f32[1,128], index: 4, kind: input, shape index: {}]   ;;  %s6051_s5 = inlined_call_operand.vmem [shape: f32[1,128], index: 5, kind: input, shape index: {}]   ;;  %s6052_s6 = inlined_call_operand.hbm [shape: f32[64,8,128], index: 6, kind: output, shape index: {}]  }
   0x1   :  { %12 = vsyncpa [#allocation6], 0 }
   0x2   :  { %13 = vsyncpa [#allocation4], 0 }
   0x3   :  { %15 = vsyncpa [#allocation4 + $0x1], 0  ;;  %s5225_s21 = smov 0   ;;  %s5227_s22 = smov 0  }
   0x4   :  { %s5229_s23 = smov 0   ;;  %s5231_s24 = smov 0  }
   0x5 LB: > { %s5246_s25 = sadd.s32 4294967295, %s5179_s24   ;;  %s4146_s26 = sadd.s32 4294967294, %s5179_s24   ;;  %s5179_s24 = sphi %s5231_s24, %s6066_s24   ;;  %s5175_s23 = sphi %s5229_s23, %s6065_s23   ;;  %s5171_s22 = sphi %s5227_s22, %s6064_s22   ;;  %s5167_s21 = sphi %s5225_s21, %s6063_s21  }
   0x6   : > { %s5250_s27 = sadd.s32 1, %s5179_s24   ;;  %s164_s28 = sadd.s32 1, %s5175_s23 }
   0x7   : > { %s161_s29 = ssub.s32 %s5179_s24, %s5250_s27  ;;  %p174_p0 = scmp.ne.s32.totalorder %s5175_s23, %s5171_s22 }
   0x8   : > { %p162_p1 = scmp.eq.s32.totalorder %s161_s29, 0  ;;  %p175_p2 = scmp.eq.s32.totalorder %s5246_s25, 1 }
   0x9   : > { %p180_p3 = scmp.ne.s32.totalorder %s5171_s22, %s5167_s21  ;;  %p181_p4 = scmp.eq.s32.totalorder %s4146_s26, 1 }
   0xa   : > { %s5261_s30 = scalar_select %p162_p1, %s5175_s23, %s164_s28  }
   0xb   : > { %p5263_p5 = por %p175_p2, %p174_p0  ;;  %p5267_p6 = por %p181_p4, %p180_p3 }
   0xc   : > { %p4147_p7 = scmp.ge.s32.totalorder %s5179_s24, 1  ;;  %p188_p8 = scmp.lt.s32.totalorder %s5179_s24, 3 }
   0xd   : > { %s6055_s8 = scalar_select %p5267_p6, 1, 0 }
   0xe   : > { %p6053_p9 = scmp.eq.s32.totalorder %s5246_s25, 0  ;;  %p5274_p10 = pnand %p4147_p7, %p188_p8 }
   0xf   : > { %s5181_s10 = smov [#allocation2]   ;;  %s5182_s13 = smov [#allocation5]  }
  0x10   : > { %s200_s11 = sshll.u32 %s5181_s10, 4  ;;  %p4961_p11 = pneg %p5274_p10  ;;  %s201_s11 = int_to_ptr.vmem [resolvable:$true] %s200_s11 }
  0x11   : > { %s213_s14 = sshll.u32 %s5182_s13, 4  ;;  %s5070_s15 = scalar_lea.vmem %s201_s11, 1024  ;;  %s214_s14 = int_to_ptr.vmem [resolvable:$true] %s213_s14 }
  0x12   : > { %p5282_p12 = pnand %p6053_p9, %p4961_p11  ;;  %p5071_p0 = scmp.ne.s32.totalorder %s201_s11, %s5070_s15 }
  0x13   : > { %p5078_p3 = scmp.lt.s32.totalorder %s201_s11, %s201_s11  ;;  %p5079_p4 = scmp.lt.s32.totalorder %s5070_s15, %s5070_s15 }
  0x14   : > { %p5061_p13 = pneg %p5282_p12 }
  0x15   : > { %p5080_p7 = por %p5079_p4, %p5078_p3 }
  0x16   : > { %p5073_p1 = pnand %p5071_p0, %p5061_p13 }
  0x18   : > { %p5074_p2 = pneg %p5073_p1 }
  0x1a   : > { %p5081_p8 = pnand %p5080_p7, %p5074_p2 }
  0x1c   : > { %5084 = shalt.err (!%p5081_p8)
}
  0x1d   : > { %s5183_s16 = smov 64   ;;  %s5184_s17 = smov 4  }
  0x1e   : > { %4964 = dma.hbm_to_vmem [thread:$0]  (!%p5282_p12), %s6048_s2, 1024, %s201_s11, [#allocation3], %s5183_s16, %s5183_s16, %s5184_s17  }
  0x1f   : > { %s5096_s20 = scalar_lea.vmem %s214_s14, 1024  ;;  %p5104_p9 = scmp.lt.s32.totalorder %s214_s14, %s214_s14 }
  0x20   : > { %p5097_p11 = scmp.ne.s32.totalorder %s214_s14, %s5096_s20  ;;  %p5105_p6 = scmp.lt.s32.totalorder %s5096_s20, %s5096_s20 }
  0x22   : > { %p5099_p0 = pnand %p5097_p11, %p5061_p13  ;;  %p5106_p3 = por %p5105_p6, %p5104_p9 }
  0x24   : > { %p5100_p1 = pneg %p5099_p0 }
  0x26   : > { %p5107_p2 = pnand %p5106_p3, %p5100_p1 }
  0x28   : > { %5110 = shalt.err (!%p5107_p2)
}
  0x29   : > { %4967 = dma.hbm_to_vmem [thread:$0]  (!%p5282_p12), %s6049_s3, 1024, %s214_s14, [#allocation6], %s5183_s16, %s5183_s16, %s5184_s17  }
  0x2a   : > { %253 = sbr.rel (%p5274_p10) target bundleno = 1079 (0x437), region = 44  ;;  %p6058_p4 = scmp.eq.s32.totalorder (!%p5274_p10), %s5246_s25, 0 }
  0x2f   : > { %5154 = dma.done.wait (%p6058_p4), [#allocation3], 1024   ;;  %p6059_p13 = pmov %p6058_p4 }
  0x30   : > { %p6060_p7 = pmov %p6058_p4 }
  0x31   : > { %5156 = vsyncadd (%p6059_p13), [#allocation3], 4294966272 }
  0x32   : > { %5158 = dma.done.wait (%p6060_p7), [#allocation6], 1024   ;;  %p6061_p6 = pmov %p6058_p4 }
  0x33   : > { %s4155_s29 = sshll.u32 %s5246_s25, 5  ;;  %v5017_v0 = vld [vmem:[#allocation2 + $0x38] sm:$0xff]   ;;  %v5018_v1 = vld [vmem:[#allocation2 + $0x30] sm:$0xff]   ;;  %v5019_v2 = vld [vmem:[#allocation2 + $0x28] sm:$0xff]   ;;  %v5185_v24 = vmov 0.0   ;;  %vm5186_vm0 = vmmov 0  }
  0x34   : > { %5160 = vsyncadd (%p6061_p6), [#allocation6], 4294966272  ;;  %p293_p9 = scmp.lt.s32.totalorder %s4155_s29, 63  ;;  %4471 = vmatprep.subr.bf16.mxu0 %v5017_v0  ;;  %v5020_v3 = vld [vmem:[#allocation2 + $0x20] sm:$0xff]   ;;  %v5021_v5 = vld [vmem:[#allocation2 + $0x18] sm:$0xff]   ;;  %4519 = vmatprep.subr.bf16.mxu1 %v5185_v24  ;;  %vm734_vm1 = vcmask 1043456  }
  0x35   : > { %4472 = vmatpush3.bf16.msra.mxu0 %v5017_v0  ;;  %v5022_v6 = vld [vmem:[#allocation2 + $0x10] sm:$0xff]   ;;  %v5023_v7 = vld [vmem:[#allocation2 + $0x8] sm:$0xff]   ;;  %v5024_v8 = vld [vmem:[#allocation2] sm:$0xff]   ;;  %4521 = vmatprep.mubr.msk.bf16.mxu1 %vm5186_vm0, %v5185_v24  ;;  %vm730_vm2 = vcmask 64512   ;;  %s289_s18 = sand.u32 1, %s5171_s22   ;;  %s5187_s14 = smov [#allocation7]  }
  0x36   : > { %s6068_s29 = smov (!%p293_p9, %s4155_s29), 63  ;;  %4473 = vmatprep.subr.bf16.mxu0 %v5018_v1  ;;  %s4154_s19 = sshll.u32 %s289_s18, 8 }
  0x37   : > { %s4156_s9 = sshll.u32 %s6068_s29, 2  ;;  %s5930_s28 = scalar_lea.vmem [#allocation7], %s4154_s19 }
  0x38   : > { %s5323_s12 = scalar_lea.vmem %s6046_s0, %s4156_s9  ;;  %s5352_s15 = scalar_lea.vmem %s6047_s1, %s4156_s9 }
  0x39   : > { %4474 = vmatpush3.bf16.msra.mxu0 %v5018_v1  ;;  %v5025_v4 = vld [vmem:[%s5323_s12] sm:$0xff]   ;;  %v5026_v9 = vld [vmem:[%s5323_s12 + $0x8] sm:$0xff]   ;;  %v5027_v10 = vld [vmem:[%s5323_s12 + $0x10] sm:$0xff]   ;;  %s4294_s29 = sshll.u32 %s5246_s25, 12  ;;  %s4050_s9 = sshll.u32 %s5930_s28, 4  ;;  %s6000_s9 = int_to_ptr.vmem [resolvable:$true] %s4050_s9 }
  0x3a   : > { %4475 = vmatprep.subr.bf16.mxu0 %v5019_v2  ;;  %4487 = vmatprep.mubr.bf16.mxu0 %v5025_v4  ;;  %v5028_v11 = vld [vmem:[%s5323_s12 + $0x18] sm:$0xff]   ;;  %v5029_v12 = vld [vmem:[%s5323_s12 + $0x20] sm:$0xff]   ;;  %v5030_v13 = vld [vmem:[%s5323_s12 + $0x28] sm:$0xff]   ;;  %s6006_s25 = scalar_lea.sflag [#allocation4], %s289_s18  ;;  %s5111_s13 = scalar_lea.vmem %s6000_s9, 4096 }
  0x3b   : > { %v5031_v14 = vld [vmem:[%s5323_s12 + $0x30] sm:$0xff]   ;;  %v5032_v15 = vld [vmem:[%s5323_s12 + $0x38] sm:$0xff]   ;;  %v5033_v16 = vld [vmem:[%s5323_s12 + $0x40] sm:$0xff]   ;;  %p5112_p10 = scmp.ne.s32.totalorder %s6000_s9, %s5111_s13 }
  0x3c   : > { %v5034_v17 = vld [vmem:[%s5323_s12 + $0x48] sm:$0xff]   ;;  %v5035_v18 = vld [vmem:[%s5323_s12 + $0x50] sm:$0xff]   ;;  %v5036_v19 = vld [vmem:[%s5323_s12 + $0x58] sm:$0xff]  }
  0x3d   : > { %4476 = vmatpush3.bf16.msra.mxu0 %v5019_v2  ;;  %v5037_v20 = vld [vmem:[%s5323_s12 + $0x60] sm:$0xff]   ;;  %v5038_v21 = vld [vmem:[%s5323_s12 + $0x68] sm:$0xff]   ;;  %v5039_v22 = vld [vmem:[%s5323_s12 + $0x70] sm:$0xff]   ;;  %p5113_p12 = pnand %p5112_p10, %p5263_p5 }
  0x3e   : > { %4477 = vmatprep.subr.bf16.mxu0 %v5020_v3  ;;  %v5040_v23 = vld [vmem:[%s5323_s12 + $0x78] sm:$0xff]   ;;  %v5356_v31 = vld [vmem:[%s5352_s15] sm:$0xf]  ;;  %v5370_v38 = vld [vmem:[%s5352_s15 + $0x4] sm:$0xf]  ;;  %s5998_s12 = scalar_lea.hbm %s6052_s6, %s4294_s29 }
  0x3f   : > { %v5385_v45 = vld [vmem:[%s5352_s15 + $0x8] sm:$0xf]  ;;  %v5399_v55 = vld [vmem:[%s5352_s15 + $0xc] sm:$0xf]  ;;  %v350_v57 = vld [vmem:[%s5352_s15 + $0x30] sm:$0xf]  ;;  %p5114_p8 = pneg %p5113_p12 }
  0x40   : > { %v5417_v0 = vld [vmem:[%s5352_s15 + $0x10] sm:$0xf]  ;;  %v352_v1 = vld [vmem:[%s5352_s15 + $0x38] sm:$0xf] }
  0x41   : > { %4478 = vmatpush3.bf16.msra.mxu0 %v5020_v3 }
  0x42   : > { %4479 = vmatprep.subr.bf16.mxu0 %v5021_v5 }
  0x45   : > { %4480 = vmatpush3.bf16.msra.mxu0 %v5021_v5 }
  0x46   : > { %4481 = vmatprep.subr.bf16.mxu0 %v5022_v6 }
  0x49   : > { %4482 = vmatpush3.bf16.msra.mxu0 %v5022_v6 }
  0x4a   : > { %4483 = vmatprep.subr.bf16.mxu0 %v5023_v7 }
  0x4d   : > { %4484 = vmatpush3.bf16.msra.mxu0 %v5023_v7 }
  0x4e   : > { %4485 = vmatprep.subr.bf16.mxu0 %v5024_v8 }
  0x51   : > { %4486 = vmatpush3.bf16.msra.mxu0 %v5024_v8 }
  0x52   : > { %4591 = vmatprep.subr.bf16.mxu0 %v5185_v24 }
  0x54   : > { %4488 = vmatmul.mubr.bf16.vlgmr.msra.gmra.mxu0 %v5026_v9  ;;  %v5438_v9 = vld [vmem:[%s5352_s15 + $0x14] sm:$0xf] }
  0x55   : > { %4491 = vmatprep.mubr.bf16.mxu0 %v5027_v10  ;;  %v354_v10 = vld [vmem:[%s5352_s15 + $0x40] sm:$0xf] }
  0x5c   : > { %4492 = vmatmul.mubr.bf16.gmra.mxu0 %v5028_v11 }
  0x5d   : > { %4495 = vmatprep.mubr.bf16.mxu0 %v5029_v12 }
  0x64   : > { %4496 = vmatmul.mubr.bf16.gmra.mxu0 %v5030_v13 }
  0x65   : > { %4499 = vmatprep.mubr.bf16.mxu0 %v5031_v14 }
  0x6c   : > { %4500 = vmatmul.mubr.bf16.gmra.mxu0 %v5032_v15 }
  0x6d   : > { %4503 = vmatprep.mubr.bf16.mxu0 %v5033_v16  ;;  %v5455_v16 = vld [vmem:[%s5352_s15 + $0x18] sm:$0xf] }
  0x74   : > { %4504 = vmatmul.mubr.bf16.gmra.mxu0 %v5034_v17  ;;  %v356_v17 = vld [vmem:[%s5352_s15 + $0x48] sm:$0xf] }
  0x75   : > { %4507 = vmatprep.mubr.bf16.mxu0 %v5035_v18 }
  0x7c   : > { %4508 = vmatmul.mubr.bf16.gmra.mxu0 %v5036_v19 }
  0x7d   : > { %4511 = vmatprep.mubr.bf16.mxu0 %v5037_v20 }
  0x84   : > { %4512 = vmatmul.mubr.bf16.gmra.mxu0 %v5038_v21 }
  0x85   : > { %4515 = vmatprep.mubr.bf16.mxu0 %v5039_v22 }
  0x8c   : > { %4516 = vmatmul.mubr.bf16.gmra.mxu0 %v5040_v23 }
  0x8d   : > { %4593 = vmatprep.mubr.msk.bf16.mxu0 %vm5186_vm0, %v5185_v24 }
 0x114   : > { %v4489_v25 = vpop.f32.mrf.mxu0 }
 0x115   : > { %v693_v37 = vpack.c.bf16 %v4489_v25, %v4489_v25 }
 0x116   : > { %v564_v26 = vpop.f32.mrf.mxu0 }
 0x117   : > { %v691_v27 = vpack.c.bf16 %v564_v26, %v564_v26  ;;  %v828_v41 = vsel %vm734_vm1, %v693_v37, 0  ;;  %v5476_v26 = vld [vmem:[%s5352_s15 + $0x1c] sm:$0xf] }
 0x118   : > { %v4490_v28 = vpop.f32.mrf.mxu0 }
 0x119   : > { %v736_v29 = vsel %vm734_vm1, %v691_v27, 0  ;;  %v694_v44 = vpack.c.bf16 %v4490_v28, %v4490_v28  ;;  %v358_v27 = vld [vmem:[%s5352_s15 + $0x50] sm:$0xf] }
 0x11a   : > { %v567_v30 = vpop.f32.mrf.mxu0  ;;  %4520 = vmatpush3.bf16.msra.mxu1 %v736_v29 }
 0x11b   : > { %v692_v32 = vpack.c.bf16 %v567_v30, %v567_v30  ;;  %4525 = vmatprep.subr.bf16.mxu1 %v5185_v24  ;;  %v874_v48 = vsel %vm734_vm1, %v694_v44, 0 }
 0x11c   : > { %v5359_v33 = vpop.f32.mrf.mxu0 }
 0x11d   : > { %4522 = vmatmul.mubr.msk.bf16.vlgmr.msra.gmra.mxu1 %vm730_vm2, %v5356_v31  ;;  %v782_v34 = vsel %vm734_vm1, %v692_v32, 0  ;;  %v697_v7 = vpack.c.bf16 %v5359_v33, %v5359_v33 }
 0x11e   : > { %4526 = vmatpush3.bf16.msra.mxu1 %v782_v34  ;;  %4527 = vmatprep.mubr.msk.bf16.mxu1 %vm5186_vm0, %v5185_v24  ;;  %v580_v35 = vpop.f32.mrf.mxu0  ;;  %v5493_v34 = vld [vmem:[%s5352_s15 + $0x20] sm:$0xf] }
 0x11f   : > { %4531 = vmatprep.subr.bf16.mxu1 %v5185_v24  ;;  %v695_v50 = vpack.c.bf16 %v580_v35, %v580_v35  ;;  %v1012_v12 = vsel %vm734_vm1, %v697_v7, 0  ;;  %v360_v35 = vld [vmem:[%s5352_s15 + $0x58] sm:$0xf]  ;;  %v5042_v7 = vld [vmem:[#allocation5 + $0x30] sm:$0xff]  }
 0x120   : > { %v5367_v36 = vpop.f32.mrf.mxu0 }
 0x121   : > { %v920_v58 = vsel %vm734_vm1, %v695_v50, 0  ;;  %v698_v15 = vpack.c.bf16 %v5367_v36, %v5367_v36 }
 0x122   : > { %v583_v39 = vpop.f32.mrf.mxu0 }
 0x123   : > { %v696_v63 = vpack.c.bf16 %v583_v39, %v583_v39  ;;  %v1058_v20 = vsel %vm734_vm1, %v698_v15, 0  ;;  %v5588_v15 = vld [vmem:[%s5352_s15 + $0x44] sm:$0xf] }
 0x124   : > { %v5372_v40 = vpop.f32.mrf.mxu0 }
 0x125   : > { %4528 = vmatmul.mubr.msk.bf16.vlgmr.msra.gmra.mxu1 %vm730_vm2, %v5370_v38  ;;  %v966_v4 = vsel %vm734_vm1, %v696_v63, 0  ;;  %v701_v44 = vpack.c.bf16 %v5372_v40, %v5372_v40 }
 0x126   : > { %4532 = vmatpush3.bf16.msra.mxu1 %v828_v41  ;;  %4533 = vmatprep.mubr.msk.bf16.mxu1 %vm5186_vm0, %v5185_v24  ;;  %v5379_v42 = vpop.f32.mrf.mxu0 }
 0x127   : > { %4537 = vmatprep.subr.bf16.mxu1 %v5185_v24  ;;  %v699_v21 = vpack.c.bf16 %v5379_v42, %v5379_v42  ;;  %v1196_v50 = vsel %vm734_vm1, %v701_v44, 0 }
 0x128   : > { %v5382_v43 = vpop.f32.mrf.mxu0 }
 0x129   : > { %v1104_v28 = vsel %vm734_vm1, %v699_v21, 0  ;;  %v5599_v21 = vld [vmem:[%s5352_s15 + $0x4c] sm:$0xf] }
 0x12a   : > { %v5387_v46 = vpop.f32.mrf.mxu0 }
 0x12b   : > { %v700_v33 = vpack.c.bf16 %v5387_v46, %v5387_v46 }
 0x12c   : > { %v4501_v47 = vpop.f32.mrf.mxu0 }
 0x12d   : > { %4534 = vmatmul.mubr.msk.bf16.vlgmr.msra.gmra.mxu1 %vm730_vm2, %v5385_v45  ;;  %v705_v52 = vpack.c.bf16 %v4501_v47, %v4501_v47  ;;  %v1150_v39 = vsel %vm734_vm1, %v700_v33, 0  ;;  %v5514_v47 = vld [vmem:[%s5352_s15 + $0x24] sm:$0xf] }
 0x12e   : > { %4538 = vmatpush3.bf16.msra.mxu1 %v874_v48  ;;  %4539 = vmatprep.mubr.msk.bf16.mxu1 %vm5186_vm0, %v5185_v24  ;;  %v612_v49 = vpop.f32.mrf.mxu0  ;;  %v362_v48 = vld [vmem:[%s5352_s15 + $0x60] sm:$0xf] }
 0x12f   : > { %4543 = vmatprep.subr.bf16.mxu1 %v5185_v24  ;;  %v703_v51 = vpack.c.bf16 %v612_v49, %v612_v49  ;;  %v1380_v59 = vsel %vm734_vm1, %v705_v52, 0  ;;  %v702_v52 = vpack.c.bf16 %v5382_v43, %v5382_v43 }
 0x130   : > { %v5395_v53 = vpop.f32.mrf.mxu0 }
 0x131   : > { %v1288_v54 = vsel %vm734_vm1, %v703_v51, 0 }
 0x132   : > { %v5401_v56 = vpop.f32.mrf.mxu0  ;;  %4592 = vmatpush3.bf16.msra.mxu0 %v1288_v54  ;;  %v5531_v54 = vld [vmem:[%s5352_s15 + $0x28] sm:$0xf] }
 0x133   : > { %4603 = vmatprep.subr.bf16.mxu0 %v5185_v24  ;;  %v704_v43 = vpack.c.bf16 %v5401_v56, %v5401_v56  ;;  %v706_v56 = vpack.c.bf16 %v5395_v53, %v5395_v53  ;;  %v5043_v53 = vld [vmem:[#allocation5 + $0x28] sm:$0xff]  }
 0x134   : > { %v4505_v60 = vpop.f32.mrf.mxu0 }
 0x135   : > { %4540 = vmatmul.mubr.msk.bf16.vlgmr.msra.gmra.mxu1 %vm730_vm2, %v5399_v55  ;;  %4594 = vmatmul.mubr.msk.bf16.vlgmr.msra.gmra.mxu0 %vm730_vm2, %v350_v57  ;;  %v709_v6 = vpack.c.bf16 %v4505_v60, %v4505_v60  ;;  %v364_v57 = vld [vmem:[%s5352_s15 + $0x68] sm:$0xf]  ;;  %v1334_v63 = vsel %vm734_vm1, %v704_v43, 0 }
 0x136   : > { %4544 = vmatpush3.bf16.msra.mxu1 %v920_v58  ;;  %4545 = vmatprep.mubr.msk.bf16.mxu1 %vm5186_vm0, %v5185_v24  ;;  %v628_v61 = vpop.f32.mrf.mxu0 }
 0x137   : > { %4549 = vmatprep.subr.bf16.mxu1 %v5185_v24  ;;  %4604 = vmatpush3.bf16.msra.mxu0 %v1380_v59  ;;  %v707_v62 = vpack.c.bf16 %v628_v61, %v628_v61  ;;  %v1564_v11 = vsel %vm734_vm1, %v709_v6, 0  ;;  %v1242_v59 = vsel %vm734_vm1, %v702_v52, 0  ;;  %v5548_v61 = vld [vmem:[%s5352_s15 + $0x2c] sm:$0xf]  ;;  %v368_v6 = vld [vmem:[%s5352_s15 + $0x78] sm:$0xf] }
 0x138   : > { %4605 = vmatprep.mubr.msk.bf16.mxu0 %vm5186_vm0, %v5185_v24  ;;  %4615 = vmatprep.subr.bf16.mxu0 %v5185_v24  ;;  %v5420_v2 = vpop.f32.mrf.mxu0 }
 0x139   : > { %v1472_v3 = vsel %vm734_vm1, %v707_v62, 0  ;;  %v366_v62 = vld [vmem:[%s5352_s15 + $0x70] sm:$0xf] }
 0x13a   : > { %v5430_v5 = vpop.f32.mrf.mxu0 }
 0x13c   : > { %v4509_v8 = vpop.f32.mrf.mxu0 }
 0x13d   : > { %4546 = vmatmul.mubr.msk.bf16.vlgmr.msra.gmra.mxu1 %vm730_vm2, %v5417_v0  ;;  %4606 = vmatmul.mubr.msk.bf16.vlgmr.msra.gmra.mxu0 %vm730_vm2, %v352_v1  ;;  %v713_v23 = vpack.c.bf16 %v4509_v8, %v4509_v8  ;;  %v1426_v8 = vsel %vm734_vm1, %v706_v56, 0 }
 0x13e   : > { %4550 = vmatpush3.bf16.msra.mxu1 %v966_v4  ;;  %4551 = vmatprep.mubr.msk.bf16.mxu1 %vm5186_vm0, %v5185_v24  ;;  %v644_v13 = vpop.f32.mrf.mxu0  ;;  %v5564_v4 = vld [vmem:[%s5352_s15 + $0x34] sm:$0xf] }
 0x13f   : > { %4555 = vmatprep.subr.bf16.mxu1 %v5185_v24  ;;  %4616 = vmatpush3.bf16.msra.mxu0 %v1472_v3  ;;  %v711_v14 = vpack.c.bf16 %v644_v13, %v644_v13  ;;  %v1748_v29 = vsel %vm734_vm1, %v713_v23, 0  ;;  %v5041_v3 = vld [vmem:[#allocation5 + $0x38] sm:$0xff]   ;;  %v5044_v13 = vld [vmem:[#allocation5 + $0x20] sm:$0xff]  }
 0x140   : > { %4617 = vmatprep.mubr.msk.bf16.mxu0 %vm5186_vm0, %v5185_v24  ;;  %4627 = vmatprep.subr.bf16.mxu0 %v5185_v24  ;;  %v5458_v18 = vpop.f32.mrf.mxu0 }
 0x141   : > { %v1656_v19 = vsel %vm734_vm1, %v711_v14, 0  ;;  %v710_v14 = vpack.c.bf16 %v5420_v2, %v5420_v2  ;;  %v5047_v2 = vld [vmem:[#allocation5 + $0x8] sm:$0xff]  }
 0x142   : > { %v5470_v22 = vpop.f32.mrf.mxu0 }
 0x144   : > { %v4513_v25 = vpop.f32.mrf.mxu0 }
 0x145   : > { %4552 = vmatmul.mubr.msk.bf16.vlgmr.msra.gmra.mxu1 %vm730_vm2, %v5438_v9  ;;  %4618 = vmatmul.mubr.msk.bf16.vlgmr.msra.gmra.mxu0 %vm730_vm2, %v354_v10  ;;  %v717_v42 = vpack.c.bf16 %v4513_v25, %v4513_v25  ;;  %v708_v10 = vpack.c.bf16 %v5430_v5, %v5430_v5  ;;  %v5045_v5 = vld [vmem:[#allocation5 + $0x18] sm:$0xff]   ;;  %v5048_v25 = vld [vmem:[#allocation5] sm:$0xff]  }
 0x146   : > { %4556 = vmatpush3.bf16.msra.mxu1 %v1012_v12  ;;  %4557 = vmatprep.mubr.msk.bf16.mxu1 %vm5186_vm0, %v5185_v24  ;;  %v660_v30 = vpop.f32.mrf.mxu0 }
 0x147   : > { %4561 = vmatprep.subr.bf16.mxu1 %v5185_v24  ;;  %4628 = vmatpush3.bf16.msra.mxu0 %v1564_v11  ;;  %v715_v32 = vpack.c.bf16 %v660_v30, %v660_v30  ;;  %v1932_v49 = vsel %vm734_vm1, %v717_v42, 0  ;;  %v5577_v11 = vld [vmem:[%s5352_s15 + $0x3c] sm:$0xf]  ;;  %v1518_v12 = vsel %vm734_vm1, %v708_v10, 0  ;;  %v5642_v42 = vld [vmem:[%s5352_s15 + $0x6c] sm:$0xf] }
 0x148   : > { %4629 = vmatprep.mubr.msk.bf16.mxu0 %vm5186_vm0, %v5185_v24  ;;  %4639 = vmatprep.subr.bf16.mxu0 %v5185_v24  ;;  %v5496_v36 = vpop.f32.mrf.mxu0 }
 0x149   : > { %v1840_v37 = vsel %vm734_vm1, %v715_v32, 0  ;;  %v718_v33 = vpack.c.bf16 %v5496_v36, %v5496_v36 }
 0x14a   : > { %v5506_v41 = vpop.f32.mrf.mxu0 }
 0x14c   : > { %v4517_v46 = vpop.f32.mrf.mxu0 }
 0x14d   : > { %4558 = vmatmul.mubr.msk.bf16.vlgmr.msra.gmra.mxu1 %vm730_vm2, %v5455_v16  ;;  %4630 = vmatmul.mubr.msk.bf16.vlgmr.msra.gmra.mxu0 %vm730_vm2, %v356_v17  ;;  %v721_v60 = vpack.c.bf16 %v4517_v46, %v4517_v46  ;;  %v5046_v17 = vld [vmem:[#allocation5 + $0x10] sm:$0xff]  }
 0x14e   : > { %4562 = vmatpush3.bf16.msra.mxu1 %v1058_v20  ;;  %4563 = vmatprep.mubr.msk.bf16.mxu1 %vm5186_vm0, %v5185_v24  ;;  %v676_v51 = vpop.f32.mrf.mxu0  ;;  %v712_v20 = vpack.c.bf16 %v5470_v22, %v5470_v22  ;;  %v714_v22 = vpack.c.bf16 %v5458_v18, %v5458_v18  ;;  %v5622_v18 = vld [vmem:[%s5352_s15 + $0x5c] sm:$0xf]  ;;  %v5651_v46 = vld [vmem:[%s5352_s15 + $0x74] sm:$0xf] }
 0x14f   : > { %4567 = vmatprep.subr.bf16.mxu1 %v5185_v24  ;;  %4640 = vmatpush3.bf16.msra.mxu0 %v1656_v19  ;;  %v719_v40 = vpack.c.bf16 %v676_v51, %v676_v51  ;;  %v2116_v1 = vsel %vm734_vm1, %v721_v60, 0  ;;  %v1610_v19 = vsel %vm734_vm1, %v710_v14, 0 }
 0x150   : > { %4641 = vmatprep.mubr.msk.bf16.mxu0 %vm5186_vm0, %v5185_v24  ;;  %4651 = vmatprep.subr.bf16.mxu0 %v5185_v24  ;;  %v1702_v23 = vsel %vm734_vm1, %v712_v20, 0  ;;  %v4518_v32 = vpop.f32.mrf.mxu0 }
 0x151   : > { %v2024_v58 = vsel %vm734_vm1, %v719_v40, 0  ;;  %v722_v44 = vpack.c.bf16 %v4518_v32, %v4518_v32  ;;  %v5669_v40 = vld [vmem:[%s6050_s4] ss:$0 sm:$0xff] }
 0x155   : > { %4564 = vmatmul.mubr.msk.bf16.vlgmr.msra.gmra.mxu1 %vm730_vm2, %v5476_v26  ;;  %4642 = vmatmul.mubr.msk.bf16.vlgmr.msra.gmra.mxu0 %vm730_vm2, %v358_v27  ;;  %v5610_v27 = vld [vmem:[%s5352_s15 + $0x54] sm:$0xf] }
 0x156   : > { %4568 = vmatpush3.bf16.msra.mxu1 %v1104_v28  ;;  %4569 = vmatprep.mubr.msk.bf16.mxu1 %vm5186_vm0, %v5185_v24  ;;  %v1794_v28 = vsel %vm734_vm1, %v714_v22, 0 }
 0x157   : > { %4573 = vmatprep.subr.bf16.mxu1 %v5185_v24  ;;  %4652 = vmatpush3.bf16.msra.mxu0 %v1748_v29  ;;  %v716_v29 = vpack.c.bf16 %v5506_v41, %v5506_v41 }
 0x158   : > { %4653 = vmatprep.mubr.msk.bf16.mxu0 %vm5186_vm0, %v5185_v24  ;;  %4663 = vmatprep.subr.bf16.mxu0 %v5185_v24 }
 0x159   : > { %v1886_v30 = vsel %vm734_vm1, %v716_v29, 0 }
 0x15d   : > { %4570 = vmatmul.mubr.msk.bf16.vlgmr.msra.gmra.mxu1 %vm730_vm2, %v5493_v34  ;;  %4654 = vmatmul.mubr.msk.bf16.vlgmr.msra.gmra.mxu0 %vm730_vm2, %v360_v35  ;;  %v5633_v35 = vld [vmem:[%s5352_s15 + $0x64] sm:$0xf] }
 0x15e   : > { %4574 = vmatpush3.bf16.msra.mxu1 %v1150_v39  ;;  %4575 = vmatprep.mubr.msk.bf16.mxu1 %vm5186_vm0, %v5185_v24  ;;  %v1978_v39 = vsel %vm734_vm1, %v718_v33, 0 }
 0x15f   : > { %4579 = vmatprep.subr.bf16.mxu1 %v5185_v24  ;;  %4664 = vmatpush3.bf16.msra.mxu0 %v1840_v37  ;;  %v679_v37 = vpop.f32.mrf.mxu0 }
 0x160   : > { %4665 = vmatprep.mubr.msk.bf16.mxu0 %vm5186_vm0, %v5185_v24  ;;  %4675 = vmatprep.subr.bf16.mxu0 %v5185_v24  ;;  %v720_v41 = vpack.c.bf16 %v679_v37, %v679_v37 }
 0x162   : > { %v2070_v36 = vsel %vm734_vm1, %v720_v41, 0 }
 0x165   : > { %4576 = vmatmul.mubr.msk.bf16.vlgmr.msra.gmra.mxu1 %vm730_vm2, %v5514_v47  ;;  %4666 = vmatmul.mubr.msk.bf16.vlgmr.msra.gmra.mxu0 %vm730_vm2, %v362_v48  ;;  %v2162_v48 = vsel %vm734_vm1, %v722_v44, 0 }
 0x166   : > { %4580 = vmatpush3.bf16.msra.mxu1 %v1196_v50  ;;  %4581 = vmatprep.mubr.msk.bf16.mxu1 %vm5186_vm0, %v5185_v24 }
 0x167   : > { %4585 = vmatprep.subr.bf16.mxu1 %v5185_v24  ;;  %4676 = vmatpush3.bf16.msra.mxu0 %v1932_v49  ;;  %v5660_v49 = vld [vmem:[%s5352_s15 + $0x7c] sm:$0xf] }
 0x168   : > { %4677 = vmatprep.mubr.msk.bf16.mxu0 %vm5186_vm0, %v5185_v24  ;;  %4687 = vmatprep.subr.bf16.mxu0 %v5185_v24 }
 0x16d   : > { %4582 = vmatmul.mubr.msk.bf16.vlgmr.msra.gmra.mxu1 %vm730_vm2, %v5531_v54  ;;  %4678 = vmatmul.mubr.msk.bf16.vlgmr.msra.gmra.mxu0 %vm730_vm2, %v364_v57 }
 0x16e   : > { %4586 = vmatpush3.bf16.msra.mxu1 %v1242_v59  ;;  %4587 = vmatprep.mubr.msk.bf16.mxu1 %vm5186_vm0, %v5185_v24 }
 0x16f   : > { %4597 = vmatprep.subr.bf16.mxu1 %v5185_v24  ;;  %4688 = vmatpush3.bf16.msra.mxu0 %v2024_v58 }
 0x170   : > { %4689 = vmatprep.mubr.msk.bf16.mxu0 %vm5186_vm0, %v5185_v24  ;;  %4699 = vmatprep.subr.bf16.mxu0 %v5185_v24 }
 0x175   : > { %4588 = vmatmul.mubr.msk.bf16.vlgmr.msra.gmra.mxu1 %vm730_vm2, %v5548_v61  ;;  %4690 = vmatmul.mubr.msk.bf16.vlgmr.msra.gmra.mxu0 %vm730_vm2, %v366_v62 }
 0x176   : > { %4598 = vmatpush3.bf16.msra.mxu1 %v1334_v63  ;;  %4599 = vmatprep.mubr.msk.bf16.mxu1 %vm5186_vm0, %v5185_v24 }
 0x177   : > { %4609 = vmatprep.subr.bf16.mxu1 %v5185_v24  ;;  %4700 = vmatpush3.bf16.msra.mxu0 %v2116_v1 }
 0x178   : > { %4701 = vmatprep.mubr.msk.bf16.mxu0 %vm5186_vm0, %v5185_v24  ;;  %4711 = vmatprep.subr.bf16.mxu0 %v5041_v3 }
 0x17d   : > { %4600 = vmatmul.mubr.msk.bf16.vlgmr.msra.gmra.mxu1 %vm730_vm2, %v5564_v4  ;;  %4702 = vmatmul.mubr.msk.bf16.vlgmr.msra.gmra.mxu0 %vm730_vm2, %v368_v6 }
 0x17e   : > { %4610 = vmatpush3.bf16.msra.mxu1 %v1426_v8  ;;  %4611 = vmatprep.mubr.msk.bf16.mxu1 %vm5186_vm0, %v5185_v24 }
 0x17f   : > { %4621 = vmatprep.subr.bf16.mxu1 %v5185_v24  ;;  %4712 = vmatpush3.bf16.msra.mxu0 %v5041_v3 }
 0x180   : > { %4713 = vmatprep.subr.bf16.mxu0 %v5042_v7 }
 0x183   : > { %4714 = vmatpush3.bf16.msra.mxu0 %v5042_v7 }
 0x184   : > { %4715 = vmatprep.subr.bf16.mxu0 %v5043_v53 }
 0x185   : > { %4612 = vmatmul.mubr.msk.bf16.vlgmr.msra.gmra.mxu1 %vm730_vm2, %v5577_v11 }
 0x186   : > { %4622 = vmatpush3.bf16.msra.mxu1 %v1518_v12  ;;  %4623 = vmatprep.mubr.msk.bf16.mxu1 %vm5186_vm0, %v5185_v24 }
 0x187   : > { %4633 = vmatprep.subr.bf16.mxu1 %v5185_v24  ;;  %4716 = vmatpush3.bf16.msra.mxu0 %v5043_v53 }
 0x188   : > { %4717 = vmatprep.subr.bf16.mxu0 %v5044_v13 }
 0x18b   : > { %4718 = vmatpush3.bf16.msra.mxu0 %v5044_v13 }
 0x18c   : > { %4719 = vmatprep.subr.bf16.mxu0 %v5045_v5 }
 0x18d   : > { %4624 = vmatmul.mubr.msk.bf16.vlgmr.msra.gmra.mxu1 %vm730_vm2, %v5588_v15 }
 0x18e   : > { %4634 = vmatpush3.bf16.msra.mxu1 %v1610_v19  ;;  %4635 = vmatprep.mubr.msk.bf16.mxu1 %vm5186_vm0, %v5185_v24 }
 0x18f   : > { %4645 = vmatprep.subr.bf16.mxu1 %v5185_v24  ;;  %4720 = vmatpush3.bf16.msra.mxu0 %v5045_v5 }
 0x190   : > { %4721 = vmatprep.subr.bf16.mxu0 %v5046_v17 }
 0x193   : > { %4722 = vmatpush3.bf16.msra.mxu0 %v5046_v17 }
 0x194   : > { %4723 = vmatprep.subr.bf16.mxu0 %v5047_v2 }
 0x195   : > { %4636 = vmatmul.mubr.msk.bf16.vlgmr.msra.gmra.mxu1 %vm730_vm2, %v5599_v21 }
 0x196   : > { %4646 = vmatpush3.bf16.msra.mxu1 %v1702_v23  ;;  %4647 = vmatprep.mubr.msk.bf16.mxu1 %vm5186_vm0, %v5185_v24 }
 0x197   : > { %4657 = vmatprep.subr.bf16.mxu1 %v5185_v24  ;;  %4724 = vmatpush3.bf16.msra.mxu0 %v5047_v2 }
 0x198   : > { %4725 = vmatprep.subr.bf16.mxu0 %v5048_v25 }
 0x19b   : > { %4726 = vmatpush3.bf16.msra.mxu0 %v5048_v25 }
 0x19c   : > { %4825 = vmatprep.subr.bf16.mxu0 %v5185_v24 }
 0x19d   : > { %4648 = vmatmul.mubr.msk.bf16.vlgmr.msra.gmra.mxu1 %vm730_vm2, %v5610_v27 }
 0x19e   : > { %4658 = vmatpush3.bf16.msra.mxu1 %v1794_v28  ;;  %4659 = vmatprep.mubr.msk.bf16.mxu1 %vm5186_vm0, %v5185_v24 }
 0x19f   : > { %4669 = vmatprep.subr.bf16.mxu1 %v5185_v24 }
 0x1a5   : > { %4660 = vmatmul.mubr.msk.bf16.vlgmr.msra.gmra.mxu1 %vm730_vm2, %v5622_v18 }
 0x1a6   : > { %4670 = vmatpush3.bf16.msra.mxu1 %v1886_v30  ;;  %4671 = vmatprep.mubr.msk.bf16.mxu1 %vm5186_vm0, %v5185_v24 }
 0x1a7   : > { %4681 = vmatprep.subr.bf16.mxu1 %v5185_v24 }
 0x1ad   : > { %4672 = vmatmul.mubr.msk.bf16.vlgmr.msra.gmra.mxu1 %vm730_vm2, %v5633_v35 }
 0x1ae   : > { %4682 = vmatpush3.bf16.msra.mxu1 %v1978_v39  ;;  %4683 = vmatprep.mubr.msk.bf16.mxu1 %vm5186_vm0, %v5185_v24 }
 0x1af   : > { %4693 = vmatprep.subr.bf16.mxu1 %v5185_v24 }
 0x1b5   : > { %4684 = vmatmul.mubr.msk.bf16.vlgmr.msra.gmra.mxu1 %vm730_vm2, %v5642_v42 }
 0x1b6   : > { %4694 = vmatpush3.bf16.msra.mxu1 %v2070_v36  ;;  %4695 = vmatprep.mubr.msk.bf16.mxu1 %vm5186_vm0, %v5185_v24 }
 0x1b7   : > { %4705 = vmatprep.subr.bf16.mxu1 %v5185_v24 }
 0x1bd   : > { %4696 = vmatmul.mubr.msk.bf16.vlgmr.msra.gmra.mxu1 %vm730_vm2, %v5651_v46 }
 0x1be   : > { %4706 = vmatpush3.bf16.msra.mxu1 %v2162_v48  ;;  %4707 = vmatprep.mubr.msk.bf16.mxu1 %vm5186_vm0, %v5185_v24 }
 0x1bf   : > { %4759 = vmatprep.subr.bf16.mxu1 %v5185_v24 }
 0x1c5   : > { %4708 = vmatmul.mubr.msk.bf16.vlgmr.msra.gmra.mxu1 %vm730_vm2, %v5660_v49 }
 0x1c6   : > { %4761 = vmatprep.mubr.msk.bf16.mxu1 %vm5186_vm0, %v5185_v24 }
 0x1dd   : > { %v772_v50 = vpop.f32.mrf.mxu1 }
 0x1de   : > { %v773_v58 = vadd.f32 %v5669_v40, %v772_v50 }
 0x1df   : > { %v4523_v51 = vpop.f32.mrf.mxu1 }
 0x1e0   : > { %v2204_v62 = vmax.f32 %v773_v58, 0.0 }
 0x1e1   : > { %v775_v52 = vpop.f32.mrf.mxu1 }
 0x1e3   : > { %v4524_v57 = vpop.f32.mrf.mxu1 }
 0x1e5   : > { %v818_v59 = vpop.f32.mrf.mxu1 }
 0x1e6   : > { %v819_v43 = vadd.f32 %v5669_v40, %v818_v59 }
 0x1e7   : > { %v4529_v60 = vpop.f32.mrf.mxu1 }
 0x1e8   : > { %v2205_v63 = vmax.f32 %v819_v43, 0.0 }
 0x1e9   : > { %v821_v1 = vpop.f32.mrf.mxu1 }
 0x1ea   : > { %v4278_v3 = vpack.c.bf16 %v2205_v63, %v2204_v62 }
 0x1eb   : > { %v4530_v56 = vpop.f32.mrf.mxu1 }
 0x1ec   : > { %4727 = vmatprep.mubr.bf16.mxu0 %v4278_v3 }
 0x1ed   : > { %v864_v6 = vpop.f32.mrf.mxu1 }
 0x1ee   : > { %v865_v53 = vadd.f32 %v5669_v40, %v864_v6 }
 0x1ef   : > { %v4535_v7 = vpop.f32.mrf.mxu1 }
 0x1f0   : > { %v2206_v19 = vmax.f32 %v865_v53, 0.0 }
 0x1f1   : > { %v867_v8 = vpop.f32.mrf.mxu1 }
 0x1f3   : > { %v4536_v10 = vpop.f32.mrf.mxu1 }
 0x1f5   : > { %v910_v12 = vpop.f32.mrf.mxu1  ;;  %v5674_v13 = vpop.f32.mrf.mxu0 }
 0x1f6   : > { %v911_v5 = vadd.f32 %v5669_v40, %v910_v12 }
 0x1f7   : > { %v4541_v14 = vpop.f32.mrf.mxu1  ;;  %v4595_v17 = vpop.f32.mrf.mxu0 }
 0x1f8   : > { %v2207_v20 = vmax.f32 %v911_v5, 0.0 }
 0x1f9   : > { %v913_v2 = vpop.f32.mrf.mxu1  ;;  %v1327_v23 = vpop.f32.mrf.mxu0 }
 0x1fa   : > { %v4279_v25 = vpack.c.bf16 %v2207_v20, %v2206_v19 }
 0x1fb   : > { %v4542_v22 = vpop.f32.mrf.mxu1  ;;  %v4596_v28 = vpop.f32.mrf.mxu0 }
 0x1fc   : > { %4728 = vmatmul.mubr.bf16.vlgmr.msra.gmra.mxu0 %v4279_v25 }
 0x1fd   : > { %v956_v29 = vpop.f32.mrf.mxu1  ;;  %v5677_v30 = vpop.f32.mrf.mxu0 }
 0x1fe   : > { %v957_v44 = vadd.f32 %v5669_v40, %v956_v29 }
 0x1ff   : > { %v4547_v32 = vpop.f32.mrf.mxu1  ;;  %v4607_v33 = vpop.f32.mrf.mxu0 }
 0x200   : > { %v2208_v58 = vmax.f32 %v957_v44, 0.0 }
 0x201   : > { %v959_v37 = vpop.f32.mrf.mxu1  ;;  %v1419_v39 = vpop.f32.mrf.mxu0 }
 0x203   : > { %v4548_v41 = vpop.f32.mrf.mxu1  ;;  %v4608_v36 = vpop.f32.mrf.mxu0 }
 0x205   : > { %v1002_v48 = vpop.f32.mrf.mxu1  ;;  %v5680_v50 = vpop.f32.mrf.mxu0 }
 0x206   : > { %v1003_v51 = vadd.f32 %v5669_v40, %v1002_v48 }
 0x207   : > { %v4553_v52 = vpop.f32.mrf.mxu1  ;;  %v4619_v57 = vpop.f32.mrf.mxu0 }
 0x208   : > { %v2209_v59 = vmax.f32 %v1003_v51, 0.0 }
 0x209   : > { %v1005_v43 = vpop.f32.mrf.mxu1  ;;  %v1511_v60 = vpop.f32.mrf.mxu0 }
 0x20a   : > { %v4280_v62 = vpack.c.bf16 %v2209_v59, %v2208_v58 }
 0x20b   : > { %v4554_v63 = vpop.f32.mrf.mxu1  ;;  %v4620_v1 = vpop.f32.mrf.mxu0 }
 0x20c   : > { %4731 = vmatprep.mubr.bf16.mxu0 %v4280_v62 }
 0x20d   : > { %v1048_v3 = vpop.f32.mrf.mxu1  ;;  %v5683_v56 = vpop.f32.mrf.mxu0 }
 0x20e   : > { %v1049_v5 = vadd.f32 %v5669_v40, %v1048_v3 }
 0x20f   : > { %v4559_v6 = vpop.f32.mrf.mxu1  ;;  %v4631_v7 = vpop.f32.mrf.mxu0 }
 0x210   : > { %v2210_v23 = vmax.f32 %v1049_v5, 0.0 }
 0x211   : > { %v1051_v8 = vpop.f32.mrf.mxu1  ;;  %v1603_v10 = vpop.f32.mrf.mxu0 }
 0x213   : > { %v4560_v53 = vpop.f32.mrf.mxu1  ;;  %v4632_v12 = vpop.f32.mrf.mxu0 }
 0x215   : > { %v1094_v14 = vpop.f32.mrf.mxu1  ;;  %v5686_v17 = vpop.f32.mrf.mxu0 }
 0x216   : > { %v1095_v19 = vadd.f32 %v5669_v40, %v1094_v14 }
 0x217   : > { %v4565_v20 = vpop.f32.mrf.mxu1  ;;  %v4643_v2 = vpop.f32.mrf.mxu0 }
 0x218   : > { %v2211_v25 = vmax.f32 %v1095_v19, 0.0 }
 0x219   : > { %v1097_v22 = vpop.f32.mrf.mxu1  ;;  %v1695_v28 = vpop.f32.mrf.mxu0 }
 0x21a   : > { %v4281_v29 = vpack.c.bf16 %v2211_v25, %v2210_v23 }
 0x21b   : > { %v4566_v32 = vpop.f32.mrf.mxu1  ;;  %v4644_v33 = vpop.f32.mrf.mxu0 }
 0x21c   : > { %4732 = vmatmul.mubr.bf16.gmra.mxu0 %v4281_v29 }
 0x21d   : > { %v1140_v37 = vpop.f32.mrf.mxu1  ;;  %v5689_v39 = vpop.f32.mrf.mxu0 }
 0x21e   : > { %v1141_v57 = vadd.f32 %v5669_v40, %v1140_v37 }
 0x21f   : > { %v4571_v41 = vpop.f32.mrf.mxu1  ;;  %v4655_v36 = vpop.f32.mrf.mxu0 }
 0x220   : > { %v2212_v63 = vmax.f32 %v1141_v57, 0.0 }
 0x221   : > { %v1143_v44 = vpop.f32.mrf.mxu1  ;;  %v1787_v48 = vpop.f32.mrf.mxu0 }
 0x223   : > { %v4572_v51 = vpop.f32.mrf.mxu1  ;;  %v4656_v52 = vpop.f32.mrf.mxu0 }
 0x224   : > { %v1325_v51 = vadd.f32 %v5669_v40, %v5674_v13 }
 0x225   : > { %v1186_v58 = vpop.f32.mrf.mxu1  ;;  %v5692_v59 = vpop.f32.mrf.mxu0 }
 0x226   : > { %v1187_v43 = vadd.f32 %v5669_v40, %v1186_v58 }
 0x227   : > { %v4577_v60 = vpop.f32.mrf.mxu1  ;;  %v4667_v62 = vpop.f32.mrf.mxu0 }
 0x228   : > { %v2213_v1 = vmax.f32 %v1187_v43, 0.0  ;;  %v2216_v60 = vmax.f32 %v1325_v51, 0.0 }
 0x229   : > { %v1189_v3 = vpop.f32.mrf.mxu1  ;;  %v1879_v6 = vpop.f32.mrf.mxu0 }
 0x22a   : > { %v4282_v7 = vpack.c.bf16 %v2213_v1, %v2212_v63 }
 0x22b   : > { %v4578_v8 = vpop.f32.mrf.mxu1  ;;  %v4668_v10 = vpop.f32.mrf.mxu0 }
 0x22c   : > { %4735 = vmatprep.mubr.bf16.mxu0 %v4282_v7  ;;  %v1417_v10 = vadd.f32 %v5669_v40, %v5677_v30 }
 0x22d   : > { %v1232_v53 = vpop.f32.mrf.mxu1  ;;  %v5695_v12 = vpop.f32.mrf.mxu0 }
 0x22e   : > { %v1233_v25 = vadd.f32 %v5669_v40, %v1232_v53 }
 0x22f   : > { %v4583_v5 = vpop.f32.mrf.mxu1  ;;  %v4679_v14 = vpop.f32.mrf.mxu0 }
 0x230   : > { %v2214_v37 = vmax.f32 %v1233_v25, 0.0  ;;  %v2218_v14 = vmax.f32 %v1417_v10, 0.0 }
 0x231   : > { %v1235_v19 = vpop.f32.mrf.mxu1  ;;  %v1971_v20 = vpop.f32.mrf.mxu0 }
 0x233   : > { %v4584_v2 = vpop.f32.mrf.mxu1  ;;  %v4680_v23 = vpop.f32.mrf.mxu0 }
 0x235   : > { %v1278_v22 = vpop.f32.mrf.mxu1  ;;  %v5698_v28 = vpop.f32.mrf.mxu0 }
 0x236   : > { %v1279_v29 = vadd.f32 %v5669_v40, %v1278_v22  ;;  %v1509_v22 = vadd.f32 %v5669_v40, %v5680_v50 }
 0x237   : > { %v4589_v32 = vpop.f32.mrf.mxu1  ;;  %v4691_v33 = vpop.f32.mrf.mxu0 }
 0x238   : > { %v2215_v41 = vmax.f32 %v1279_v29, 0.0  ;;  %v2220_v33 = vmax.f32 %v1509_v22, 0.0 }
 0x239   : > { %v1281_v36 = vpop.f32.mrf.mxu1  ;;  %v2063_v44 = vpop.f32.mrf.mxu0 }
 0x23a   : > { %v4283_v48 = vpack.c.bf16 %v2215_v41, %v2214_v37 }
 0x23b   : > { %v4590_v52 = vpop.f32.mrf.mxu1  ;;  %v4692_v57 = vpop.f32.mrf.mxu0 }
 0x23c   : > { %4736 = vmatmul.mubr.bf16.gmra.mxu0 %v4283_v48  ;;  %v1601_v48 = vadd.f32 %v5669_v40, %v5683_v56 }
 0x23d   : > { %v1370_v58 = vpop.f32.mrf.mxu1  ;;  %v5703_v43 = vpop.f32.mrf.mxu0 }
 0x23e   : > { %v1371_v62 = vadd.f32 %v5669_v40, %v1370_v58  ;;  %v2222_v57 = vmax.f32 %v1601_v48, 0.0  ;;  %v1969_v48 = vadd.f32 %v5669_v40, %v5695_v12 }
 0x23f   : > { %v4601_v63 = vpop.f32.mrf.mxu1  ;;  %v4703_v1 = vpop.f32.mrf.mxu0 }
 0x240   : > { %v2217_v3 = vmax.f32 %v1371_v62, 0.0  ;;  %v1693_v1 = vadd.f32 %v5669_v40, %v5686_v17 }
 0x241   : > { %v1373_v6 = vpop.f32.mrf.mxu1  ;;  %v2155_v7 = vpop.f32.mrf.mxu0 }
 0x242   : > { %v4284_v8 = vpack.c.bf16 %v2217_v3, %v2216_v60  ;;  %v2224_v7 = vmax.f32 %v1693_v1, 0.0 }
 0x243   : > { %v4602_v53 = vpop.f32.mrf.mxu1  ;;  %v4704_v13 = vpop.f32.mrf.mxu0 }
 0x244   : > { %4739 = vmatprep.mubr.bf16.mxu0 %v4284_v8 }
 0x245   : > { %v1462_v5 = vpop.f32.mrf.mxu1 }
 0x246   : > { %v1463_v19 = vadd.f32 %v5669_v40, %v1462_v5  ;;  %v1785_v5 = vadd.f32 %v5669_v40, %v5689_v39 }
 0x247   : > { %v4613_v20 = vpop.f32.mrf.mxu1 }
 0x248   : > { %v2219_v2 = vmax.f32 %v1463_v19, 0.0  ;;  %v2226_v20 = vmax.f32 %v1785_v5, 0.0 }
 0x249   : > { %v1465_v23 = vpop.f32.mrf.mxu1 }
 0x24a   : > { %v4285_v25 = vpack.c.bf16 %v2219_v2, %v2218_v14 }
 0x24b   : > { %v4614_v29 = vpop.f32.mrf.mxu1 }
 0x24c   : > { %4740 = vmatmul.mubr.bf16.gmra.mxu0 %v4285_v25  ;;  %v1877_v29 = vadd.f32 %v5669_v40, %v5692_v59 }
 0x24d   : > { %v1554_v32 = vpop.f32.mrf.mxu1 }
 0x24e   : > { %v1555_v30 = vadd.f32 %v5669_v40, %v1554_v32 }
 0x24f   : > { %v4625_v37 = vpop.f32.mrf.mxu1 }
 0x250   : > { %v2221_v41 = vmax.f32 %v1555_v30, 0.0  ;;  %v2228_v30 = vmax.f32 %v1877_v29, 0.0 }
 0x251   : > { %v1557_v36 = vpop.f32.mrf.mxu1 }
 0x252   : > { %v4286_v44 = vpack.c.bf16 %v2221_v41, %v2220_v33 }
 0x253   : > { %v4626_v51 = vpop.f32.mrf.mxu1 }
 0x254   : > { %4743 = vmatprep.mubr.bf16.mxu0 %v4286_v44 }
 0x255   : > { %v1646_v52 = vpop.f32.mrf.mxu1 }
 0x256   : > { %v1647_v58 = vadd.f32 %v5669_v40, %v1646_v52 }
 0x257   : > { %v4637_v50 = vpop.f32.mrf.mxu1 }
 0x258   : > { %v2223_v60 = vmax.f32 %v1647_v58, 0.0 }
 0x259   : > { %v1649_v62 = vpop.f32.mrf.mxu1 }
 0x25a   : > { %v4287_v63 = vpack.c.bf16 %v2223_v60, %v2222_v57  ;;  %v2230_v57 = vmax.f32 %v1969_v48, 0.0 }
 0x25b   : > { %v4638_v3 = vpop.f32.mrf.mxu1 }
 0x25c   : > { %4744 = vmatmul.mubr.bf16.gmra.mxu0 %v4287_v63  ;;  %v2061_v63 = vadd.f32 %v5669_v40, %v5698_v28 }
 0x25d   : > { %v1738_v6 = vpop.f32.mrf.mxu1 }
 0x25e   : > { %v1739_v8 = vadd.f32 %v5669_v40, %v1738_v6  ;;  %v2232_v6 = vmax.f32 %v2061_v63, 0.0 }
 0x25f   : > { %v4649_v56 = vpop.f32.mrf.mxu1 }
 0x260   : > { %v2225_v10 = vmax.f32 %v1739_v8, 0.0 }
 0x261   : > { %v1741_v53 = vpop.f32.mrf.mxu1 }
 0x262   : > { %v4288_v13 = vpack.c.bf16 %v2225_v10, %v2224_v7  ;;  %v2153_v53 = vadd.f32 %v5669_v40, %v5703_v43 }
 0x263   : > { %v4650_v14 = vpop.f32.mrf.mxu1 }
 0x264   : > { %4747 = vmatprep.mubr.bf16.mxu0 %v4288_v13  ;;  %v2234_v14 = vmax.f32 %v2153_v53, 0.0 }
 0x265   : > { %v1830_v19 = vpop.f32.mrf.mxu1 }
 0x266   : > { %v1831_v2 = vadd.f32 %v5669_v40, %v1830_v19 }
 0x267   : > { %v4661_v17 = vpop.f32.mrf.mxu1 }
 0x268   : > { %v2227_v23 = vmax.f32 %v1831_v2, 0.0 }
 0x269   : > { %v1833_v25 = vpop.f32.mrf.mxu1 }
 0x26a   : > { %v4289_v22 = vpack.c.bf16 %v2227_v23, %v2226_v20 }
 0x26b   : > { %v4662_v32 = vpop.f32.mrf.mxu1 }
 0x26c   : > { %4748 = vmatmul.mubr.bf16.gmra.mxu0 %v4289_v22 }
 0x26d   : > { %v1922_v33 = vpop.f32.mrf.mxu1 }
 0x26e   : > { %v1923_v37 = vadd.f32 %v5669_v40, %v1922_v33 }
 0x26f   : > { %v4673_v39 = vpop.f32.mrf.mxu1 }
 0x270   : > { %v2229_v41 = vmax.f32 %v1923_v37, 0.0 }
 0x271   : > { %v1925_v36 = vpop.f32.mrf.mxu1 }
 0x272   : > { %v4290_v44 = vpack.c.bf16 %v2229_v41, %v2228_v30 }
 0x273   : > { %v4674_v51 = vpop.f32.mrf.mxu1 }
 0x274   : > { %4751 = vmatprep.mubr.bf16.mxu0 %v4290_v44 }
 0x275   : > { %v2014_v52 = vpop.f32.mrf.mxu1 }
 0x276   : > { %v2015_v58 = vadd.f32 %v5669_v40, %v2014_v52 }
 0x277   : > { %v4685_v59 = vpop.f32.mrf.mxu1 }
 0x278   : > { %v2231_v50 = vmax.f32 %v2015_v58, 0.0 }
 0x279   : > { %v2017_v60 = vpop.f32.mrf.mxu1 }
 0x27a   : > { %v4291_v62 = vpack.c.bf16 %v2231_v50, %v2230_v57 }
 0x27b   : > { %v4686_v1 = vpop.f32.mrf.mxu1 }
 0x27c   : > { %4752 = vmatmul.mubr.bf16.gmra.mxu0 %v4291_v62 }
 0x27d   : > { %v2106_v3 = vpop.f32.mrf.mxu1 }
 0x27e   : > { %v2107_v7 = vadd.f32 %v5669_v40, %v2106_v3 }
 0x27f   : > { %v4697_v12 = vpop.f32.mrf.mxu1 }
 0x280   : > { %v2233_v8 = vmax.f32 %v2107_v7, 0.0 }
 0x281   : > { %v2109_v56 = vpop.f32.mrf.mxu1 }
 0x282   : > { %v4292_v10 = vpack.c.bf16 %v2233_v8, %v2232_v6 }
 0x283   : > { %v4698_v13 = vpop.f32.mrf.mxu1 }
 0x284   : > { %4755 = vmatprep.mubr.bf16.mxu0 %v4292_v10 }
 0x285   : > { %v2198_v5 = vpop.f32.mrf.mxu1 }
 0x286   : > { %v2199_v19 = vadd.f32 %v5669_v40, %v2198_v5 }
 0x287   : > { %v4709_v28 = vpop.f32.mrf.mxu1 }
 0x288   : > { %v2235_v20 = vmax.f32 %v2199_v19, 0.0 }
 0x289   : > { %v2201_v2 = vpop.f32.mrf.mxu1 }
 0x28a   : > { %v4293_v17 = vpack.c.bf16 %v2235_v20, %v2234_v14  ;;  %v5049_v20 = vld [vmem:[%s5352_s15 + $0x30] sm:$0xf] }
 0x28b   : > { %v4710_v23 = vpop.f32.mrf.mxu1 }
 0x28c   : > { %4756 = vmatmul.mubr.bf16.gmra.mxu0 %v4293_v17 }
 0x28d   : > { %4827 = vmatprep.mubr.msk.bf16.mxu0 %vm5186_vm0, %v5185_v24 }
 0x2bc   : > { %v4729_v25 = vpop.f32.mrf.mxu0 }
 0x2bd   : > { %v2591_v37 = vpack.c.bf16 %v4729_v25, %v4729_v25 }
 0x2be   : > { %v2462_v22 = vpop.f32.mrf.mxu0 }
 0x2bf   : > { %v2589_v29 = vpack.c.bf16 %v2462_v22, %v2462_v22  ;;  %v2715_v39 = vsel %vm734_vm1, %v2591_v37, 0  ;;  %v5051_v37 = vld [vmem:[%s5352_s15 + $0x40] sm:$0xf] }
 0x2c0   : > { %v4730_v32 = vpop.f32.mrf.mxu0 }
 0x2c1   : > { %v2629_v43 = vsel %vm734_vm1, %v2589_v29, 0  ;;  %v2592_v41 = vpack.c.bf16 %v4730_v32, %v4730_v32 }
 0x2c2   : > { %v2465_v33 = vpop.f32.mrf.mxu0  ;;  %4760 = vmatpush3.bf16.msra.mxu1 %v2629_v43  ;;  %v5050_v43 = vld [vmem:[%s5352_s15 + $0x38] sm:$0xf] }
 0x2c3   : > { %v2590_v30 = vpack.c.bf16 %v2465_v33, %v2465_v33  ;;  %4765 = vmatprep.subr.bf16.mxu1 %v5185_v24 }
 0x2c5   : > { %v2672_v40 = vsel %vm734_vm1, %v2590_v30, 0  ;;  %4762 = vmatmul.mubr.msk.bf16.vlgmr.msra.gmra.mxu1 %vm730_vm2, %v5356_v31  ;;  %v2758_v31 = vsel %vm734_vm1, %v2592_v41, 0 }
 0x2c6   : > { %4766 = vmatpush3.bf16.msra.mxu1 %v2672_v40  ;;  %4767 = vmatprep.mubr.msk.bf16.mxu1 %vm5186_vm0, %v5185_v24 }
 0x2c7   : > { %4771 = vmatprep.subr.bf16.mxu1 %v5185_v24 }
 0x2cd   : > { %4768 = vmatmul.mubr.msk.bf16.vlgmr.msra.gmra.mxu1 %vm730_vm2, %v5370_v38 }
 0x2ce   : > { %4772 = vmatpush3.bf16.msra.mxu1 %v2715_v39  ;;  %4773 = vmatprep.mubr.msk.bf16.mxu1 %vm5186_vm0, %v5185_v24 }
 0x2cf   : > { %4777 = vmatprep.subr.bf16.mxu1 %v5185_v24 }
 0x2d5   : > { %4774 = vmatmul.mubr.msk.bf16.vlgmr.msra.gmra.mxu1 %vm730_vm2, %v5385_v45 }
 0x2d6   : > { %4778 = vmatpush3.bf16.msra.mxu1 %v2758_v31  ;;  %4779 = vmatprep.mubr.msk.bf16.mxu1 %vm5186_vm0, %v5185_v24 }
 0x2d7   : > { %4783 = vmatprep.subr.bf16.mxu1 %v5185_v24 }
 0x2dc   : > { %v4733_v36 = vpop.f32.mrf.mxu0 }
 0x2dd   : > { %4780 = vmatmul.mubr.msk.bf16.vlgmr.msra.gmra.mxu1 %vm730_vm2, %v5399_v55  ;;  %v2595_v55 = vpack.c.bf16 %v4733_v36, %v4733_v36 }
 0x2de   : > { %v2478_v38 = vpop.f32.mrf.mxu0  ;;  %4785 = vmatprep.mubr.msk.bf16.mxu1 %vm5186_vm0, %v5185_v24 }
 0x2df   : > { %v2593_v44 = vpack.c.bf16 %v2478_v38, %v2478_v38  ;;  %v2887_v58 = vsel %vm734_vm1, %v2595_v55, 0  ;;  %v5053_v55 = vld [vmem:[%s5352_s15 + $0x50] sm:$0xf] }
 0x2e0   : > { %v4734_v48 = vpop.f32.mrf.mxu0 }
 0x2e1   : > { %v2801_v51 = vsel %vm734_vm1, %v2593_v44, 0  ;;  %v2596_v59 = vpack.c.bf16 %v4734_v48, %v4734_v48 }
 0x2e2   : > { %v2481_v52 = vpop.f32.mrf.mxu0  ;;  %4784 = vmatpush3.bf16.msra.mxu1 %v2801_v51  ;;  %v5052_v51 = vld [vmem:[%s5352_s15 + $0x48] sm:$0xf] }
 0x2e3   : > { %v2594_v45 = vpack.c.bf16 %v2481_v52, %v2481_v52  ;;  %4789 = vmatprep.subr.bf16.mxu1 %v5185_v24 }
 0x2e5   : > { %v2844_v57 = vsel %vm734_vm1, %v2594_v45, 0  ;;  %4786 = vmatmul.mubr.msk.bf16.vlgmr.msra.gmra.mxu1 %vm730_vm2, %v5417_v0  ;;  %v2930_v0 = vsel %vm734_vm1, %v2596_v59, 0 }
 0x2e6   : > { %4790 = vmatpush3.bf16.msra.mxu1 %v2844_v57  ;;  %4791 = vmatprep.mubr.msk.bf16.mxu1 %vm5186_vm0, %v5185_v24 }
 0x2e7   : > { %4795 = vmatprep.subr.bf16.mxu1 %v5185_v24 }
 0x2ed   : > { %4792 = vmatmul.mubr.msk.bf16.vlgmr.msra.gmra.mxu1 %vm730_vm2, %v5438_v9 }
 0x2ee   : > { %4796 = vmatpush3.bf16.msra.mxu1 %v2887_v58  ;;  %4797 = vmatprep.mubr.msk.bf16.mxu1 %vm5186_vm0, %v5185_v24 }
 0x2ef   : > { %4801 = vmatprep.subr.bf16.mxu1 %v5185_v24 }
 0x2f5   : > { %4798 = vmatmul.mubr.msk.bf16.vlgmr.msra.gmra.mxu1 %vm730_vm2, %v5455_v16 }
 0x2f6   : > { %4802 = vmatpush3.bf16.msra.mxu1 %v2930_v0  ;;  %4803 = vmatprep.mubr.msk.bf16.mxu1 %vm5186_vm0, %v5185_v24 }
 0x2f7   : > { %4807 = vmatprep.subr.bf16.mxu1 %v5185_v24 }
 0x2fc   : > { %v4737_v50 = vpop.f32.mrf.mxu0 }
 0x2fd   : > { %4804 = vmatmul.mubr.msk.bf16.vlgmr.msra.gmra.mxu1 %vm730_vm2, %v5476_v26  ;;  %v2599_v26 = vpack.c.bf16 %v4737_v50, %v4737_v50 }
 0x2fe   : > { %v2494_v9 = vpop.f32.mrf.mxu0  ;;  %4809 = vmatprep.mubr.msk.bf16.mxu1 %vm5186_vm0, %v5185_v24 }
 0x2ff   : > { %v2597_v60 = vpack.c.bf16 %v2494_v9, %v2494_v9  ;;  %v3059_v8 = vsel %vm734_vm1, %v2599_v26, 0 }
 0x300   : > { %v4738_v62 = vpop.f32.mrf.mxu0 }
 0x301   : > { %v2973_v63 = vsel %vm734_vm1, %v2597_v60, 0  ;;  %v2600_v1 = vpack.c.bf16 %v4738_v62, %v4738_v62 }
 0x302   : > { %v2497_v16 = vpop.f32.mrf.mxu0  ;;  %4808 = vmatpush3.bf16.msra.mxu1 %v2973_v63  ;;  %v5054_v63 = vld [vmem:[%s5352_s15 + $0x58] sm:$0xf] }
 0x303   : > { %v3102_v3 = vsel %vm734_vm1, %v2600_v1, 0  ;;  %v2598_v6 = vpack.c.bf16 %v2497_v16, %v2497_v16  ;;  %4813 = vmatprep.subr.bf16.mxu1 %v5185_v24 }
 0x304   : > { %4826 = vmatpush3.bf16.msra.mxu0 %v3102_v3 }
 0x305   : > { %v3016_v7 = vsel %vm734_vm1, %v2598_v6, 0  ;;  %4810 = vmatmul.mubr.msk.bf16.vlgmr.msra.gmra.mxu1 %vm730_vm2, %v5493_v34  ;;  %4837 = vmatprep.subr.bf16.mxu0 %v5185_v24  ;;  %v5055_v6 = vld [vmem:[%s5352_s15 + $0x60] sm:$0xf] }
 0x306   : > { %4814 = vmatpush3.bf16.msra.mxu1 %v3016_v7  ;;  %4815 = vmatprep.mubr.msk.bf16.mxu1 %vm5186_vm0, %v5185_v24 }
 0x307   : > { %4819 = vmatprep.subr.bf16.mxu1 %v5185_v24  ;;  %4828 = vmatmul.mubr.msk.bf16.vlgmr.msra.gmra.mxu0 %vm730_vm2, %v5548_v61 }
 0x308   : > { %4839 = vmatprep.mubr.msk.bf16.mxu0 %vm5186_vm0, %v5185_v24 }
 0x30c   : > { %v4741_v12 = vpop.f32.mrf.mxu0 }
 0x30d   : > { %4816 = vmatmul.mubr.msk.bf16.vlgmr.msra.gmra.mxu1 %vm730_vm2, %v5514_v47  ;;  %v2603_v47 = vpack.c.bf16 %v4741_v12, %v4741_v12 }
 0x30e   : > { %4820 = vmatpush3.bf16.msra.mxu1 %v3059_v8  ;;  %v2510_v34 = vpop.f32.mrf.mxu0  ;;  %4821 = vmatprep.mubr.msk.bf16.mxu1 %vm5186_vm0, %v5185_v24 }
 0x30f   : > { %v2601_v56 = vpack.c.bf16 %v2510_v34, %v2510_v34  ;;  %4831 = vmatprep.subr.bf16.mxu1 %v5185_v24  ;;  %v3231_v28 = vsel %vm734_vm1, %v2603_v47, 0 }
 0x310   : > { %v4742_v10 = vpop.f32.mrf.mxu0 }
 0x311   : > { %v3145_v53 = vsel %vm734_vm1, %v2601_v56, 0  ;;  %v2604_v5 = vpack.c.bf16 %v4742_v10, %v4742_v10 }
 0x312   : > { %v2513_v61 = vpop.f32.mrf.mxu0 }
 0x313   : > { %v2602_v13 = vpack.c.bf16 %v2513_v61, %v2513_v61  ;;  %v3274_v19 = vsel %vm734_vm1, %v2604_v5, 0  ;;  %v5056_v61 = vld [vmem:[%s5352_s15 + $0x68] sm:$0xf]  ;;  %v5057_v5 = vld [vmem:[%s5352_s15 + $0x70] sm:$0xf] }
 0x315   : > { %v3188_v14 = vsel %vm734_vm1, %v2602_v13, 0  ;;  %4822 = vmatmul.mubr.msk.bf16.vlgmr.msra.gmra.mxu1 %vm730_vm2, %v5531_v54 }
 0x316   : > { %4832 = vmatpush3.bf16.msra.mxu1 %v3145_v53  ;;  %4838 = vmatpush3.bf16.msra.mxu0 %v3188_v14  ;;  %v5058_v14 = vld [vmem:[%s5352_s15 + $0x78] sm:$0xf]  ;;  %s5115_s15 = sshll.u32 %s5187_s14, 4  ;;  %s5116_s15 = int_to_ptr.vmem [resolvable:$false] %s5115_s15 }
 0x317   : > { %4833 = vmatprep.mubr.msk.bf16.mxu1 %vm5186_vm0, %v5185_v24  ;;  %4843 = vmatprep.subr.bf16.mxu1 %v5185_v24  ;;  %s5117_s16 = scalar_lea.vmem %s5116_s15, 8192  ;;  %p5118_p11 = scmp.lt.s32.totalorder %s6000_s9, %s5116_s15 }
 0x318   : > { %4849 = vmatprep.subr.bf16.mxu0 %v5185_v24  ;;  %p5119_p0 = scmp.lt.s32.totalorder %s5117_s16, %s5111_s13 }
 0x319   : > { %4840 = vmatmul.mubr.msk.bf16.vlgmr.msra.gmra.mxu0 %vm730_vm2, %v5564_v4 }
 0x31a   : > { %4850 = vmatpush3.bf16.msra.mxu0 %v3274_v19  ;;  %4851 = vmatprep.mubr.msk.bf16.mxu0 %vm5186_vm0, %v5185_v24  ;;  %p5120_p1 = por %p5119_p0, %p5118_p11 }
 0x31b   : > { %4861 = vmatprep.subr.bf16.mxu0 %v5185_v24 }
 0x31c   : > { %v4745_v54 = vpop.f32.mrf.mxu0  ;;  %p5121_p3 = pnand %p5120_p1, %p5114_p8 }
 0x31d   : > { %4834 = vmatmul.mubr.msk.bf16.vlgmr.msra.gmra.mxu1 %vm730_vm2, %v5049_v20 }
 0x31e   : > { %4844 = vmatpush3.bf16.msra.mxu1 %v3231_v28  ;;  %v2526_v2 = vpop.f32.mrf.mxu0  ;;  %4845 = vmatprep.mubr.msk.bf16.mxu1 %vm5186_vm0, %v5185_v24 }
 0x31f   : > { %v2605_v17 = vpack.c.bf16 %v2526_v2, %v2526_v2  ;;  %4855 = vmatprep.subr.bf16.mxu1 %v5185_v24 }
 0x320   : > { %v4746_v4 = vpop.f32.mrf.mxu0 }
 0x321   : > { %4852 = vmatmul.mubr.msk.bf16.vlgmr.msra.gmra.mxu0 %vm730_vm2, %v5577_v11  ;;  %v3317_v25 = vsel %vm734_vm1, %v2605_v17, 0  ;;  %v2608_v29 = vpack.c.bf16 %v4746_v4, %v4746_v4  ;;  %v2607_v11 = vpack.c.bf16 %v4745_v54, %v4745_v54 }
 0x322   : > { %v2529_v23 = vpop.f32.mrf.mxu0  ;;  %4863 = vmatprep.mubr.msk.bf16.mxu0 %vm5186_vm0, %v5185_v24 }
 0x323   : > { %v2606_v22 = vpack.c.bf16 %v2529_v23, %v2529_v23  ;;  %v3446_v33 = vsel %vm734_vm1, %v2608_v29, 0  ;;  %v3403_v40 = vsel %vm734_vm1, %v2607_v11, 0 }
 0x325   : > { %v3360_v32 = vsel %vm734_vm1, %v2606_v22, 0  ;;  %4846 = vmatmul.mubr.msk.bf16.vlgmr.msra.gmra.mxu1 %vm730_vm2, %v5050_v43 }
 0x326   : > { %4856 = vmatpush3.bf16.msra.mxu1 %v3317_v25  ;;  %4862 = vmatpush3.bf16.msra.mxu0 %v3360_v32 }
 0x327   : > { %4857 = vmatprep.mubr.msk.bf16.mxu1 %vm5186_vm0, %v5185_v24  ;;  %4867 = vmatprep.subr.bf16.mxu1 %v5185_v24 }
 0x328   : > { %4873 = vmatprep.subr.bf16.mxu0 %v5185_v24 }
 0x329   : > { %4864 = vmatmul.mubr.msk.bf16.vlgmr.msra.gmra.mxu0 %vm730_vm2, %v5588_v15 }
 0x32a   : > { %4874 = vmatpush3.bf16.msra.mxu0 %v3446_v33  ;;  %4875 = vmatprep.mubr.msk.bf16.mxu0 %vm5186_vm0, %v5185_v24 }
 0x32b   : > { %4885 = vmatprep.subr.bf16.mxu0 %v5185_v24 }
 0x32c   : > { %v4749_v30 = vpop.f32.mrf.mxu0 }
 0x32d   : > { %4858 = vmatmul.mubr.msk.bf16.vlgmr.msra.gmra.mxu1 %vm730_vm2, %v5051_v37 }
 0x32e   : > { %4868 = vmatpush3.bf16.msra.mxu1 %v3403_v40  ;;  %v2542_v39 = vpop.f32.mrf.mxu0  ;;  %4869 = vmatprep.mubr.msk.bf16.mxu1 %vm5186_vm0, %v5185_v24 }
 0x32f   : > { %v2609_v41 = vpack.c.bf16 %v2542_v39, %v2542_v39  ;;  %4879 = vmatprep.subr.bf16.mxu1 %v5185_v24 }
 0x330   : > { %v4750_v15 = vpop.f32.mrf.mxu0 }
 0x331   : > { %4876 = vmatmul.mubr.msk.bf16.vlgmr.msra.gmra.mxu0 %vm730_vm2, %v5599_v21  ;;  %v3489_v36 = vsel %vm734_vm1, %v2609_v41, 0  ;;  %v2612_v44 = vpack.c.bf16 %v4750_v15, %v4750_v15  ;;  %v2611_v21 = vpack.c.bf16 %v4749_v30, %v4749_v30 }
 0x332   : > { %v2545_v31 = vpop.f32.mrf.mxu0  ;;  %4887 = vmatprep.mubr.msk.bf16.mxu0 %vm5186_vm0, %v5185_v24 }
 0x333   : > { %v2610_v38 = vpack.c.bf16 %v2545_v31, %v2545_v31  ;;  %v3618_v52 = vsel %vm734_vm1, %v2612_v44, 0  ;;  %v3575_v57 = vsel %vm734_vm1, %v2611_v21, 0 }
 0x335   : > { %v3532_v48 = vsel %vm734_vm1, %v2610_v38, 0  ;;  %4870 = vmatmul.mubr.msk.bf16.vlgmr.msra.gmra.mxu1 %vm730_vm2, %v5052_v51 }
 0x336   : > { %4880 = vmatpush3.bf16.msra.mxu1 %v3489_v36  ;;  %4886 = vmatpush3.bf16.msra.mxu0 %v3532_v48 }
 0x337   : > { %4881 = vmatprep.mubr.msk.bf16.mxu1 %vm5186_vm0, %v5185_v24  ;;  %4891 = vmatprep.subr.bf16.mxu1 %v5185_v24 }
 0x338   : > { %4897 = vmatprep.subr.bf16.mxu0 %v5185_v24 }
 0x339   : > { %4888 = vmatmul.mubr.msk.bf16.vlgmr.msra.gmra.mxu0 %vm730_vm2, %v5610_v27 }
 0x33a   : > { %4898 = vmatpush3.bf16.msra.mxu0 %v3618_v52  ;;  %4899 = vmatprep.mubr.msk.bf16.mxu0 %vm5186_vm0, %v5185_v24 }
 0x33b   : > { %4909 = vmatprep.subr.bf16.mxu0 %v5185_v24 }
 0x33c   : > { %v4753_v45 = vpop.f32.mrf.mxu0 }
 0x33d   : > { %4882 = vmatmul.mubr.msk.bf16.vlgmr.msra.gmra.mxu1 %vm730_vm2, %v5053_v55 }
 0x33e   : > { %4892 = vmatpush3.bf16.msra.mxu1 %v3575_v57  ;;  %v2558_v58 = vpop.f32.mrf.mxu0  ;;  %4893 = vmatprep.mubr.msk.bf16.mxu1 %vm5186_vm0, %v5185_v24 }
 0x33f   : > { %v2613_v59 = vpack.c.bf16 %v2558_v58, %v2558_v58  ;;  %4903 = vmatprep.subr.bf16.mxu1 %v5185_v24 }
 0x340   : > { %v4754_v27 = vpop.f32.mrf.mxu0 }
 0x341   : > { %4900 = vmatmul.mubr.msk.bf16.vlgmr.msra.gmra.mxu0 %vm730_vm2, %v5622_v18  ;;  %v3661_v50 = vsel %vm734_vm1, %v2613_v59, 0  ;;  %v2616_v60 = vpack.c.bf16 %v4754_v27, %v4754_v27  ;;  %v2615_v18 = vpack.c.bf16 %v4753_v45, %v4753_v45 }
 0x342   : > { %v2561_v0 = vpop.f32.mrf.mxu0  ;;  %4911 = vmatprep.mubr.msk.bf16.mxu0 %vm5186_vm0, %v5185_v24 }
 0x343   : > { %v2614_v9 = vpack.c.bf16 %v2561_v0, %v2561_v0  ;;  %v3790_v1 = vsel %vm734_vm1, %v2616_v60, 0  ;;  %v3747_v3 = vsel %vm734_vm1, %v2615_v18, 0 }
 0x345   : > { %v3704_v62 = vsel %vm734_vm1, %v2614_v9, 0  ;;  %4894 = vmatmul.mubr.msk.bf16.vlgmr.msra.gmra.mxu1 %vm730_vm2, %v5054_v63 }
 0x346   : > { %4904 = vmatpush3.bf16.msra.mxu1 %v3661_v50  ;;  %4910 = vmatpush3.bf16.msra.mxu0 %v3704_v62 }
 0x347   : > { %4905 = vmatprep.mubr.msk.bf16.mxu1 %vm5186_vm0, %v5185_v24  ;;  %4915 = vmatprep.subr.bf16.mxu1 %v5185_v24 }
 0x348   : > { %4921 = vmatprep.subr.bf16.mxu0 %v5185_v24 }
 0x349   : > { %4912 = vmatmul.mubr.msk.bf16.vlgmr.msra.gmra.mxu0 %vm730_vm2, %v5633_v35 }
 0x34a   : > { %4922 = vmatpush3.bf16.msra.mxu0 %v3790_v1  ;;  %4923 = vmatprep.mubr.msk.bf16.mxu0 %vm5186_vm0, %v5185_v24 }
 0x34b   : > { %4933 = vmatprep.subr.bf16.mxu0 %v5185_v24 }
 0x34c   : > { %v4757_v16 = vpop.f32.mrf.mxu0 }
 0x34d   : > { %4906 = vmatmul.mubr.msk.bf16.vlgmr.msra.gmra.mxu1 %vm730_vm2, %v5055_v6 }
 0x34e   : > { %4916 = vmatpush3.bf16.msra.mxu1 %v3747_v3  ;;  %v2574_v7 = vpop.f32.mrf.mxu0  ;;  %4917 = vmatprep.mubr.msk.bf16.mxu1 %vm5186_vm0, %v5185_v24 }
 0x34f   : > { %v2617_v26 = vpack.c.bf16 %v2574_v7, %v2574_v7  ;;  %4927 = vmatprep.subr.bf16.mxu1 %v5185_v24 }
 0x350   : > { %v4758_v35 = vpop.f32.mrf.mxu0 }
 0x351   : > { %4924 = vmatmul.mubr.msk.bf16.vlgmr.msra.gmra.mxu0 %vm730_vm2, %v5642_v42  ;;  %v3833_v8 = vsel %vm734_vm1, %v2617_v26, 0  ;;  %v2620_v56 = vpack.c.bf16 %v4758_v35, %v4758_v35  ;;  %v2619_v42 = vpack.c.bf16 %v4757_v16, %v4757_v16 }
 0x352   : > { %v2577_v12 = vpop.f32.mrf.mxu0  ;;  %4935 = vmatprep.mubr.msk.bf16.mxu0 %vm5186_vm0, %v5185_v24 }
 0x353   : > { %v2618_v34 = vpack.c.bf16 %v2577_v12, %v2577_v12  ;;  %v3962_v53 = vsel %vm734_vm1, %v2620_v56, 0  ;;  %v3919_v13 = vsel %vm734_vm1, %v2619_v42, 0 }
 0x355   : > { %v3876_v10 = vsel %vm734_vm1, %v2618_v34, 0  ;;  %4918 = vmatmul.mubr.msk.bf16.vlgmr.msra.gmra.mxu1 %vm730_vm2, %v5056_v61 }
 0x356   : > { %4928 = vmatpush3.bf16.msra.mxu1 %v3833_v8  ;;  %4934 = vmatpush3.bf16.msra.mxu0 %v3876_v10 }
 0x357   : > { %4929 = vmatprep.mubr.msk.bf16.mxu1 %vm5186_vm0, %v5185_v24  ;;  %4939 = vmatprep.subr.bf16.mxu1 %v5185_v24 }
 0x358   : > { %4945 = vmatprep.subr.bf16.mxu0 %v5185_v24 }
 0x359   : > { %4936 = vmatmul.mubr.msk.bf16.vlgmr.msra.gmra.mxu0 %vm730_vm2, %v5651_v46  ;;  %v5927_v46 = vld [vmem:[%s6051_s5] ss:$0 sm:$0xff] }
 0x35a   : > { %4946 = vmatpush3.bf16.msra.mxu0 %v3962_v53  ;;  %4947 = vmatprep.mubr.msk.bf16.mxu0 %vm5186_vm0, %v5185_v24 }
 0x35d   : > { %4930 = vmatmul.mubr.msk.bf16.vlgmr.msra.gmra.mxu1 %vm730_vm2, %v5057_v5 }
 0x35e   : > { %4940 = vmatpush3.bf16.msra.mxu1 %v3919_v13  ;;  %4941 = vmatprep.mubr.msk.bf16.mxu1 %vm5186_vm0, %v5185_v24 }
 0x361   : > { %4948 = vmatmul.mubr.msk.bf16.vlgmr.msra.gmra.mxu0 %vm730_vm2, %v5660_v49 }
 0x365   : > { %4942 = vmatmul.mubr.msk.bf16.vlgmr.msra.gmra.mxu1 %vm730_vm2, %v5058_v14 }
 0x385   : > { %v2665_v47 = vpop.f32.mrf.mxu1 }
 0x386   : > { %v2666_v19 = vadd.f32 %v5927_v46, %v2665_v47 }
 0x387   : > { %v4763_v54 = vpop.f32.mrf.mxu1 }
 0x388   : > { %4004 = vst [vmem:[%s5930_s28] sm:$0xff] %v2666_v19 }
 0x389   : > { %v2668_v24 = vpop.f32.mrf.mxu1 }
 0x38b   : > { %v4764_v49 = vpop.f32.mrf.mxu1 }
 0x38d   : > { %v2708_v28 = vpop.f32.mrf.mxu1 }
 0x38e   : > { %v2709_v20 = vadd.f32 %v5927_v46, %v2708_v28 }
 0x38f   : > { %v4769_v2 = vpop.f32.mrf.mxu1 }
 0x390   : > { %4005 = vst [vmem:[%s5930_s28 + $0x8] sm:$0xff] %v2709_v20 }
 0x391   : > { %v2711_v17 = vpop.f32.mrf.mxu1 }
 0x393   : > { %v4770_v4 = vpop.f32.mrf.mxu1 }
 0x395   : > { %v2751_v23 = vpop.f32.mrf.mxu1 }
 0x396   : > { %v2752_v25 = vadd.f32 %v5927_v46, %v2751_v23 }
 0x397   : > { %v4775_v22 = vpop.f32.mrf.mxu1 }
 0x398   : > { %4006 = vst [vmem:[%s5930_s28 + $0x10] sm:$0xff] %v2752_v25 }
 0x399   : > { %v2754_v29 = vpop.f32.mrf.mxu1 }
 0x39b   : > { %v4776_v32 = vpop.f32.mrf.mxu1 }
 0x39d   : > { %v2794_v43 = vpop.f32.mrf.mxu1 }
 0x39e   : > { %v2795_v11 = vadd.f32 %v5927_v46, %v2794_v43 }
 0x39f   : > { %v4781_v33 = vpop.f32.mrf.mxu1 }
 0x3a0   : > { %4007 = vst [vmem:[%s5930_s28 + $0x18] sm:$0xff] %v2795_v11 }
 0x3a1   : > { %v2797_v30 = vpop.f32.mrf.mxu1 }
 0x3a3   : > { %v4782_v40 = vpop.f32.mrf.mxu1 }
 0x3a5   : > { %v2837_v37 = vpop.f32.mrf.mxu1 }
 0x3a6   : > { %v2838_v39 = vadd.f32 %v5927_v46, %v2837_v37 }
 0x3a7   : > { %v4787_v41 = vpop.f32.mrf.mxu1 }
 0x3a8   : > { %4008 = vst [vmem:[%s5930_s28 + $0x20] sm:$0xff] %v2838_v39 }
 0x3a9   : > { %v2840_v15 = vpop.f32.mrf.mxu1 }
 0x3ab   : > { %v4788_v31 = vpop.f32.mrf.mxu1 }
 0x3ad   : > { %v2880_v36 = vpop.f32.mrf.mxu1 }
 0x3ae   : > { %v2881_v38 = vadd.f32 %v5927_v46, %v2880_v36 }
 0x3af   : > { %v4793_v44 = vpop.f32.mrf.mxu1 }
 0x3b0   : > { %4009 = vst [vmem:[%s5930_s28 + $0x28] sm:$0xff] %v2881_v38 }
 0x3b1   : > { %v2883_v48 = vpop.f32.mrf.mxu1 }
 0x3b3   : > { %v4794_v51 = vpop.f32.mrf.mxu1 }
 0x3b5   : > { %v2923_v21 = vpop.f32.mrf.mxu1 }
 0x3b6   : > { %v2924_v52 = vadd.f32 %v5927_v46, %v2923_v21 }
 0x3b7   : > { %v4799_v45 = vpop.f32.mrf.mxu1 }
 0x3b8   : > { %4010 = vst [vmem:[%s5930_s28 + $0x30] sm:$0xff] %v2924_v52 }
 0x3b9   : > { %v2926_v57 = vpop.f32.mrf.mxu1 }
 0x3bb   : > { %v4800_v55 = vpop.f32.mrf.mxu1 }
 0x3bd   : > { %v2966_v58 = vpop.f32.mrf.mxu1 }
 0x3be   : > { %v2967_v59 = vadd.f32 %v5927_v46, %v2966_v58 }
 0x3bf   : > { %v4805_v27 = vpop.f32.mrf.mxu1 }
 0x3c0   : > { %4011 = vst [vmem:[%s5930_s28 + $0x38] sm:$0xff] %v2967_v59 }
 0x3c1   : > { %v2969_v0 = vpop.f32.mrf.mxu1 }
 0x3c3   : > { %v4806_v50 = vpop.f32.mrf.mxu1 }
 0x3c5   : > { %v3009_v9 = vpop.f32.mrf.mxu1 }
 0x3c6   : > { %v3010_v60 = vadd.f32 %v5927_v46, %v3009_v9 }
 0x3c7   : > { %v4811_v62 = vpop.f32.mrf.mxu1  ;;  %v3138_v63 = vpop.f32.mrf.mxu0 }
 0x3c8   : > { %4012 = vst [vmem:[%s5930_s28 + $0x40] sm:$0xff] %v3010_v60  ;;  %v3139_v18 = vadd.f32 %v5927_v46, %v3138_v63 }
 0x3c9   : > { %v3012_v1 = vpop.f32.mrf.mxu1  ;;  %v4829_v16 = vpop.f32.mrf.mxu0 }
 0x3ca   : > { %4015 = vst [vmem:[%s5930_s28 + $0x58] sm:$0xff] %v3139_v18 }
 0x3cb   : > { %v4812_v3 = vpop.f32.mrf.mxu1  ;;  %v3141_v6 = vpop.f32.mrf.mxu0 }
 0x3cd   : > { %v3052_v7 = vpop.f32.mrf.mxu1  ;;  %v4830_v26 = vpop.f32.mrf.mxu0 }
 0x3ce   : > { %v3053_v35 = vadd.f32 %v5927_v46, %v3052_v7 }
 0x3cf   : > { %v4817_v12 = vpop.f32.mrf.mxu1 }
 0x3d0   : > { %4013 = vst [vmem:[%s5930_s28 + $0x48] sm:$0xff] %v3053_v35 }
 0x3d1   : > { %v3055_v8 = vpop.f32.mrf.mxu1 }
 0x3d3   : > { %v4818_v34 = vpop.f32.mrf.mxu1 }
 0x3d5   : > { %v3095_v56 = vpop.f32.mrf.mxu1 }
 0x3d6   : > { %v3096_v10 = vadd.f32 %v5927_v46, %v3095_v56 }
 0x3d7   : > { %v4823_v61 = vpop.f32.mrf.mxu1 }
 0x3d8   : > { %4014 = vst [vmem:[%s5930_s28 + $0x50] sm:$0xff] %v3096_v10 }
 0x3d9   : > { %v3098_v42 = vpop.f32.mrf.mxu1  ;;  %v3224_v53 = vpop.f32.mrf.mxu0 }
 0x3da   : > { %v3225_v13 = vadd.f32 %v5927_v46, %v3224_v53 }
 0x3db   : > { %v4824_v5 = vpop.f32.mrf.mxu1  ;;  %v4841_v14 = vpop.f32.mrf.mxu0 }
 0x3dc   : > { %4017 = vst [vmem:[%s5930_s28 + $0x68] sm:$0xff] %v3225_v13 }
 0x3dd   : > { %v3181_v47 = vpop.f32.mrf.mxu1  ;;  %v3227_v19 = vpop.f32.mrf.mxu0 }
 0x3de   : > { %v3182_v54 = vadd.f32 %v5927_v46, %v3181_v47 }
 0x3df   : > { %v4835_v24 = vpop.f32.mrf.mxu1  ;;  %v4842_v49 = vpop.f32.mrf.mxu0 }
 0x3e0   : > { %4016 = vst [vmem:[%s5930_s28 + $0x60] sm:$0xff] %v3182_v54 }
 0x3e1   : > { %v3184_v28 = vpop.f32.mrf.mxu1  ;;  %v3310_v20 = vpop.f32.mrf.mxu0 }
 0x3e2   : > { %v3311_v2 = vadd.f32 %v5927_v46, %v3310_v20 }
 0x3e3   : > { %v4836_v17 = vpop.f32.mrf.mxu1  ;;  %v4853_v4 = vpop.f32.mrf.mxu0 }
 0x3e4   : > { %4019 = vst [vmem:[%s5930_s28 + $0x78] sm:$0xff] %v3311_v2 }
 0x3e5   : > { %v3267_v23 = vpop.f32.mrf.mxu1  ;;  %v3313_v25 = vpop.f32.mrf.mxu0 }
 0x3e6   : > { %v3268_v22 = vadd.f32 %v5927_v46, %v3267_v23 }
 0x3e7   : > { %v4847_v29 = vpop.f32.mrf.mxu1  ;;  %v4854_v32 = vpop.f32.mrf.mxu0 }
 0x3e8   : > { %4018 = vst [vmem:[%s5930_s28 + $0x70] sm:$0xff] %v3268_v22 }
 0x3e9   : > { %v3270_v43 = vpop.f32.mrf.mxu1  ;;  %v3396_v11 = vpop.f32.mrf.mxu0 }
 0x3ea   : > { %v3397_v33 = vadd.f32 %v5927_v46, %v3396_v11 }
 0x3eb   : > { %v4848_v30 = vpop.f32.mrf.mxu1  ;;  %v4865_v40 = vpop.f32.mrf.mxu0 }
 0x3ec   : > { %4021 = vst [vmem:[%s5930_s28 + $0x88] sm:$0xff] %v3397_v33 }
 0x3ed   : > { %v3353_v37 = vpop.f32.mrf.mxu1  ;;  %v3399_v39 = vpop.f32.mrf.mxu0 }
 0x3ee   : > { %v3354_v41 = vadd.f32 %v5927_v46, %v3353_v37 }
 0x3ef   : > { %v4859_v15 = vpop.f32.mrf.mxu1  ;;  %v4866_v31 = vpop.f32.mrf.mxu0 }
 0x3f0   : > { %4020 = vst [vmem:[%s5930_s28 + $0x80] sm:$0xff] %v3354_v41 }
 0x3f1   : > { %v3356_v36 = vpop.f32.mrf.mxu1  ;;  %v3482_v38 = vpop.f32.mrf.mxu0 }
 0x3f2   : > { %v3483_v44 = vadd.f32 %v5927_v46, %v3482_v38 }
 0x3f3   : > { %v4860_v48 = vpop.f32.mrf.mxu1  ;;  %v4877_v51 = vpop.f32.mrf.mxu0 }
 0x3f4   : > { %4023 = vst [vmem:[%s5930_s28 + $0x98] sm:$0xff] %v3483_v44 }
 0x3f5   : > { %v3439_v21 = vpop.f32.mrf.mxu1  ;;  %v3485_v52 = vpop.f32.mrf.mxu0 }
 0x3f6   : > { %v3440_v45 = vadd.f32 %v5927_v46, %v3439_v21 }
 0x3f7   : > { %v4871_v57 = vpop.f32.mrf.mxu1  ;;  %v4878_v55 = vpop.f32.mrf.mxu0 }
 0x3f8   : > { %4022 = vst [vmem:[%s5930_s28 + $0x90] sm:$0xff] %v3440_v45 }
 0x3f9   : > { %v3442_v58 = vpop.f32.mrf.mxu1  ;;  %v3568_v59 = vpop.f32.mrf.mxu0 }
 0x3fa   : > { %v3569_v27 = vadd.f32 %v5927_v46, %v3568_v59 }
 0x3fb   : > { %v4872_v0 = vpop.f32.mrf.mxu1  ;;  %v4889_v50 = vpop.f32.mrf.mxu0 }
 0x3fc   : > { %4025 = vst [vmem:[%s5930_s28 + $0xa8] sm:$0xff] %v3569_v27 }
 0x3fd   : > { %v3525_v9 = vpop.f32.mrf.mxu1  ;;  %v3571_v60 = vpop.f32.mrf.mxu0 }
 0x3fe   : > { %v3526_v62 = vadd.f32 %v5927_v46, %v3525_v9 }
 0x3ff   : > { %v4883_v63 = vpop.f32.mrf.mxu1  ;;  %v4890_v18 = vpop.f32.mrf.mxu0 }
 0x400   : > { %4024 = vst [vmem:[%s5930_s28 + $0xa0] sm:$0xff] %v3526_v62 }
 0x401   : > { %v3528_v1 = vpop.f32.mrf.mxu1  ;;  %v3654_v16 = vpop.f32.mrf.mxu0 }
 0x402   : > { %v3655_v3 = vadd.f32 %v5927_v46, %v3654_v16 }
 0x403   : > { %v4884_v6 = vpop.f32.mrf.mxu1  ;;  %v4901_v7 = vpop.f32.mrf.mxu0 }
 0x404   : > { %4027 = vst [vmem:[%s5930_s28 + $0xb8] sm:$0xff] %v3655_v3 }
 0x405   : > { %v3611_v26 = vpop.f32.mrf.mxu1  ;;  %v3657_v35 = vpop.f32.mrf.mxu0 }
 0x406   : > { %v3612_v12 = vadd.f32 %v5927_v46, %v3611_v26 }
 0x407   : > { %v4895_v8 = vpop.f32.mrf.mxu1  ;;  %v4902_v34 = vpop.f32.mrf.mxu0 }
 0x408   : > { %4026 = vst [vmem:[%s5930_s28 + $0xb0] sm:$0xff] %v3612_v12 }
 0x409   : > { %v3614_v56 = vpop.f32.mrf.mxu1  ;;  %v3740_v10 = vpop.f32.mrf.mxu0 }
 0x40a   : > { %v3741_v61 = vadd.f32 %v5927_v46, %v3740_v10 }
 0x40b   : > { %v4896_v42 = vpop.f32.mrf.mxu1  ;;  %v4913_v53 = vpop.f32.mrf.mxu0 }
 0x40c   : > { %4029 = vst [vmem:[%s5930_s28 + $0xc8] sm:$0xff] %v3741_v61 }
 0x40d   : > { %v3697_v13 = vpop.f32.mrf.mxu1  ;;  %v3743_v5 = vpop.f32.mrf.mxu0 }
 0x40e   : > { %v3698_v14 = vadd.f32 %v5927_v46, %v3697_v13 }
 0x40f   : > { %v4907_v47 = vpop.f32.mrf.mxu1  ;;  %v4914_v19 = vpop.f32.mrf.mxu0 }
 0x410   : > { %4028 = vst [vmem:[%s5930_s28 + $0xc0] sm:$0xff] %v3698_v14 }
 0x411   : > { %v3700_v54 = vpop.f32.mrf.mxu1  ;;  %v3826_v24 = vpop.f32.mrf.mxu0 }
 0x412   : > { %v3827_v49 = vadd.f32 %v5927_v46, %v3826_v24 }
 0x413   : > { %v4908_v28 = vpop.f32.mrf.mxu1  ;;  %v4925_v20 = vpop.f32.mrf.mxu0 }
 0x414   : > { %4031 = vst [vmem:[%s5930_s28 + $0xd8] sm:$0xff] %v3827_v49 }
 0x415   : > { %v3783_v2 = vpop.f32.mrf.mxu1  ;;  %v3829_v17 = vpop.f32.mrf.mxu0 }
 0x416   : > { %v3784_v4 = vadd.f32 %v5927_v46, %v3783_v2 }
 0x417   : > { %v4919_v23 = vpop.f32.mrf.mxu1  ;;  %v4926_v25 = vpop.f32.mrf.mxu0 }
 0x418   : > { %4030 = vst [vmem:[%s5930_s28 + $0xd0] sm:$0xff] %v3784_v4 }
 0x419   : > { %v3786_v22 = vpop.f32.mrf.mxu1  ;;  %v3912_v29 = vpop.f32.mrf.mxu0 }
 0x41a   : > { %v3913_v32 = vadd.f32 %v5927_v46, %v3912_v29 }
 0x41b   : > { %v4920_v43 = vpop.f32.mrf.mxu1  ;;  %v4937_v11 = vpop.f32.mrf.mxu0 }
 0x41c   : > { %4033 = vst [vmem:[%s5930_s28 + $0xe8] sm:$0xff] %v3913_v32 }
 0x41d   : > { %v3869_v33 = vpop.f32.mrf.mxu1  ;;  %v3915_v30 = vpop.f32.mrf.mxu0 }
 0x41e   : > { %v3870_v40 = vadd.f32 %v5927_v46, %v3869_v33 }
 0x41f   : > { %v4931_v37 = vpop.f32.mrf.mxu1  ;;  %v4938_v39 = vpop.f32.mrf.mxu0 }
 0x420   : > { %4032 = vst [vmem:[%s5930_s28 + $0xe0] sm:$0xff] %v3870_v40 }
 0x421   : > { %v3872_v41 = vpop.f32.mrf.mxu1  ;;  %v3998_v15 = vpop.f32.mrf.mxu0 }
 0x422   : > { %v3999_v31 = vadd.f32 %v5927_v46, %v3998_v15 }
 0x423   : > { %v4932_v36 = vpop.f32.mrf.mxu1  ;;  %v4949_v38 = vpop.f32.mrf.mxu0 }
 0x424   : > { %4035 = vst [vmem:[%s5930_s28 + $0xf8] sm:$0xff] %v3999_v31 }
 0x425   : > { %v3955_v44 = vpop.f32.mrf.mxu1  ;;  %v4001_v48 = vpop.f32.mrf.mxu0 }
 0x426   : > { %v3956_v51 = vadd.f32 %v5927_v46, %v3955_v44 }
 0x427   : > { %v4943_v21 = vpop.f32.mrf.mxu1  ;;  %v4950_v52 = vpop.f32.mrf.mxu0 }
 0x428   : > { %4034 = vst [vmem:[%s5930_s28 + $0xf0] sm:$0xff] %v3956_v51 }
 0x429   : > { %v3958_v45 = vpop.f32.mrf.mxu1 }
 0x42a   : > { %5124 = shalt.err (!%p5121_p3)
}
 0x42b   : > { %s5125_s17 = scalar_lea.hbm %s5998_s12, 4096  ;;  %s5129_s20 = scalar_lea.hbm %s6052_s6, 8192 }
 0x42c   : > { %p5126_p2 = scmp.ne.s32.totalorder %s5998_s12, %s5125_s17  ;;  %p5130_p7 = scmp.lt.s32.totalorder %s5998_s12, %s6052_s6 }
 0x42d   : > { %p5131_p6 = scmp.lt.s32.totalorder %s5129_s20, %s5125_s17 }
 0x42e   : > { %p5127_p4 = pnand %p5126_p2, %p5263_p5 }
 0x42f   : > { %p5132_p9 = por %p5131_p6, %p5130_p7 }
 0x430   : > { %p5128_p13 = pneg %p5127_p4 }
 0x432   : > { %p5133_p10 = pnand %p5132_p9, %p5128_p13 }
 0x434   : > { %5136 = shalt.err (!%p5133_p10)
}
 0x435   : > { %s5188_s29 = smov 128   ;;  %s5189_s10 = smov 8   ;;  %v4944_v46 = vpop.f32.mrf.mxu1 }
 0x436   : > { %4959 = dma.vmem_to_hbm [thread:$0]  (%p5263_p5), %s6000_s9, 4096, %s5998_s12, %s6006_s25, %s5188_s29, %s5188_s29, %s5189_s10  }
 0x437 PF: > { %p4976_p12 = scmp.ge.s32.totalorder %s5179_s24, 2  ;;  %s4065_s11 = sand.u32 1, %s5167_s21  }
 0x438   : > { %p6062_p8 = scmp.ne.s32.totalorder %s6055_s8, 0  ;;  %s4066_s13 = scalar_lea.sflag [#allocation4], %s4065_s11 }
 0x43a   : > { %p4969_p11 = pnand %p4976_p12, %p6062_p8 }
 0x43c   : > { %p4970_p0 = pneg %p4969_p11 }
 0x43e   : > { %5162 = dma.done.wait (%p4970_p0), %s4066_s13, 4096  }
 0x43f   : > { %5164 = vsyncadd (%p4970_p0), %s4066_s13, 4294963200  ;;  %p18_p1 = scmp.ge.s32.totalorder %s5250_s27, 4   ;;  %s6063_s21 = smov %s5171_s22 }
 0x440   : > { %s6064_s22 = smov %s5175_s23  ;;  %s6065_s23 = smov %s5261_s30 }
 0x441   : > { %s6066_s24 = smov %s5250_s27  ;;  %20 = sbr.rel (!%p18_p1) target bundleno = 5 (0x5), region = 91 }
 0x446   :  { %4071 = vsyncpa [#allocation3], 1 }
 0x447   :  { %4073 = vsyncpa [#allocation3 + $0x1], 1 }
 0x448   :  { %4074 = vsyncpa [#allocation6], 1 }
 0x449   :  { %4075 = vsyncpa [#allocation4], 1 }
 0x44a   :  { %4077 = vsyncpa [#allocation4 + $0x1], 1 }

</bundles_post_ra>
